<compile_context>
chip_gen: v6e
topology: v6e:2x2x1
jax: 0.10.0
libtpu: 0.0.40
codegen_flags: <defaults>
</compile_context>

<pallas_src>
import jax
import jax.numpy as jnp
from jax.experimental import pallas as pl
from jax.experimental.pallas import tpu as pltpu

# ------------------------- configuration (small, synthetic) -----------------
B = 2            # batch size
N = 2            # number of cameras
C_IN = 32        # camera feature channels (real model: 256)
FH, FW = 8, 16   # 1/16-scale feature map size (imgs_feats[1])
D = 8            # number of depth bins
EMBED = 32       # embed_dims == BEV channels
IMG_H, IMG_W = 450, 800          # actual image size -> resize = 450/900 = 0.5
BEV_H, BEV_W = 16, 16            # BEV grid
XBOUND = (-8.0, 8.0, 1.0)
YBOUND = (-8.0, 8.0, 1.0)
ZBOUND = (-10.0, 10.0, 20.0)
DBOUND = (1.0, 9.0, 1.0)

HW = FH * FW                     # 128
NHW = N * HW                     # 256  camera+spatial positions (lane axis)
V = BEV_H * BEV_W                # 256  BEV cells per batch element


# ------------------------------ fused Pallas kernel ---------------------------
def _lss_fused_kernel(feat_ref, idx_ref, wd_ref, wc_ref, bd_ref, bc_ref, out_ref):
    """Fused LSS lift + splat for one batch element.

    feat_ref : (1, C_IN, NHW)  bf16   channels-first camera features (all cams)
    idx_ref  : (1, D, NHW)     int32  flat BEV voxel index per frustum point (-1 = invalid)
    wd_ref   : (D, C_IN)       bf16   depth head of the 1x1 depthnet conv
    wc_ref   : (EMBED, C_IN)   bf16   context head of the 1x1 depthnet conv
    bd_ref   : (D, 1)          f32    depth-head bias
    bc_ref   : (EMBED, 1)      f32    context-head bias
    out_ref  : (1, EMBED, V)   f32    transposed BEV features (lane-dense, V=256)
    """
    feats = feat_ref[0]                                               # (C_IN, NHW) bf16

    # Depthnet 1x1 conv, split into depth / context heads (no lane-offset slices).
    dlog = jnp.dot(wd_ref[...], feats,
                   preferred_element_type=jnp.float32) + bd_ref[...]  # (D, NHW) f32
    ctx = jnp.dot(wc_ref[...], feats,
                  preferred_element_type=jnp.float32) + bc_ref[...]   # (EMBED, NHW) f32

    # Softmax over the depth bins (sublane axis 0); f32 elementwise (v5e-safe).
    m = jnp.max(dlog, axis=0, keepdims=True)
    e = jnp.exp(dlog - m)
    depth = e / jnp.sum(e, axis=0, keepdims=True)                     # (D, NHW) f32

    # Depth-weighted voxel assignment built on-chip (replaces the HBM one-hot):
    #   W[v, q] = sum_d [idx[d, q] == v] * depth[d, q]
    idx = idx_ref[0]                                                  # (D, NHW) int32
    v_iota = jax.lax.broadcasted_iota(jnp.int32, (V, NHW), 0)
    w_vox = jnp.zeros((V, NHW), jnp.float32)
    for d in range(D):                                                # static, D == 8
        w_vox = w_vox + jnp.where(v_iota == idx[d:d + 1, :],
                                  depth[d:d + 1, :], 0.0)

    # Splat (fused): bev^T[e, v] = sum_q ctx[e, q] * W[v, q].
    # bf16 MXU operands, f32 accumulation, lane-dense (EMBED, V) output.
    out_ref[0] = jnp.dot(ctx.astype(jnp.bfloat16),
                         w_vox.T.astype(jnp.bfloat16),
                         preferred_element_type=jnp.float32)          # (EMBED, V)


def lss_fused(feats_t, vox_idx, w_depth_t, w_ctx_t, b_depth, b_ctx):
    """feats_t: (B, C_IN, NHW) bf16, vox_idx: (B, D, NHW) int32 -> (B, EMBED, V) f32."""
    bsz = feats_t.shape[0]
    return pl.pallas_call(
        _lss_fused_kernel,
        out_shape=jax.ShapeDtypeStruct((bsz, EMBED, V), jnp.float32),
        grid_spec=pltpu.PrefetchScalarGridSpec(
            num_scalar_prefetch=0,
            grid=(bsz,),
            in_specs=[
                pl.BlockSpec((1, C_IN, NHW), lambda b: (b, 0, 0)),
                pl.BlockSpec((1, D, NHW), lambda b: (b, 0, 0)),
                pl.BlockSpec((D, C_IN), lambda b: (0, 0)),
                pl.BlockSpec((EMBED, C_IN), lambda b: (0, 0)),
                pl.BlockSpec((D, 1), lambda b: (0, 0)),
                pl.BlockSpec((EMBED, 1), lambda b: (0, 0)),
            ],
            out_specs=pl.BlockSpec((1, EMBED, V), lambda b: (b, 0, 0)),
        ),
        compiler_params=pltpu.CompilerParams(
            dimension_semantics=("parallel",)),
    )(feats_t, vox_idx, w_depth_t, w_ctx_t, b_depth, b_ctx)


# --------------------------- geometry (plain JAX glue) ------------------------
def create_frustum(img_h, img_w):
    """(D, FH, FW, 3) with (x_pix, y_pix, depth) per cell (actual image coords)."""
    ds = DBOUND[0] + DBOUND[2] * jnp.arange(D, dtype=jnp.float32)
    xs = jnp.linspace(0.0, img_w - 1.0, FW, dtype=jnp.float32)
    ys = jnp.linspace(0.0, img_h - 1.0, FH, dtype=jnp.float32)
    dg, yg, xg = jnp.meshgrid(ds, ys, xs, indexing="ij")      # (D, FH, FW)
    return jnp.stack([xg, yg, dg], axis=-1)                   # (D, FH, FW, 3)


def get_geometry(frustum, rots, trans, intrins, post_rots, post_trans):
    """Standard LSS frustum -> ego-frame geometry.  Returns (B, N, D, FH, FW, 3)."""
    points = frustum[None, None] - post_trans[:, :, None, None, None, :]
    inv_post = jnp.linalg.inv(post_rots)                                  # (B,N,3,3)
    points = jnp.einsum("bnij,bndhwj->bndhwi", inv_post, points)
    points = jnp.concatenate(
        [points[..., :2] * points[..., 2:3], points[..., 2:3]], axis=-1)
    combine = jnp.einsum("bnij,bnjk->bnik", rots, jnp.linalg.inv(intrins))
    points = jnp.einsum("bnij,bndhwj->bndhwi", combine, points)
    points = points + trans[:, :, None, None, None, :]
    return points


def build_voxel_indices(geom):
    """geom: (B, N, D, FH, FW, 3) -> flat BEV voxel index (B, D, NHW), -1 if invalid."""
    # reorder so the q axis (n, fh, fw) matches the channels-first feature layout
    geom = jnp.transpose(geom, (0, 2, 1, 3, 4, 5)).reshape(B, D, NHW, 3)
    dx = jnp.array([XBOUND[2], YBOUND[2], ZBOUND[2]], jnp.float32)
    bx = jnp.array([XBOUND[0] + XBOUND[2] / 2.0,
                    YBOUND[0] + YBOUND[2] / 2.0,
                    ZBOUND[0] + ZBOUND[2] / 2.0], jnp.float32)
    nx = jnp.array([int((XBOUND[1] - XBOUND[0]) / XBOUND[2]),
                    int((YBOUND[1] - YBOUND[0]) / YBOUND[2]),
                    int((ZBOUND[1] - ZBOUND[0]) / ZBOUND[2])], jnp.int32)
    vox = jnp.floor((geom - (bx - dx / 2.0)) / dx).astype(jnp.int32)       # (B,D,NHW,3)
    valid = jnp.all((vox >= 0) & (vox < nx[None, None, None, :]), axis=-1)  # (B,D,NHW)
    # TODO(synk): flat index ignores the z bin (valid only while ZBOUND yields nz==1).
    flat = vox[..., 0] * BEV_W + vox[..., 1]                               # x-major
    return jnp.where(valid, flat, jnp.int32(-1)).astype(jnp.int32)          # (B,D,NHW)


def get_intri_and_extri(img_metas):
    rots = jnp.stack([m["cam2ego_rotations"] for m in img_metas]).astype(jnp.float32)
    trans = jnp.stack([m["cam2ego_translations"] for m in img_metas]).astype(jnp.float32)
    intrins = jnp.stack([m["cam_intrinsics"] for m in img_metas]).astype(jnp.float32)
    return intrins, rots, trans


# -------------------------------- LSS.forward --------------------------------
def lss_forward(imgs, imgs_feats, img_metas, w_depth_t, w_ctx_t, b_depth, b_ctx):
    """Mirrors LSS.forward: returns (B, bev_h*bev_w, embed_dims)."""
    cam_feats = imgs_feats[1]                               # (B, N, C, H, W)
    b, n, c, h, w = cam_feats.shape
    resize = imgs.shape[-2] / 900.0

    intrins, rots, trans = get_intri_and_extri(img_metas)   # (B,N,3,3)/(B,N,3)
    post_rots = jnp.eye(3, dtype=jnp.float32)
    post_rots = post_rots.at[0, 0].set(resize).at[1, 1].set(resize)
    post_rots = jnp.broadcast_to(post_rots, (b, n, 3, 3))
    post_trans = jnp.zeros((b, n, 3), jnp.float32)
    # NOTE: the PyTorch wrapper inserts an extra frame dim of size 1 that the
    # transformer output squeezes away (bev_feats.squeeze(1)); elided here.

    # layout: NCHW -> channels-first with cams+spatial flattened onto lanes
    feats_t = jnp.transpose(cam_feats, (0, 2, 1, 3, 4)).reshape(b, c, n * h * w)
    feats_t = feats_t.astype(jnp.bfloat16)

    frustum = create_frustum(imgs.shape[-2], imgs.shape[-1])
    geom = get_geometry(frustum, rots, trans, intrins, post_rots, post_trans)
    vox_idx = build_voxel_indices(geom)                     # (B, D, NHW) int32

    bev_t = lss_fused(feats_t, vox_idx, w_depth_t, w_ctx_t, b_depth, b_ctx)  # (B,EMBED,V)
    # equals: (B, C, bev_h, bev_w) -> permute(0,2,3,1) -> flatten(1,2)
    return jnp.transpose(bev_t, (0, 2, 1))                  # (B, V, EMBED)


# ------------------------- plain-JAX reference (sanity) -----------------------
def lss_reference(feats_t, vox_idx, w_depth_t, w_ctx_t, b_depth, b_ctx):
    dlog = jnp.einsum("dc,bcq->bdq", w_depth_t, feats_t,
                      preferred_element_type=jnp.float32) + b_depth[None]
    ctx = jnp.einsum("ec,bcq->beq", w_ctx_t, feats_t,
                     preferred_element_type=jnp.float32) + b_ctx[None]
    depth = jax.nn.softmax(dlog, axis=1)                                   # (B,D,NHW)
    onehot = (vox_idx[..., None] == jnp.arange(V, dtype=jnp.int32))        # (B,D,NHW,V)
    w_vox = jnp.sum(onehot.astype(jnp.float32) * depth[..., None], axis=1)  # (B,NHW,V)
    bev_t = jnp.einsum("beq,bqv->bev", ctx.astype(jnp.bfloat16),
                       w_vox.astype(jnp.bfloat16),
                       preferred_element_type=jnp.float32)                 # (B,EMBED,V)
    return jnp.transpose(bev_t, (0, 2, 1))


# ------------------------------------ main ------------------------------------
if __name__ == "__main__":
    key = jax.random.PRNGKey(0)
    k_img, k_f0, k_f1, k_f2, k_f3, k_w, k_b = jax.random.split(key, 7)

    imgs = jax.random.normal(k_img, (B, N, IMG_H, IMG_W), jnp.float32)
    imgs_feats = [
        jax.random.normal(k_f0, (B, N, C_IN, FH * 2, FW * 2), jnp.float32),
        jax.random.normal(k_f1, (B, N, C_IN, FH, FW), jnp.float32),   # used level
        jax.random.normal(k_f2, (B, N, C_IN, FH // 2, FW // 2), jnp.float32),
        jax.random.normal(k_f3, (B, N, C_IN, FH // 4, FW // 4), jnp.float32),
    ]

    # deterministic synthetic camera metadata (nuScenes-like cam->ego axis swap)
    cam2ego_rot = jnp.array([[0.0, 0.0, 1.0],
                             [-1.0, 0.0, 0.0],
                             [0.0, -1.0, 0.0]], jnp.float32)
    intrinsic = jnp.array([[500.0, 0.0, 800.0],
                           [0.0, 500.0, 450.0],
                           [0.0, 0.0, 1.0]], jnp.float32)   # 900-scale intrinsics
    img_metas = []
    for bi in range(B):
        img_metas.append(dict(
            cam2ego_rotations=jnp.stack([cam2ego_rot] * N),
            cam2ego_translations=jnp.stack(
                [jnp.array([0.5, 0.0 + 0.5 * ci + 0.1 * bi, 1.5], jnp.float32)
                 for ci in range(N)]),
            cam_intrinsics=jnp.stack([intrinsic] * N),
        ))

    # depthnet 1x1 conv params: PyTorch weight (D+EMBED, C_IN, 1, 1) squeezed and
    # split into depth / context heads (bf16 MXU operands, f32 biases).
    w_full = 0.05 * jax.random.normal(k_w, (D + EMBED, C_IN), jnp.float32)
    b_full = 0.05 * jax.random.normal(k_b, (D + EMBED,), jnp.float32)
    w_depth_t = w_full[:D].astype(jnp.bfloat16)          # (D, C_IN)
    w_ctx_t = w_full[D:].astype(jnp.bfloat16)            # (EMBED, C_IN)
    b_depth = b_full[:D].reshape(D, 1).astype(jnp.float32)
    b_ctx = b_full[D:].reshape(EMBED, 1).astype(jnp.float32)

    bev_feats = lss_forward(imgs, imgs_feats, img_metas,
                            w_depth_t, w_ctx_t, b_depth, b_ctx)
    bev_feats = jax.block_until_ready(bev_feats)

    assert bev_feats.shape == (B, BEV_H * BEV_W, EMBED), bev_feats.shape
    assert bev_feats.dtype == jnp.float32
    assert bool(jnp.all(jnp.isfinite(bev_feats)))

    # sanity check against a plain-JAX implementation of the same math
    cam_feats = imgs_feats[1]
    feats_t = jnp.transpose(cam_feats, (0, 2, 1, 3, 4)).reshape(B, C_IN, NHW)
    feats_t = feats_t.astype(jnp.bfloat16)
    frustum = create_frustum(IMG_H, IMG_W)
    intrins, rots, trans = get_intri_and_extri(img_metas)
    post_rots = jnp.eye(3, dtype=jnp.float32)
    post_rots = post_rots.at[0, 0].set(IMG_H / 900.0).at[1, 1].set(IMG_H / 900.0)
    post_rots = jnp.broadcast_to(post_rots, (B, N, 3, 3))
    post_trans = jnp.zeros((B, N, 3), jnp.float32)
    geom = get_geometry(frustum, rots, trans, intrins, post_rots, post_trans)
    vox_idx = build_voxel_indices(geom)
    ref = lss_reference(feats_t, vox_idx, w_depth_t, w_ctx_t, b_depth, b_ctx)
    max_err = float(jnp.max(jnp.abs(bev_feats - ref)))
    assert max_err < 5e-2, f"max abs error vs reference: {max_err}"

    print("KERNEL_OK")
</pallas_src>

<mosaic_0001>
module attributes {stable_mosaic.version = 11 : i64} {
  func.func @_lss_fused_kernel(%arg0: i32, %arg1: memref<1x32x256xbf16, #tpu.memory_space<vmem>>, %arg2: memref<1x8x256xi32, #tpu.memory_space<vmem>>, %arg3: memref<8x32xbf16, #tpu.memory_space<vmem>>, %arg4: memref<32x32xbf16, #tpu.memory_space<vmem>>, %arg5: memref<8x1xf32, #tpu.memory_space<vmem>>, %arg6: memref<32x1xf32, #tpu.memory_space<vmem>>, %arg7: memref<1x32x256xf32, #tpu.memory_space<vmem>>) attributes {dimension_semantics = [#tpu.dimension_semantics<parallel>], iteration_bounds = array<i64: 2>, scalar_prefetch = 0 : i64, scratch_operands = 0 : i64, tpu.core_type = #tpu.core_type<tc>, window_params = [{transform_indices = @transform_0, window_bounds = array<i64: 1, 32, 256>}, {transform_indices = @transform_1, window_bounds = array<i64: 1, 8, 256>}, {pipeline_mode = #tpu.pipeline_mode<synchronous>, transform_indices = @transform_2, window_bounds = array<i64: 8, 32>}, {pipeline_mode = #tpu.pipeline_mode<synchronous>, transform_indices = @transform_3, window_bounds = array<i64: 32, 32>}, {pipeline_mode = #tpu.pipeline_mode<synchronous>, transform_indices = @transform_4, window_bounds = array<i64: 8, 1>}, {pipeline_mode = #tpu.pipeline_mode<synchronous>, transform_indices = @transform_5, window_bounds = array<i64: 32, 1>}, {transform_indices = @transform_6, window_bounds = array<i64: 1, 32, 256>}]} {
    %c0 = arith.constant 0 : index
    %c0_0 = arith.constant 0 : index
    %c0_1 = arith.constant 0 : index
    %0 = vector.load %arg1[%c0, %c0_0, %c0_1] : memref<1x32x256xbf16, #tpu.memory_space<vmem>>, vector<1x32x256xbf16>
    %1 = vector.shape_cast %0 : vector<1x32x256xbf16> to vector<32x256xbf16>
    %c0_2 = arith.constant 0 : index
    %c0_3 = arith.constant 0 : index
    %2 = vector.load %arg3[%c0_2, %c0_3] : memref<8x32xbf16, #tpu.memory_space<vmem>>, vector<8x32xbf16>
    %cst = arith.constant dense<0.000000e+00> : vector<8x256xf32>
    %3 = tpu.matmul %2, %1, %cst {dimension_numbers = #tpu.dot_dimension_numbers<[1], [0], [0], [1], [0, 0, 1, 1], [], []>} : vector<8x32xbf16>, vector<32x256xbf16>, vector<8x256xf32> -> vector<8x256xf32>
    %c0_4 = arith.constant 0 : index
    %c0_5 = arith.constant 0 : index
    %4 = vector.load %arg5[%c0_4, %c0_5] : memref<8x1xf32, #tpu.memory_space<vmem>>, vector<8x1xf32>
    %5 = vector.broadcast %4 : vector<8x1xf32> to vector<8x256xf32>
    %6 = arith.addf %3, %5 : vector<8x256xf32>
    %c0_6 = arith.constant 0 : index
    %c0_7 = arith.constant 0 : index
    %7 = vector.load %arg4[%c0_6, %c0_7] : memref<32x32xbf16, #tpu.memory_space<vmem>>, vector<32x32xbf16>
    %cst_8 = arith.constant dense<0.000000e+00> : vector<32x256xf32>
    %8 = tpu.matmul %7, %1, %cst_8 {dimension_numbers = #tpu.dot_dimension_numbers<[1], [0], [0], [1], [0, 0, 1, 1], [], []>} : vector<32x32xbf16>, vector<32x256xbf16>, vector<32x256xf32> -> vector<32x256xf32>
    %c0_9 = arith.constant 0 : index
    %c0_10 = arith.constant 0 : index
    %9 = vector.load %arg6[%c0_9, %c0_10] : memref<32x1xf32, #tpu.memory_space<vmem>>, vector<32x1xf32>
    %10 = vector.broadcast %9 : vector<32x1xf32> to vector<32x256xf32>
    %11 = arith.addf %8, %10 : vector<32x256xf32>
    %cst_11 = arith.constant dense<0xFF800000> : vector<256xf32>
    %12 = vector.multi_reduction <maximumf>, %6, %cst_11 [0] : vector<8x256xf32> to vector<256xf32>
    %13 = vector.shape_cast %12 : vector<256xf32> to vector<1x256xf32>
    %14 = vector.broadcast %13 : vector<1x256xf32> to vector<8x256xf32>
    %15 = arith.subf %6, %14 : vector<8x256xf32>
    %16 = math.exp %15 : vector<8x256xf32>
    %cst_12 = arith.constant dense<0.000000e+00> : vector<256xf32>
    %17 = vector.multi_reduction <add>, %16, %cst_12 [0] : vector<8x256xf32> to vector<256xf32>
    %18 = vector.shape_cast %17 : vector<256xf32> to vector<1x256xf32>
    %19 = vector.broadcast %18 : vector<1x256xf32> to vector<8x256xf32>
    %20 = arith.divf %16, %19 : vector<8x256xf32>
    %c0_13 = arith.constant 0 : index
    %c0_14 = arith.constant 0 : index
    %c0_15 = arith.constant 0 : index
    %21 = vector.load %arg2[%c0_13, %c0_14, %c0_15] : memref<1x8x256xi32, #tpu.memory_space<vmem>>, vector<1x8x256xi32>
    %22 = vector.shape_cast %21 : vector<1x8x256xi32> to vector<8x256xi32>
    %23 = tpu.iota {dimensions = array<i32: 0>} : vector<256x256xi32>
    %cst_16 = arith.constant 0.000000e+00 : f32
    %24 = vector.broadcast %cst_16 : f32 to vector<256x256xf32>
    %25 = vector.extract_strided_slice %22 {offsets = [0, 0], sizes = [1, 256], strides = [1, 1]} : vector<8x256xi32> to vector<1x256xi32>
    %26 = vector.broadcast %25 : vector<1x256xi32> to vector<256x256xi32>
    %27 = arith.cmpi eq, %23, %26 : vector<256x256xi32>
    %28 = vector.extract_strided_slice %20 {offsets = [0, 0], sizes = [1, 256], strides = [1, 1]} : vector<8x256xf32> to vector<1x256xf32>
    %cst_17 = arith.constant 0.000000e+00 : f32
    %29 = vector.shape_cast %28 : vector<1x256xf32> to vector<1x256xf32>
    %30 = vector.broadcast %29 : vector<1x256xf32> to vector<256x256xf32>
    %31 = vector.broadcast %cst_17 : f32 to vector<256x256xf32>
    %32 = arith.select %27, %30, %31 : vector<256x256xi1>, vector<256x256xf32>
    %33 = arith.addf %24, %32 : vector<256x256xf32>
    %34 = vector.extract_strided_slice %22 {offsets = [1, 0], sizes = [1, 256], strides = [1, 1]} : vector<8x256xi32> to vector<1x256xi32>
    %35 = vector.broadcast %34 : vector<1x256xi32> to vector<256x256xi32>
    %36 = arith.cmpi eq, %23, %35 : vector<256x256xi32>
    %37 = vector.extract_strided_slice %20 {offsets = [1, 0], sizes = [1, 256], strides = [1, 1]} : vector<8x256xf32> to vector<1x256xf32>
    %cst_18 = arith.constant 0.000000e+00 : f32
    %38 = vector.shape_cast %37 : vector<1x256xf32> to vector<1x256xf32>
    %39 = vector.broadcast %38 : vector<1x256xf32> to vector<256x256xf32>
    %40 = vector.broadcast %cst_18 : f32 to vector<256x256xf32>
    %41 = arith.select %36, %39, %40 : vector<256x256xi1>, vector<256x256xf32>
    %42 = arith.addf %33, %41 : vector<256x256xf32>
    %43 = vector.extract_strided_slice %22 {offsets = [2, 0], sizes = [1, 256], strides = [1, 1]} : vector<8x256xi32> to vector<1x256xi32>
    %44 = vector.broadcast %43 : vector<1x256xi32> to vector<256x256xi32>
    %45 = arith.cmpi eq, %23, %44 : vector<256x256xi32>
    %46 = vector.extract_strided_slice %20 {offsets = [2, 0], sizes = [1, 256], strides = [1, 1]} : vector<8x256xf32> to vector<1x256xf32>
    %cst_19 = arith.constant 0.000000e+00 : f32
    %47 = vector.shape_cast %46 : vector<1x256xf32> to vector<1x256xf32>
    %48 = vector.broadcast %47 : vector<1x256xf32> to vector<256x256xf32>
    %49 = vector.broadcast %cst_19 : f32 to vector<256x256xf32>
    %50 = arith.select %45, %48, %49 : vector<256x256xi1>, vector<256x256xf32>
    %51 = arith.addf %42, %50 : vector<256x256xf32>
    %52 = vector.extract_strided_slice %22 {offsets = [3, 0], sizes = [1, 256], strides = [1, 1]} : vector<8x256xi32> to vector<1x256xi32>
    %53 = vector.broadcast %52 : vector<1x256xi32> to vector<256x256xi32>
    %54 = arith.cmpi eq, %23, %53 : vector<256x256xi32>
    %55 = vector.extract_strided_slice %20 {offsets = [3, 0], sizes = [1, 256], strides = [1, 1]} : vector<8x256xf32> to vector<1x256xf32>
    %cst_20 = arith.constant 0.000000e+00 : f32
    %56 = vector.shape_cast %55 : vector<1x256xf32> to vector<1x256xf32>
    %57 = vector.broadcast %56 : vector<1x256xf32> to vector<256x256xf32>
    %58 = vector.broadcast %cst_20 : f32 to vector<256x256xf32>
    %59 = arith.select %54, %57, %58 : vector<256x256xi1>, vector<256x256xf32>
    %60 = arith.addf %51, %59 : vector<256x256xf32>
    %61 = vector.extract_strided_slice %22 {offsets = [4, 0], sizes = [1, 256], strides = [1, 1]} : vector<8x256xi32> to vector<1x256xi32>
    %62 = vector.broadcast %61 : vector<1x256xi32> to vector<256x256xi32>
    %63 = arith.cmpi eq, %23, %62 : vector<256x256xi32>
    %64 = vector.extract_strided_slice %20 {offsets = [4, 0], sizes = [1, 256], strides = [1, 1]} : vector<8x256xf32> to vector<1x256xf32>
    %cst_21 = arith.constant 0.000000e+00 : f32
    %65 = vector.shape_cast %64 : vector<1x256xf32> to vector<1x256xf32>
    %66 = vector.broadcast %65 : vector<1x256xf32> to vector<256x256xf32>
    %67 = vector.broadcast %cst_21 : f32 to vector<256x256xf32>
    %68 = arith.select %63, %66, %67 : vector<256x256xi1>, vector<256x256xf32>
    %69 = arith.addf %60, %68 : vector<256x256xf32>
    %70 = vector.extract_strided_slice %22 {offsets = [5, 0], sizes = [1, 256], strides = [1, 1]} : vector<8x256xi32> to vector<1x256xi32>
    %71 = vector.broadcast %70 : vector<1x256xi32> to vector<256x256xi32>
    %72 = arith.cmpi eq, %23, %71 : vector<256x256xi32>
    %73 = vector.extract_strided_slice %20 {offsets = [5, 0], sizes = [1, 256], strides = [1, 1]} : vector<8x256xf32> to vector<1x256xf32>
    %cst_22 = arith.constant 0.000000e+00 : f32
    %74 = vector.shape_cast %73 : vector<1x256xf32> to vector<1x256xf32>
    %75 = vector.broadcast %74 : vector<1x256xf32> to vector<256x256xf32>
    %76 = vector.broadcast %cst_22 : f32 to vector<256x256xf32>
    %77 = arith.select %72, %75, %76 : vector<256x256xi1>, vector<256x256xf32>
    %78 = arith.addf %69, %77 : vector<256x256xf32>
    %79 = vector.extract_strided_slice %22 {offsets = [6, 0], sizes = [1, 256], strides = [1, 1]} : vector<8x256xi32> to vector<1x256xi32>
    %80 = vector.broadcast %79 : vector<1x256xi32> to vector<256x256xi32>
    %81 = arith.cmpi eq, %23, %80 : vector<256x256xi32>
    %82 = vector.extract_strided_slice %20 {offsets = [6, 0], sizes = [1, 256], strides = [1, 1]} : vector<8x256xf32> to vector<1x256xf32>
    %cst_23 = arith.constant 0.000000e+00 : f32
    %83 = vector.shape_cast %82 : vector<1x256xf32> to vector<1x256xf32>
    %84 = vector.broadcast %83 : vector<1x256xf32> to vector<256x256xf32>
    %85 = vector.broadcast %cst_23 : f32 to vector<256x256xf32>
    %86 = arith.select %81, %84, %85 : vector<256x256xi1>, vector<256x256xf32>
    %87 = arith.addf %78, %86 : vector<256x256xf32>
    %88 = vector.extract_strided_slice %22 {offsets = [7, 0], sizes = [1, 256], strides = [1, 1]} : vector<8x256xi32> to vector<1x256xi32>
    %89 = vector.broadcast %88 : vector<1x256xi32> to vector<256x256xi32>
    %90 = arith.cmpi eq, %23, %89 : vector<256x256xi32>
    %91 = vector.extract_strided_slice %20 {offsets = [7, 0], sizes = [1, 256], strides = [1, 1]} : vector<8x256xf32> to vector<1x256xf32>
    %cst_24 = arith.constant 0.000000e+00 : f32
    %92 = vector.shape_cast %91 : vector<1x256xf32> to vector<1x256xf32>
    %93 = vector.broadcast %92 : vector<1x256xf32> to vector<256x256xf32>
    %94 = vector.broadcast %cst_24 : f32 to vector<256x256xf32>
    %95 = arith.select %90, %93, %94 : vector<256x256xi1>, vector<256x256xf32>
    %96 = arith.addf %87, %95 : vector<256x256xf32>
    %97 = arith.truncf %11 : vector<32x256xf32> to vector<32x256xbf16>
    %98 = tpu.transpose %96, [1, 0] : vector<256x256xf32> -> vector<256x256xf32>
    %99 = arith.truncf %98 : vector<256x256xf32> to vector<256x256xbf16>
    %cst_25 = arith.constant dense<0.000000e+00> : vector<32x256xf32>
    %100 = tpu.matmul %97, %99, %cst_25 {dimension_numbers = #tpu.dot_dimension_numbers<[1], [0], [0], [1], [0, 0, 1, 1], [], []>} : vector<32x256xbf16>, vector<256x256xbf16>, vector<32x256xf32> -> vector<32x256xf32>
    %c0_26 = arith.constant 0 : index
    %c0_27 = arith.constant 0 : index
    %c0_28 = arith.constant 0 : index
    %101 = vector.load %arg7[%c0_26, %c0_27, %c0_28] : memref<1x32x256xf32, #tpu.memory_space<vmem>>, vector<1x32x256xf32>
    %102 = vector.shape_cast %101 : vector<1x32x256xf32> to vector<32x256xf32>
    %103 = vector.shape_cast %100 : vector<32x256xf32> to vector<1x32x256xf32>
    tpu.vector_store %arg7[%c0_26, %c0_27, %c0_28], %103 {strides = array<i32>} : memref<1x32x256xf32, #tpu.memory_space<vmem>>, vector<1x32x256xf32>,
    return
  }
  func.func @transform_0(%arg0: i32) -> (i32, i32, i32) {
    %c0_i32 = arith.constant 0 : i32
    %c0_i32_0 = arith.constant 0 : i32
    %c0_i32_1 = arith.constant 0 : i32
    return %arg0, %c0_i32, %c0_i32_0 : i32, i32, i32
  }
  func.func @transform_1(%arg0: i32) -> (i32, i32, i32) {
    %c0_i32 = arith.constant 0 : i32
    %c0_i32_0 = arith.constant 0 : i32
    %c0_i32_1 = arith.constant 0 : i32
    return %arg0, %c0_i32, %c0_i32_0 : i32, i32, i32
  }
  func.func @transform_2(%arg0: i32) -> (i32, i32) {
    %c0_i32 = arith.constant 0 : i32
    %c0_i32_0 = arith.constant 0 : i32
    %c0_i32_1 = arith.constant 0 : i32
    return %c0_i32, %c0_i32_0 : i32, i32
  }
  func.func @transform_3(%arg0: i32) -> (i32, i32) {
    %c0_i32 = arith.constant 0 : i32
    %c0_i32_0 = arith.constant 0 : i32
    %c0_i32_1 = arith.constant 0 : i32
    return %c0_i32, %c0_i32_0 : i32, i32
  }
  func.func @transform_4(%arg0: i32) -> (i32, i32) {
    %c0_i32 = arith.constant 0 : i32
    %c0_i32_0 = arith.constant 0 : i32
    %c0_i32_1 = arith.constant 0 : i32
    return %c0_i32, %c0_i32_0 : i32, i32
  }
  func.func @transform_5(%arg0: i32) -> (i32, i32) {
    %c0_i32 = arith.constant 0 : i32
    %c0_i32_0 = arith.constant 0 : i32
    %c0_i32_1 = arith.constant 0 : i32
    return %c0_i32, %c0_i32_0 : i32, i32
  }
  func.func @transform_6(%arg0: i32) -> (i32, i32, i32) {
    %c0_i32 = arith.constant 0 : i32
    %c0_i32_0 = arith.constant 0 : i32
    %c0_i32_1 = arith.constant 0 : i32
    return %arg0, %c0_i32, %c0_i32_0 : i32, i32, i32
  }
}

</mosaic_0001>

<bundles_post_ra>
// kernel: tpu_custom_call.1
= control target key start
LH: loop header
LB: loop body
LE: loop exit
PB: predicated region body
PF: predicated region fallthrough
CT: control target
= control target key end

     0   :  { %11 = vsyncpa [#allocation3], 0  ;;  %s5889_s0 = inlined_call_operand.hbm [shape: bf16[2,32,256], index: 0, kind: input, shape index: {}]   ;;  %s5890_s1 = inlined_call_operand.vmem [shape: s32[2,8,256], index: 1, kind: input, shape index: {}]   ;;  %s5891_s2 = inlined_call_operand.vmem [shape: bf16[8,32], index: 2, kind: input, shape index: {}]   ;;  %s5892_s3 = inlined_call_operand.hbm [shape: bf16[32,32], index: 3, kind: input, shape index: {}]   ;;  %s5893_s4 = inlined_call_operand.vmem [shape: f32[8,1], index: 4, kind: input, shape index: {}]   ;;  %s5894_s5 = inlined_call_operand.vmem [shape: f32[32,1], index: 5, kind: input, shape index: {}]   ;;  %s5895_s6 = inlined_call_operand.hbm [shape: f32[2,32,256], index: 6, kind: output, shape index: {}]  }
   0x1   :  { %13 = vsyncpa [#allocation3 + $0x1], 0 }
   0x2   :  { %14 = vsyncpa [#allocation6], 0 }
   0x3   :  { %15 = vsyncpa [#allocation4], 0 }
   0x4   :  { %17 = vsyncpa [#allocation4 + $0x1], 0  ;;  %s3051_s21 = smov 0   ;;  %s3053_s22 = smov 0  }
   0x5   :  { %s3055_s23 = smov 0   ;;  %s3057_s24 = smov 0  }
   0x6 LB: > { %s3072_s25 = sadd.s32 4294967295, %s3004_s24   ;;  %s2546_s26 = sadd.s32 4294967294, %s3004_s24   ;;  %s3004_s24 = sphi %s3057_s24, %s6059_s24   ;;  %s3000_s23 = sphi %s3055_s23, %s6058_s23   ;;  %s2996_s22 = sphi %s3053_s22, %s6057_s22   ;;  %s2992_s21 = sphi %s3051_s21, %s6056_s21  }
   0x7   : > { %p43_p0 = scmp.ne.s32.totalorder %s2996_s22, %s2992_s21  ;;  %p5896_p1 = scmp.eq.s32.totalorder %s3072_s25, 0 }
   0x8   : > { %p183_p3 = scmp.eq.s32.totalorder %s2546_s26, 1  ;;  %p2547_p5 = scmp.ge.s32.totalorder %s3004_s24, 1 }
   0x9   : > { %p3081_p4 = por %p5896_p1, %p43_p0  ;;  %p190_p7 = scmp.lt.s32.totalorder %s3004_s24, 3 }
   0xa   : > { %p3086_p6 = por %p183_p3, %p43_p0  ;;  %s3006_s30 = smov [#allocation5]  }
   0xb   : > { %s5908_s27 = scalar_select %p3081_p4, 1, 0 }
   0xc   : > { %s5909_s28 = scalar_select %p3086_p6, 1, 0 }
   0xd   : > { %p3091_p8 = pnand %p2547_p5, %p190_p7  ;;  %s205_s7 = sshll.u32 %s3006_s30, 4  ;;  %s206_s7 = int_to_ptr.vmem [resolvable:$true] %s205_s7 }
   0xe   : > { %s3105_s9 = sadd.s32 1, %s3004_s24   ;;  %s30_s10 = sadd.s32 1, %s3000_s23 }
   0xf   : > { %s5910_s29 = scalar_select %p3091_p8, 1, 0 }
  0x10   : > { %p2584_p9 = pneg %p3091_p8  ;;  %s27_s11 = ssub.s32 %s3004_s24, %s3105_s9 }
  0x11   : > { %s2893_s12 = scalar_lea.vmem %s206_s7, 256  ;;  %p2901_p5 = scmp.lt.s32.totalorder %s206_s7, %s206_s7 }
  0x12   : > { %p3100_p11 = pnand %p2584_p9, %p5896_p1  ;;  %p2894_p13 = scmp.ne.s32.totalorder %s206_s7, %s2893_s12 }
  0x13   : > { %p2902_p7 = scmp.lt.s32.totalorder %s2893_s12, %s2893_s12 }
  0x14   : > { %p2884_p12 = pneg %p3100_p11 }
  0x15   : > { %p2903_p10 = por %p2902_p7, %p2901_p5 }
  0x16   : > { %p2896_p0 = pnand %p2894_p13, %p2884_p12 }
  0x18   : > { %p2897_p3 = pneg %p2896_p0 }
  0x1a   : > { %p2904_p2 = pnand %p2903_p10, %p2897_p3 }
  0x1c   : > { %2907 = shalt.err (!%p2904_p2)
}
  0x1d   : > { %s3007_s13 = smov 64   ;;  %s3008_s14 = smov 4  }
  0x1e   : > { %2587 = dma.hbm_to_vmem [thread:$0]  (!%p3100_p11), %s5892_s3, 256, %s206_s7, [#allocation6], %s3007_s13, %s3007_s13, %s3008_s14  }
  0x1f   : > { %p28_p9 = scmp.eq.s32.totalorder %s27_s11, 0  ;;  %p37_p12 = scmp.ne.s32.totalorder %s3000_s23, %s2996_s22 }
  0x20   : > { %p38_p10 = scmp.eq.s32.totalorder %s3004_s24, 0  ;;  %p2597_p2 = scmp.lt.s32.totalorder %s3004_s24, 2 }
  0x21   : > { %s3122_s17 = scalar_select %p28_p9, %s3000_s23, %s30_s10  }
  0x22   : > { %p39_p13 = por %p38_p10, %p37_p12  ;;  %p5912_p0 = scmp.eq.s32.totalorder %s3072_s25, 1 }
  0x23   : > { %s225_s19 = sand.u32 1, %s3000_s23   ;;  %s2573_s20 = sshll.u32 %s3004_s24, 9 }
  0x24   : > { %p3126_p3 = por %p5912_p0, %p37_p12  ;;  %s2550_s26 = sshll.u32 %s225_s19, 5 }
  0x25   : > { %s3135_s12 = scalar_lea.hbm %s5889_s0, %s2573_s20  ;;  %s229_s7 = scalar_lea.vmem [#allocation2], %s2550_s26 }
  0x26   : > { %s5913_s18 = scalar_select %p3126_p3, 1, 0 }
  0x27   : > { %s236_s10 = sshll.u32 %s229_s7, 4  ;;  %p3137_p11 = pnand %p2597_p2, %p39_p13  ;;  %s3141_s10 = int_to_ptr.vmem [resolvable:$true] %s236_s10 }
  0x28   : > { %s3143_s13 = scalar_lea.sflag [#allocation3], %s225_s19  ;;  %s2908_s14 = scalar_lea.hbm %s3135_s12, 512 }
  0x29   : > { %p2909_p5 = scmp.ne.s32.totalorder %s3135_s12, %s2908_s14  ;;  %p2910_p7 = pneg %p3137_p11 }
  0x2a   : > { %s2913_s20 = scalar_lea.hbm %s5889_s0, 1024  ;;  %p2914_p10 = scmp.lt.s32.totalorder %s3135_s12, %s5889_s0 }
  0x2b   : > { %p2911_p9 = pnand %p2910_p7, %p2909_p5  ;;  %p2915_p2 = scmp.lt.s32.totalorder %s2913_s20, %s2908_s14 }
  0x2d   : > { %p2912_p12 = pneg %p2911_p9  ;;  %p2916_p13 = por %p2915_p2, %p2914_p10 }
  0x2f   : > { %p2917_p0 = pnand %p2916_p13, %p2912_p12 }
  0x31   : > { %2920 = shalt.err (!%p2917_p0)
}
  0x32   : > { %s2921_s19 = scalar_lea.vmem %s3141_s10, 512  ;;  %s3009_s8 = smov [#allocation2]  }
  0x33   : > { %p2922_p1 = scmp.ne.s32.totalorder %s3141_s10, %s2921_s19  ;;  %s2926_s7 = sshll.u32 %s3009_s8, 4  ;;  %s2927_s7 = int_to_ptr.vmem [resolvable:$false] %s2926_s7 }
  0x34   : > { %s2928_s15 = scalar_lea.vmem %s2927_s7, 1024  ;;  %p2929_p9 = scmp.lt.s32.totalorder %s3141_s10, %s2927_s7 }
  0x35   : > { %p2924_p6 = pnand %p2922_p1, %p2910_p7  ;;  %p2930_p3 = scmp.lt.s32.totalorder %s2928_s15, %s2921_s19 }
  0x37   : > { %p2925_p5 = pneg %p2924_p6  ;;  %p2931_p4 = por %p2930_p3, %p2929_p9 }
  0x39   : > { %p2932_p8 = pnand %p2931_p4, %p2925_p5 }
  0x3b   : > { %2935 = shalt.err (!%p2932_p8)
}
  0x3c   : > { %s3010_s14 = smov 128   ;;  %s3011_s16 = smov 8  }
  0x3d   : > { %2591 = dma.hbm_to_vmem [thread:$0]  (!%p3137_p11), %s3135_s12, 512, %s3141_s10, %s3143_s13, %s3010_s14, %s3010_s14, %s3011_s16  }
  0x3e   : > { %p5915_p1 = scmp.ne.s32.totalorder %s5910_s29, 0 }
  0x40   : > { %256 = sbr.rel (%p5915_p1) target bundleno = 1128 (0x468), region = 44 }
  0x45   : > { %s3167_s20 = sand.u32 1, %s2996_s22   ;;  %p5916_p4 = scmp.ne.s32.totalorder %s5908_s27, 0 }
  0x46   : > { %s2554_s26 = sshll.u32 %s3167_s20, 5  ;;  %s259_s30 = scalar_lea.sflag [#allocation3], %s3167_s20 }
  0x47   : > { %s262_s19 = scalar_lea.vmem [#allocation2], %s2554_s26 }
  0x48   : > { %2979 = dma.done.wait (%p5916_p4), %s259_s30, 512  }
  0x49   : > { %2981 = vsyncadd (%p5916_p4), %s259_s30, 4294966784  ;;  %p5917_p6 = scmp.eq.s32.totalorder %s3072_s25, 0 }
  0x4b   : > { %2983 = dma.done.wait (%p5917_p6), [#allocation6], 256   ;;  %p5918_p8 = pmov %p5917_p6 }
  0x4c   : > { %v5901_v0 = vmov 0   ;;  %v2866_v1 = vld [vmem:[%s262_s19 + $0x14] ss:$8 sps:$4 sm:$0xff]   ;;  %v2868_v2 = vld [vmem:[%s262_s19 + $0x10] ss:$8 sps:$4 sm:$0xff]   ;;  %v311_v5 = vld [vmem:[%s5893_s4] sm:$0xff]  ;;  %v515_v35 = vlaneseq }
  0x4d   : > { %2985 = vsyncadd (%p5918_p8), [#allocation6], 4294967040  ;;  %373 = vmatprep.mubr.bf16.mxu1 %v5901_v0  ;;  %2640 = vset.pattern.permute.xlu0 %v5901_v0  ;;  %v2869_v3 = vld [vmem:[%s262_s19 + $0x4] ss:$8 sps:$4 sm:$0xff]   ;;  %v2871_v4 = vld [vmem:[%s262_s19] ss:$8 sps:$4 sm:$0xff]  }
  0x4e   : > { %353 = vmatprep.subr.bf16.mxu1 %v2866_v1  ;;  %314 = vperm.xlu0 %2640, %v311_v5   ;;  %v310_v6 = vld [vmem:[%s5891_s2] sm:$0xf]  ;;  %vm5900_vm0 = vcmask 261120   ;;  %p300_p3 = scmp.lt.s32.totalorder %s3072_s25, 1  ;;  %v3199_v40 = vshrl.u32 %v515_v35, 7  ;;  %s2556_s10 = sshll.u32 %s3167_s20, 6 }
  0x4f   : > { %354 = vmatpush1.bf16.msra.mxu1 %v2868_v2  ;;  %v2872_v50 = vld [vmem:[#allocation5] sm:$0xff]   ;;  %s2575_s8 = sshll.u32 %s3072_s25, 10  ;;  %s2438_s16 = scalar_lea.sflag [#allocation4], %s3167_s20 }
  0x50   : > { %355 = vmatprep.subr.bf16.mxu1 %v2869_v3  ;;  %s301_s11 = scalar_select %p300_p3, %s3072_s25, 1  ;;  %v3205_v45 = vsub.s32 0, %v3199_v40  ;;  %v3208_v46 = vsub.s32 1, %v3199_v40  ;;  %v3211_v47 = vsub.s32 2, %v3199_v40  ;;  %v3214_v51 = vsub.s32 3, %v3199_v40 }
  0x51   : > { %v3217_v52 = vsub.s32 4, %v3199_v40  ;;  %v3220_v53 = vadd.s32 128, %v3199_v40  ;;  %v3227_v55 = vsub.s32 5, %v3199_v40  ;;  %v3237_v58 = vsub.s32 6, %v3199_v40  ;;  %s5846_s14 = scalar_lea.hbm %s5895_s6, %s2575_s8  ;;  %p6053_p7 = scmp.ne.s32.totalorder %s5913_s18, 0 }
  0x52   : > { %s2574_s13 = sshll.u32 %s301_s11, 4  ;;  %v3240_v59 = vsub.s32 7, %v3199_v40  ;;  %s299_s11 = scalar_lea.vmem [#allocation7], %s2556_s10 }
  0x53   : > { %356 = vmatpush1.bf16.msra.mxu1 %v2871_v4  ;;  %s304_s15 = scalar_lea.vmem %s5890_s1, %s2574_s13  ;;  %s2451_s13 = sshll.u32 %s299_s11, 4  ;;  %s5841_s13 = int_to_ptr.vmem [resolvable:$true] %s2451_s13 }
  0x54   : > { %438 = vmatprep.subr.bf16.mxu1 %v2866_v1  ;;  %v513_v49 = vld [vmem:[%s304_s15] sm:$0xff]  ;;  %v514_v60 = vld [vmem:[%s304_s15 + $0x8] sm:$0xff]  ;;  %s2936_s26 = scalar_lea.vmem %s5841_s13, 1024  ;;  %s3013_s25 = smov [#allocation7]  }
  0x55   : > { %v3223_v54 = vrot.slane %v513_v49, %v3205_v45  ;;  %v3230_v56 = vrot.slane %v513_v49, %v3208_v46  ;;  %v3233_v57 = vrot.slane %v513_v49, %v3211_v47  ;;  %v3247_v61 = vrot.slane %v513_v49, %v3214_v51  ;;  %p2937_p11 = scmp.ne.s32.totalorder %s5841_s13, %s2936_s26  ;;  %s2940_s30 = sshll.u32 %s3013_s25, 4  ;;  %s2941_s30 = int_to_ptr.vmem [resolvable:$false] %s2940_s30 }
  0x56   : > { %2563 = vmatmul.mubr.msk.bf16.vlgmr.msra.gmra.mxu1 %vm5900_vm0, %v310_v6  ;;  %v3250_v62 = vrot.slane %v513_v49, %v3217_v52  ;;  %v3259_v63 = vrot.slane %v513_v49, %v3227_v55  ;;  %v3264_v1 = vrot.slane %v513_v49, %v3237_v58  ;;  %v3276_v5 = vrot.slane %v514_v60, %v3211_v47  ;;  %s2942_s19 = scalar_lea.vmem %s2941_s30, 2048  ;;  %p2943_p2 = scmp.lt.s32.totalorder %s5841_s13, %s2941_s30 }
  0x57   : > { %439 = vmatpush1.bf16.msra.mxu1 %v2868_v2  ;;  %458 = vmatprep.mubr.bf16.mxu1 %v5901_v0  ;;  %vm556_vm1 = vcmp.eq.s32.totalorder %v3199_v40, %v3223_v54  ;;  %vm588_vm2 = vcmp.eq.s32.totalorder %v3220_v53, %v3223_v54  ;;  %vm764_vm3 = vcmp.eq.s32.totalorder %v3199_v40, %v3230_v56  ;;  %p2938_p12 = pnand %p2937_p11, %p6053_p7  ;;  %p2944_p13 = scmp.lt.s32.totalorder %s2942_s19, %s2936_s26 }
  0x58   : > { %440 = vmatprep.subr.bf16.mxu1 %v2869_v3  ;;  %vm796_vm4 = vcmp.eq.s32.totalorder %v3220_v53, %v3230_v56  ;;  %vm972_vm5 = vcmp.eq.s32.totalorder %v3199_v40, %v3233_v57  ;;  %vm1004_vm6 = vcmp.eq.s32.totalorder %v3220_v53, %v3233_v57  ;;  %v3267_v2 = vrot.slane %v513_v49, %v3240_v59 }
  0x59   : > { %v3270_v3 = vrot.slane %v514_v60, %v3205_v45  ;;  %v3279_v6 = vrot.slane %v514_v60, %v3214_v51  ;;  %vm1180_vm7 = vcmp.eq.s32.totalorder %v3199_v40, %v3247_v61  ;;  %vm1212_vm8 = vcmp.eq.s32.totalorder %v3220_v53, %v3247_v61  ;;  %p2939_p10 = pneg %p2938_p12  ;;  %p2945_p0 = por %p2944_p13, %p2943_p2 }
  0x5a   : > { %vm1388_vm9 = vcmp.eq.s32.totalorder %v3199_v40, %v3250_v62  ;;  %vm1420_vm10 = vcmp.eq.s32.totalorder %v3220_v53, %v3250_v62  ;;  %vm1596_vm11 = vcmp.eq.s32.totalorder %v3199_v40, %v3259_v63  ;;  %vm1628_vm12 = vcmp.eq.s32.totalorder %v3220_v53, %v3259_v63 }
  0x5b   : > { %441 = vmatpush1.bf16.msra.mxu1 %v2871_v4  ;;  %v3273_v4 = vrot.slane %v514_v60, %v3208_v46  ;;  %vm557_vm14 = vcmp.eq.s32.totalorder %v3199_v40, %v3270_v3  ;;  %vm1005_vm15 = vcmp.eq.s32.totalorder %v3220_v53, %v3276_v5  ;;  %p2946_p5 = pnand %p2945_p0, %p2939_p10 }
  0x5e   : > { %2566 = vmatmul.mubr.msk.bf16.vlgmr.msra.gmra.mxu1 %vm5900_vm0, %v2872_v50 }
  0x5f   : > { %468 = vmatprep.mubr.bf16.mxu1 %v5901_v0 }
  0xc9   : > { %v315_v7 = vpop.permute.xlu0 %314 }
 0x116   : > { %v375_v8 = vpop.f32.mrf.mxu1 }
 0x117   : > { %v376_v9 = vadd.f32 %v375_v8, %v315_v7  ;;  %v3289_v8 = vrot.slane %v514_v60, %v3227_v55 }
 0x118   : > { %v377_v10 = vpop.f32.mrf.mxu1 }
 0x119   : > { %v479_v11 = vrot.slane %v376_v9, 4  ;;  %v378_v12 = vadd.f32 %v377_v10, %v315_v7  ;;  %v3282_v7 = vrot.slane %v514_v60, %v3217_v52  ;;  %v3295_v10 = vrot.slane %v514_v60, %v3240_v59 }
 0x11a   : > { %v379_v13 = vpop.f32.mrf.mxu1 }
 0x11b   : > { %v480_v14 = vmax.f32 %v376_v9, %v479_v11  ;;  %v485_v15 = vrot.slane %v378_v12, 4  ;;  %v3298_v11 = vadd.s32 8, %v3199_v40  ;;  %v3312_v13 = vadd.s32 16, %v3199_v40 }
 0x11c   : > { %v380_v16 = vpop.f32.mrf.mxu1  ;;  %vm1389_vm0 = vcmp.eq.s32.totalorder %v3199_v40, %v3282_v7  ;;  %vm1421_vm13 = vcmp.eq.s32.totalorder %v3220_v53, %v3282_v7 }
 0x11d   : > { %v481_v17 = vrot.slane %v480_v14, 2  ;;  %v486_v18 = vmax.f32 %v378_v12, %v485_v15  ;;  %v3318_v15 = vadd.s32 24, %v3199_v40 }
 0x11f   : > { %v482_v19 = vmax.f32 %v480_v14, %v481_v17  ;;  %v487_v20 = vrot.slane %v486_v18, 2  ;;  %v3315_v14 = vadd.s32 144, %v3199_v40  ;;  %v3325_v17 = vadd.s32 152, %v3199_v40 }
 0x121   : > { %v483_v21 = vrot.slane %v482_v19, 1  ;;  %v488_v22 = vmax.f32 %v486_v18, %v487_v20  ;;  %v3328_v18 = vadd.s32 32, %v3199_v40  ;;  %v3334_v20 = vadd.s32 40, %v3199_v40 }
 0x123   : > { %v484_v23 = vmax.f32 %v482_v19, %v483_v21  ;;  %v489_v24 = vrot.slane %v488_v22, 1  ;;  %v3331_v19 = vadd.s32 160, %v3199_v40 }
 0x125   : > { %v491_v25 = vsub.f32 %v376_v9, %v484_v23  ;;  %v490_v26 = vmax.f32 %v488_v22, %v489_v24  ;;  %v3292_v9 = vrot.slane %v514_v60, %v3237_v58  ;;  %v3346_v22 = vadd.s32 168, %v3199_v40 }
 0x126   : > { %v3349_v23 = vadd.s32 48, %v3199_v40  ;;  %v3352_v24 = vadd.s32 176, %v3199_v40 }
 0x127   : > { %v493_v27 = vmul.f32 1.442695, %v491_v25  ;;  %v492_v28 = vsub.f32 %v378_v12, %v490_v26  ;;  %v3309_v12 = vadd.s32 136, %v3199_v40  ;;  %v3359_v26 = vadd.s32 56, %v3199_v40 }
 0x128   : > { %5919 = vst [vmem:[#allocation11_spill] sm:$0xff] %v3349_v23  ;;  %5920 = vst [vmem:[#allocation12_spill] sm:$0xff] %v3352_v24 }
 0x129   : > { %2874 = vpow2.f32 %v493_v27  ;;  %v495_v29 = vmul.f32 1.442695, %v492_v28  ;;  %5921 = vst [vmem:[#allocation13_spill] sm:$0xff] %v3359_v26  ;;  %v3362_v27 = vadd.s32 184, %v3199_v40  ;;  %v3365_v28 = vadd.s32 64, %v3199_v40 }
 0x12b   : > { %2876 = vpow2.f32 %v495_v29  ;;  %5922 = vst [vmem:[#allocation14_spill] sm:$0xff] %v3362_v27  ;;  %5923 = vst [vmem:[#allocation15_spill] sm:$0xff] %v3365_v28  ;;  %v3368_v29 = vadd.s32 192, %v3199_v40 }
 0x12d   : > { %5924 = vst [vmem:[#allocation16_spill] sm:$0xff] %v3368_v29 }
 0x136   : > { %v3190_v30 = vpop.eup %2874 }
 0x137   : > { %v497_v31 = vrot.slane %v3190_v30, 4 }
 0x138   : > { %v3193_v32 = vpop.eup %2876 }
 0x139   : > { %v498_v33 = vadd.f32 %v3190_v30, %v497_v31  ;;  %v503_v34 = vrot.slane %v3193_v32, 4 }
 0x13b   : > { %v499_v36 = vrot.slane %v498_v33, 2  ;;  %v504_v37 = vadd.f32 %v3193_v32, %v503_v34 }
 0x13d   : > { %v500_v38 = vadd.f32 %v499_v36, %v498_v33  ;;  %v505_v39 = vrot.slane %v504_v37, 2 }
 0x13f   : > { %v501_v41 = vrot.slane %v500_v38, 1  ;;  %v506_v42 = vadd.f32 %v505_v39, %v504_v37 }
 0x141   : > { %v502_v43 = vadd.f32 %v501_v41, %v500_v38  ;;  %v507_v44 = vrot.slane %v506_v42, 1 }
 0x143   : > { %2878 = vrcp.f32 %v502_v43  ;;  %v508_v48 = vadd.f32 %v507_v44, %v506_v42 }
 0x145   : > { %2880 = vrcp.f32 %v508_v48 }
 0x150   : > { %v2879_v16 = vpop.eup %2878 }
 0x151   : > { %v510_v21 = vmul.f32 %v2879_v16, %v3190_v30 }
 0x152   : > { %v2881_v25 = vpop.eup %2880 }
 0x153   : > { %v3371_v30 = vrot.slane %v510_v21, %v3205_v45  ;;  %v3374_v31 = vrot.slane %v510_v21, %v3208_v46  ;;  %v3377_v33 = vrot.slane %v510_v21, %v3211_v47  ;;  %v3380_v34 = vrot.slane %v510_v21, %v3214_v51 }
 0x154   : > { %v3387_v35 = vrot.slane %v510_v21, %v3217_v52  ;;  %v3390_v36 = vrot.slane %v510_v21, %v3227_v55  ;;  %v3393_v37 = vrot.slane %v510_v21, %v3237_v58  ;;  %v3396_v38 = vrot.slane %v510_v21, %v3240_v59 }
 0x155   : > { %v512_v39 = vmul.f32 %v2881_v25, %v3193_v32  ;;  %v628_v41 = vsel %vm556_vm1, %v3371_v30, 0.0  ;;  %v660_v42 = vsel %vm588_vm2, %v3371_v30, 0.0  ;;  %v836_v43 = vsel %vm764_vm3, %v3374_v31, 0.0 }
 0x156   : > { %v868_v32 = vsel %vm796_vm4, %v3374_v31, 0.0  ;;  %v900_v44 = vadd.f32 %v836_v43, %v628_v41  ;;  %v1044_v48 = vsel %vm972_vm5, %v3377_v33, 0.0  ;;  %v1076_v49 = vsel %vm1004_vm6, %v3377_v33, 0.0 }
 0x157   : > { %vm1597_vm1 = vcmp.eq.s32.totalorder %v3199_v40, %v3289_v8  ;;  %vm1629_vm2 = vcmp.eq.s32.totalorder %v3220_v53, %v3289_v8  ;;  %v3436_v50 = vrot.slane %v512_v39, %v3205_v45  ;;  %v3439_v60 = vrot.slane %v512_v39, %v3208_v46 }
 0x158   : > { %v3442_v16 = vrot.slane %v512_v39, %v3211_v47  ;;  %v3445_v21 = vrot.slane %v512_v39, %v3214_v51  ;;  %vm1805_vm3 = vcmp.eq.s32.totalorder %v3199_v40, %v3292_v9  ;;  %v3452_v25 = vrot.slane %v512_v39, %v3217_v52 }
 0x159   : > { %v3455_v45 = vrot.slane %v512_v39, %v3227_v55  ;;  %v3458_v46 = vrot.slane %v512_v39, %v3237_v58  ;;  %v3461_v47 = vrot.slane %v512_v39, %v3240_v59  ;;  %vm2045_vm6 = vcmp.eq.s32.totalorder %v3220_v53, %v3295_v10 }
 0x15a   : > { %v932_v51 = vadd.f32 %v868_v32, %v660_v42  ;;  %v1108_v41 = vadd.f32 %v1044_v48, %v900_v44  ;;  %v1252_v52 = vsel %vm1180_vm7, %v3380_v34, 0.0  ;;  %v1284_v55 = vsel %vm1212_vm8, %v3380_v34, 0.0 }
 0x15b   : > { %vm558_vm4 = vcmp.eq.s32.totalorder %v3298_v11, %v3223_v54  ;;  %vm590_vm5 = vcmp.eq.s32.totalorder %v3309_v12, %v3223_v54  ;;  %v1460_v58 = vsel %vm1388_vm9, %v3387_v35, 0.0  ;;  %v1492_v59 = vsel %vm1420_vm10, %v3387_v35, 0.0 }
 0x15c   : > { %v1668_v39 = vsel %vm1596_vm11, %v3390_v36, 0.0  ;;  %v1700_v42 = vsel %vm1628_vm12, %v3390_v36, 0.0  ;;  %vm766_vm7 = vcmp.eq.s32.totalorder %v3298_v11, %v3230_v56  ;;  %v1140_v43 = vadd.f32 %v1076_v49, %v932_v51 }
 0x15d   : > { %v1316_v32 = vadd.f32 %v1252_v52, %v1108_v41  ;;  %vm5925_vm10 = vcmp.eq.s32.totalorder %v3199_v40, %v3264_v1  ;;  %vm5926_vm11 = vcmp.eq.s32.totalorder %v3220_v53, %v3264_v1  ;;  %vm5927_vm12 = vcmp.eq.s32.totalorder %v3199_v40, %v3267_v2 }
 0x15e   : > { %v1876_v44 = vsel %vm5925_vm10, %v3393_v37, 0.0  ;;  %v1908_v48 = vsel %vm5926_vm11, %v3393_v37, 0.0  ;;  %v2084_v0 = vsel %vm5927_vm12, %v3396_v38, 0.0  ;;  %vm5928_vm9 = vcmp.eq.s32.totalorder %v3220_v53, %v3267_v2 }
 0x15f   : > { %v2116_v49 = vsel %vm5928_vm9, %v3396_v38, 0.0  ;;  %v629_v51 = vsel %vm557_vm14, %v3436_v50, 0.0  ;;  %vm5929_vm10 = vcmp.eq.s32.totalorder %v3220_v53, %v3270_v3  ;;  %vm1006_vm11 = vcmp.eq.s32.totalorder %v3309_v12, %v3233_v57 }
 0x160   : > { %v661_v41 = vsel %vm5929_vm10, %v3436_v50, 0.0  ;;  %v1348_v52 = vadd.f32 %v1284_v55, %v1140_v43  ;;  %v1524_v29 = vadd.f32 %v1460_v58, %v1316_v32  ;;  %vm5930_vm14 = vcmp.eq.s32.totalorder %v3199_v40, %v3273_v4 }
 0x161   : > { %v837_v28 = vsel %vm5930_vm14, %v3439_v60, 0.0  ;;  %vm5931_vm9 = vcmp.eq.s32.totalorder %v3220_v53, %v3273_v4  ;;  %vm5932_vm10 = vcmp.eq.s32.totalorder %v3199_v40, %v3276_v5  ;;  %v1077_v55 = vsel %vm1005_vm15, %v3442_v16, 0.0 }
 0x162   : > { %v869_v27 = vsel %vm5931_vm9, %v3439_v60, 0.0  ;;  %v901_v26 = vadd.f32 %v837_v28, %v629_v51  ;;  %v1045_v23 = vsel %vm5932_vm10, %v3442_v16, 0.0  ;;  %vm1390_vm14 = vcmp.eq.s32.totalorder %v3298_v11, %v3250_v62 }
 0x163   : > { %v933_v24 = vadd.f32 %v869_v27, %v661_v41  ;;  %vm1422_vm8 = vcmp.eq.s32.totalorder %v3309_v12, %v3250_v62  ;;  %v1556_v27 = vadd.f32 %v1492_v59, %v1348_v52  ;;  %v1732_v28 = vadd.f32 %v1668_v39, %v1524_v29 }
 0x164   : > { %vm5933_vm10 = vcmp.eq.s32.totalorder %v3199_v40, %v3279_v6  ;;  %vm5934_vm15 = vcmp.eq.s32.totalorder %v3220_v53, %v3279_v6  ;;  %v1109_v32 = vadd.f32 %v1045_v23, %v901_v26  ;;  %v1461_v41 = vsel %vm1389_vm0, %v3452_v25, 0.0 }
 0x165   : > { %v1253_v58 = vsel %vm5933_vm10, %v3445_v21, 0.0  ;;  %v1285_v43 = vsel %vm5934_vm15, %v3445_v21, 0.0  ;;  %v1141_v51 = vadd.f32 %v1077_v55, %v933_v24  ;;  %v1493_v29 = vsel %vm1421_vm13, %v3452_v25, 0.0 }
 0x166   : > { %vm1806_vm10 = vcmp.eq.s32.totalorder %v3298_v11, %v3264_v1  ;;  %vm1838_vm12 = vcmp.eq.s32.totalorder %v3309_v12, %v3264_v1  ;;  %vm2014_vm15 = vcmp.eq.s32.totalorder %v3298_v11, %v3267_v2  ;;  %v1764_v23 = vadd.f32 %v1700_v42, %v1556_v27 }
 0x167   : > { %v1940_v24 = vadd.f32 %v1876_v44, %v1732_v28  ;;  %v1669_v26 = vsel %vm1597_vm1, %v3455_v45, 0.0  ;;  %v1701_v59 = vsel %vm1629_vm2, %v3455_v45, 0.0  ;;  %v1317_v39 = vadd.f32 %v1253_v58, %v1109_v32 }
 0x168   : > { %v1349_v52 = vadd.f32 %v1285_v43, %v1141_v51  ;;  %v1877_v42 = vsel %vm1805_vm3, %v3458_v46, 0.0  ;;  %vm5935_vm13 = vcmp.eq.s32.totalorder %v3220_v53, %v3292_v9  ;;  %vm591_vm1 = vcmp.eq.s32.totalorder %v3309_v12, %v3270_v3 }
 0x169   : > { %v1909_v44 = vsel %vm5935_vm13, %v3458_v46, 0.0  ;;  %vm767_vm2 = vcmp.eq.s32.totalorder %v3298_v11, %v3273_v4  ;;  %vm799_vm0 = vcmp.eq.s32.totalorder %v3309_v12, %v3273_v4  ;;  %v1972_v55 = vadd.f32 %v1908_v48, %v1764_v23 }
 0x16a   : > { %v2148_v27 = vadd.f32 %v2084_v0, %v1940_v24  ;;  %vm5936_vm3 = vcmp.eq.s32.totalorder %v3199_v40, %v3295_v10  ;;  %v2117_v58 = vsel %vm2045_vm6, %v3461_v47, 0.0  ;;  %v1525_v43 = vadd.f32 %v1461_v41, %v1317_v39 }
 0x16b   : > { %v2085_v28 = vsel %vm5936_vm3, %v3461_v47, 0.0  ;;  %v1557_v32 = vadd.f32 %v1493_v29, %v1349_v52  ;;  %v630_v51 = vsel %vm558_vm4, %v3371_v30, 0.0  ;;  %v662_v0 = vsel %vm590_vm5, %v3371_v30, 0.0 }
 0x16c   : > { %vm1007_vm13 = vcmp.eq.s32.totalorder %v3309_v12, %v3276_v5  ;;  %vm1183_vm3 = vcmp.eq.s32.totalorder %v3298_v11, %v3279_v6  ;;  %v2180_v53 = vadd.f32 %v2116_v49, %v1972_v55  ;;  %v838_v48 = vsel %vm766_vm7, %v3374_v31, 0.0 }
 0x16d   : > { %vm5937_vm4 = vcmp.eq.s32.totalorder %v3309_v12, %v3230_v56  ;;  %vm5938_vm5 = vcmp.eq.s32.totalorder %v3298_v11, %v3233_v57  ;;  %v1733_v23 = vadd.f32 %v1669_v26, %v1525_v43  ;;  %v1765_v24 = vadd.f32 %v1701_v59, %v1557_v32 }
 0x16e   : > { %v870_v41 = vsel %vm5937_vm4, %v3374_v31, 0.0  ;;  %v1046_v29 = vsel %vm5938_vm5, %v3377_v33, 0.0  ;;  %v902_v39 = vadd.f32 %v838_v48, %v630_v51  ;;  %vm1423_vm9 = vcmp.eq.s32.totalorder %v3309_v12, %v3282_v7 }
 0x16f   : > { %v934_v52 = vadd.f32 %v870_v41, %v662_v0  ;;  %v2641_v49 = vpack.i.bf16 %v2148_v27, %v2180_v53  ;;  %v1078_v26 = vsel %vm1006_vm11, %v3377_v33, 0.0  ;;  %vm5939_vm5 = vcmp.eq.s32.totalorder %v3298_v11, %v3247_v61 }
 0x170   : > { %v1254_v59 = vsel %vm5939_vm5, %v3380_v34, 0.0  ;;  %vm5940_vm7 = vcmp.eq.s32.totalorder %v3309_v12, %v3247_v61  ;;  %v1941_v43 = vadd.f32 %v1877_v42, %v1733_v23  ;;  %v1973_v32 = vadd.f32 %v1909_v44, %v1765_v24 }
 0x171   : > { %v1286_v55 = vsel %vm5940_vm7, %v3380_v34, 0.0  ;;  %v1110_v51 = vadd.f32 %v1046_v29, %v902_v39  ;;  %v1142_v0 = vadd.f32 %v1078_v26, %v934_v52  ;;  %vm1839_vm4 = vcmp.eq.s32.totalorder %v3309_v12, %v3292_v9  ;;  %2642 = vxpose.xlu0.b32.start [1/16] %v2641_v49, 128 }
 0x172   : > { %v1462_v42 = vsel %vm1390_vm14, %v3387_v35, 0.0  ;;  %v1494_v44 = vsel %vm1422_vm8, %v3387_v35, 0.0  ;;  %vm5941_vm7 = vcmp.eq.s32.totalorder %v3298_v11, %v3259_v63  ;;  %vm5942_vm5 = vcmp.eq.s32.totalorder %v3309_v12, %v3259_v63 }
 0x173   : > { %v1670_v27 = vsel %vm5941_vm7, %v3390_v36, 0.0  ;;  %v1702_v53 = vsel %vm5942_vm5, %v3390_v36, 0.0  ;;  %vm592_vm6 = vcmp.eq.s32.totalorder %v3315_v14, %v3223_v54  ;;  %v2149_v48 = vadd.f32 %v2085_v28, %v1941_v43 }
 0x174   : > { %v2181_v41 = vadd.f32 %v2117_v58, %v1973_v32  ;;  %v1318_v29 = vadd.f32 %v1254_v59, %v1110_v51  ;;  %v1350_v23 = vadd.f32 %v1286_v55, %v1142_v0  ;;  %vm768_vm8 = vcmp.eq.s32.totalorder %v3312_v13, %v3230_v56 }
 0x175   : > { %vm800_vm14 = vcmp.eq.s32.totalorder %v3315_v14, %v3230_v56  ;;  %vm976_vm7 = vcmp.eq.s32.totalorder %v3312_v13, %v3233_v57  ;;  %v1878_v28 = vsel %vm1806_vm10, %v3393_v37, 0.0  ;;  %v1910_v58 = vsel %vm1838_vm12, %v3393_v37, 0.0 }
 0x176   : > { %v2086_v24 = vsel %vm2014_vm15, %v3396_v38, 0.0  ;;  %vm5943_vm5 = vcmp.eq.s32.totalorder %v3309_v12, %v3267_v2  ;;  %v2753_v52 = vpack.i.bf16 %v2149_v48, %v2181_v41  ;;  %v1526_v49 = vadd.f32 %v1462_v42, %v1318_v29 }
 0x177   : > { %v2118_v39 = vsel %vm5943_vm5, %v3396_v38, 0.0  ;;  %v1558_v26 = vadd.f32 %v1494_v44, %v1350_v23  ;;  %vm5944_vm10 = vcmp.eq.s32.totalorder %v3298_v11, %v3270_v3  ;;  %vm1184_vm12 = vcmp.eq.s32.totalorder %v3312_v13, %v3247_v61 }
 0x178   : > { %v631_v59 = vsel %vm5944_vm10, %v3436_v50, 0.0  ;;  %vm1216_vm11 = vcmp.eq.s32.totalorder %v3315_v14, %v3247_v61  ;;  %vm1392_vm15 = vcmp.eq.s32.totalorder %v3312_v13, %v3250_v62  ;;  %v663_v55 = vsel %vm591_vm1, %v3436_v50, 0.0  ;;  %2754 = vxpose.xlu1.b32.start [1/16] %v2753_v52, 128 }
 0x179   : > { %v839_v43 = vsel %vm767_vm2, %v3439_v60, 0.0  ;;  %v871_v32 = vsel %vm799_vm0, %v3439_v60, 0.0  ;;  %vm5945_vm10 = vcmp.eq.s32.totalorder %v3298_v11, %v3276_v5  ;;  %v1734_v0 = vadd.f32 %v1670_v27, %v1526_v49 }
 0x17a   : > { %v1047_v51 = vsel %vm5945_vm10, %v3442_v16, 0.0  ;;  %v1766_v42 = vadd.f32 %v1702_v53, %v1558_v26  ;;  %v903_v44 = vadd.f32 %v839_v43, %v631_v59  ;;  %v935_v48 = vadd.f32 %v871_v32, %v663_v55 }
 0x17b   : > { %vm1600_vm1 = vcmp.eq.s32.totalorder %v3312_v13, %v3259_v63  ;;  %vm1632_vm2 = vcmp.eq.s32.totalorder %v3315_v14, %v3259_v63  ;;  %v1079_v27 = vsel %vm1007_vm13, %v3442_v16, 0.0  ;;  %v1255_v53 = vsel %vm1183_vm3, %v3445_v21, 0.0 }
 0x17c   : > { %vm5946_vm10 = vcmp.eq.s32.totalorder %v3309_v12, %v3279_v6  ;;  %vm5947_vm5 = vcmp.eq.s32.totalorder %v3298_v11, %v3282_v7  ;;  %v1942_v23 = vadd.f32 %v1878_v28, %v1734_v0  ;;  %v1974_v52 = vadd.f32 %v1910_v58, %v1766_v42 }
 0x17d   : > { %v1287_v41 = vsel %vm5946_vm10, %v3445_v21, 0.0  ;;  %v1463_v29 = vsel %vm5947_vm5, %v3452_v25, 0.0  ;;  %v1111_v49 = vadd.f32 %v1047_v51, %v903_v44  ;;  %v1143_v26 = vadd.f32 %v1079_v27, %v935_v48 }
 0x17e   : > { %vm2016_vm13 = vcmp.eq.s32.totalorder %v3312_v13, %v3267_v2  ;;  %v1495_v28 = vsel %vm1423_vm9, %v3452_v25, 0.0  ;;  %vm5948_vm5 = vcmp.eq.s32.totalorder %v3298_v11, %v3289_v8  ;;  %vm5949_vm3 = vcmp.eq.s32.totalorder %v3309_v12, %v3289_v8 }
 0x17f   : > { %v1671_v58 = vsel %vm5948_vm5, %v3455_v45, 0.0  ;;  %v1703_v59 = vsel %vm5949_vm3, %v3455_v45, 0.0  ;;  %vm5950_vm0 = vcmp.eq.s32.totalorder %v3298_v11, %v3292_v9  ;;  %vm769_vm10 = vcmp.eq.s32.totalorder %v3312_v13, %v3273_v4 }
 0x180   : > { %v1879_v55 = vsel %vm5950_vm0, %v3458_v46, 0.0  ;;  %v2150_v43 = vadd.f32 %v2086_v24, %v1942_v23  ;;  %v2182_v32 = vadd.f32 %v2118_v39, %v1974_v52  ;;  %v1319_v51 = vadd.f32 %v1255_v53, %v1111_v49 }
 0x181   : > { %v1351_v0 = vadd.f32 %v1287_v41, %v1143_v26  ;;  %v1911_v42 = vsel %vm1839_vm4, %v3458_v46, 0.0  ;;  %vm5951_vm0 = vcmp.eq.s32.totalorder %v3298_v11, %v3295_v10  ;;  %vm5952_vm9 = vcmp.eq.s32.totalorder %v3309_v12, %v3295_v10 }
 0x182   : > { %v2087_v24 = vsel %vm5951_vm0, %v3461_v47, 0.0  ;;  %v2119_v39 = vsel %vm5952_vm9, %v3461_v47, 0.0  ;;  %vm5953_vm5 = vcmp.eq.s32.totalorder %v3312_v13, %v3223_v54  ;;  %vm1185_vm3 = vcmp.eq.s32.totalorder %v3312_v13, %v3279_v6 }
 0x183   : > { %v632_v44 = vsel %vm5953_vm5, %v3371_v30, 0.0  ;;  %v2643_v48 = vpack.i.bf16 %v2150_v43, %v2182_v32  ;;  %v1527_v27 = vadd.f32 %v1463_v29, %v1319_v51  ;;  %v1559_v53 = vadd.f32 %v1495_v28, %v1351_v0 }
 0x184   : > { %v664_v11 = vsel %vm592_vm6, %v3371_v30, 0.0  ;;  %vm1217_vm4 = vcmp.eq.s32.totalorder %v3315_v14, %v3279_v6  ;;  %vm1393_vm9 = vcmp.eq.s32.totalorder %v3312_v13, %v3282_v7  ;;  %vm1425_vm5 = vcmp.eq.s32.totalorder %v3315_v14, %v3282_v7 }
 0x185   : > { %v840_v12 = vsel %vm768_vm8, %v3374_v31, 0.0  ;;  %v872_v41 = vsel %vm800_vm14, %v3374_v31, 0.0  ;;  %v1048_v29 = vsel %vm976_vm7, %v3377_v33, 0.0  ;;  %vm5954_vm6 = vcmp.eq.s32.totalorder %v3315_v14, %v3233_v57  ;;  %2644 = vxpose.xlu0.b32.cont [2/16] %v2643_v48, 128 }
 0x186   : > { %v1080_v23 = vsel %vm5954_vm6, %v3377_v33, 0.0  ;;  %vm1601_vm0 = vcmp.eq.s32.totalorder %v3312_v13, %v3289_v8  ;;  %v1735_v52 = vadd.f32 %v1671_v58, %v1527_v27  ;;  %v1767_v49 = vadd.f32 %v1703_v59, %v1559_v53 }
 0x187   : > { %v904_v26 = vadd.f32 %v840_v12, %v632_v44  ;;  %v936_v28 = vadd.f32 %v872_v41, %v664_v11  ;;  %vm1633_vm8 = vcmp.eq.s32.totalorder %v3315_v14, %v3289_v8  ;;  %vm1809_vm14 = vcmp.eq.s32.totalorder %v3312_v13, %v3292_v9 }
 0x188   : > { %v1256_v43 = vsel %vm1184_vm12, %v3380_v34, 0.0  ;;  %v1288_v58 = vsel %vm1216_vm11, %v3380_v34, 0.0  ;;  %v1464_v59 = vsel %vm1392_vm15, %v3387_v35, 0.0  ;;  %vm5955_vm6 = vcmp.eq.s32.totalorder %v3315_v14, %v3250_v62 }
 0x189   : > { %v1496_v32 = vsel %vm5955_vm6, %v3387_v35, 0.0  ;;  %vm2017_vm7 = vcmp.eq.s32.totalorder %v3312_v13, %v3295_v10  ;;  %v1943_v51 = vadd.f32 %v1879_v55, %v1735_v52  ;;  %v1975_v0 = vadd.f32 %v1911_v42, %v1767_v49 }
 0x18a   : > { %v1112_v44 = vadd.f32 %v1048_v29, %v904_v26  ;;  %v1144_v48 = vadd.f32 %v1080_v23, %v936_v28  ;;  %vm2049_vm11 = vcmp.eq.s32.totalorder %v3315_v14, %v3295_v10  ;;  %v1672_v27 = vsel %vm1600_vm1, %v3390_v36, 0.0 }
 0x18b   : > { %v1704_v55 = vsel %vm1632_vm2, %v3390_v36, 0.0  ;;  %vm5956_vm6 = vcmp.eq.s32.totalorder %v3312_v13, %v3264_v1  ;;  %vm5957_vm12 = vcmp.eq.s32.totalorder %v3315_v14, %v3264_v1  ;;  %v2151_v11 = vadd.f32 %v2087_v24, %v1943_v51 }
 0x18c   : > { %v1880_v42 = vsel %vm5956_vm6, %v3393_v37, 0.0  ;;  %v1912_v53 = vsel %vm5957_vm12, %v3393_v37, 0.0  ;;  %v2183_v12 = vadd.f32 %v2119_v39, %v1975_v0  ;;  %v1320_v41 = vadd.f32 %v1256_v43, %v1112_v44 }
 0x18d   : > { %v1352_v29 = vadd.f32 %v1288_v58, %v1144_v48  ;;  %v2088_v23 = vsel %vm2016_vm13, %v3396_v38, 0.0  ;;  %vm5958_vm12 = vcmp.eq.s32.totalorder %v3315_v14, %v3267_v2  ;;  %vm5959_vm6 = vcmp.eq.s32.totalorder %v3312_v13, %v3270_v3 }
 0x18e   : > { %v2120_v52 = vsel %vm5958_vm12, %v3396_v38, 0.0  ;;  %v633_v24 = vsel %vm5959_vm6, %v3436_v50, 0.0  ;;  %vm5960_vm1 = vcmp.eq.s32.totalorder %v3315_v14, %v3270_v3  ;;  %vm1010_vm2 = vcmp.eq.s32.totalorder %v3325_v17, %v3233_v57 }
 0x18f   : > { %v665_v39 = vsel %vm5960_vm1, %v3436_v50, 0.0  ;;  %vm1186_vm13 = vcmp.eq.s32.totalorder %v3318_v15, %v3247_v61  ;;  %v2755_v49 = vpack.i.bf16 %v2151_v11, %v2183_v12  ;;  %v1528_v26 = vadd.f32 %v1464_v59, %v1320_v41 }
 0x190   : > { %v1560_v28 = vadd.f32 %v1496_v32, %v1352_v29  ;;  %v841_v43 = vsel %vm769_vm10, %v3439_v60, 0.0  ;;  %vm5961_vm12 = vcmp.eq.s32.totalorder %v3315_v14, %v3273_v4  ;;  %vm5962_vm6 = vcmp.eq.s32.totalorder %v3312_v13, %v3276_v5 }
 0x191   : > { %v873_v58 = vsel %vm5961_vm12, %v3439_v60, 0.0  ;;  %v905_v51 = vadd.f32 %v841_v43, %v633_v24  ;;  %v1049_v59 = vsel %vm5962_vm6, %v3442_v16, 0.0  ;;  %vm5963_vm15 = vcmp.eq.s32.totalorder %v3315_v14, %v3276_v5  ;;  %2756 = vxpose.xlu1.b32.cont [2/16] %v2755_v49, 128 }
 0x192   : > { %v1081_v32 = vsel %vm5963_vm15, %v3442_v16, 0.0  ;;  %vm1426_vm10 = vcmp.eq.s32.totalorder %v3325_v17, %v3250_v62  ;;  %vm1602_vm1 = vcmp.eq.s32.totalorder %v3318_v15, %v3259_v63  ;;  %vm1634_vm12 = vcmp.eq.s32.totalorder %v3325_v17, %v3259_v63 }
 0x193   : > { %v1736_v0 = vadd.f32 %v1672_v27, %v1528_v26  ;;  %v1768_v44 = vadd.f32 %v1704_v55, %v1560_v28  ;;  %v937_v48 = vadd.f32 %v873_v58, %v665_v39  ;;  %v1257_v11 = vsel %vm1185_vm3, %v3445_v21, 0.0 }
 0x194   : > { %v1113_v12 = vadd.f32 %v1049_v59, %v905_v51  ;;  %v1289_v41 = vsel %vm1217_vm4, %v3445_v21, 0.0  ;;  %v1465_v27 = vsel %vm1393_vm9, %v3452_v25, 0.0  ;;  %v1497_v55 = vsel %vm1425_vm5, %v3452_v25, 0.0 }
 0x195   : > { %vm1842_vm3 = vcmp.eq.s32.totalorder %v3325_v17, %v3264_v1  ;;  %vm2018_vm6 = vcmp.eq.s32.totalorder %v3318_v15, %v3267_v2  ;;  %vm2050_vm15 = vcmp.eq.s32.totalorder %v3325_v17, %v3267_v2  ;;  %v1944_v29 = vadd.f32 %v1880_v42, %v1736_v0 }
 0x196   : > { %v1976_v24 = vadd.f32 %v1912_v53, %v1768_v44  ;;  %v1145_v39 = vadd.f32 %v1081_v32, %v937_v48  ;;  %v1673_v49 = vsel %vm1601_vm0, %v3455_v45, 0.0  ;;  %v1321_v26 = vadd.f32 %v1257_v11, %v1113_v12 }
 0x197   : > { %v1705_v28 = vsel %vm1633_vm8, %v3455_v45, 0.0  ;;  %v1881_v42 = vsel %vm1809_vm14, %v3458_v46, 0.0  ;;  %vm5964_vm5 = vcmp.eq.s32.totalorder %v3315_v14, %v3292_v9  ;;  %vm771_vm0 = vcmp.eq.s32.totalorder %v3318_v15, %v3273_v4 }
 0x198   : > { %v1913_v53 = vsel %vm5964_vm5, %v3458_v46, 0.0  ;;  %vm803_vm9 = vcmp.eq.s32.totalorder %v3325_v17, %v3273_v4  ;;  %v2152_v43 = vadd.f32 %v2088_v23, %v1944_v29  ;;  %v2184_v58 = vadd.f32 %v2120_v52, %v1976_v24 }
 0x199   : > { %v1353_v51 = vadd.f32 %v1289_v41, %v1145_v39  ;;  %v2089_v59 = vsel %vm2017_vm7, %v3461_v47, 0.0  ;;  %v1529_v32 = vadd.f32 %v1465_v27, %v1321_v26  ;;  %v2121_v0 = vsel %vm2049_vm11, %v3461_v47, 0.0 }
 0x19a   : > { %vm5965_vm8 = vcmp.eq.s32.totalorder %v3318_v15, %v3223_v54  ;;  %vm5966_vm14 = vcmp.eq.s32.totalorder %v3325_v17, %v3223_v54  ;;  %vm1011_vm5 = vcmp.eq.s32.totalorder %v3325_v17, %v3276_v5  ;;  %v2645_v13 = vpack.i.bf16 %v2152_v43, %v2184_v58 }
 0x19b   : > { %v634_v44 = vsel %vm5965_vm8, %v3371_v30, 0.0  ;;  %v666_v23 = vsel %vm5966_vm14, %v3371_v30, 0.0  ;;  %v1561_v14 = vadd.f32 %v1497_v55, %v1353_v51  ;;  %vm5967_vm8 = vcmp.eq.s32.totalorder %v3318_v15, %v3230_v56 }
 0x19c   : > { %v842_v52 = vsel %vm5967_vm8, %v3374_v31, 0.0  ;;  %vm5968_vm14 = vcmp.eq.s32.totalorder %v3325_v17, %v3230_v56  ;;  %v1737_v11 = vadd.f32 %v1673_v49, %v1529_v32  ;;  %vm5969_vm4 = vcmp.eq.s32.totalorder %v3318_v15, %v3233_v57  ;;  %2646 = vxpose.xlu0.b32.cont [3/16] %v2645_v13, 128 }
 0x19d   : > { %v874_v48 = vsel %vm5968_vm14, %v3374_v31, 0.0  ;;  %v906_v12 = vadd.f32 %v842_v52, %v634_v44  ;;  %v1050_v27 = vsel %vm5969_vm4, %v3377_v33, 0.0  ;;  %vm1427_vm11 = vcmp.eq.s32.totalorder %v3325_v17, %v3282_v7 }
 0x19e   : > { %v938_v41 = vadd.f32 %v874_v48, %v666_v23  ;;  %vm1603_vm7 = vcmp.eq.s32.totalorder %v3318_v15, %v3289_v8  ;;  %v1769_v55 = vadd.f32 %v1705_v28, %v1561_v14  ;;  %v1082_v29 = vsel %vm1010_vm2, %v3377_v33, 0.0 }
 0x19f   : > { %v1258_v24 = vsel %vm1186_vm13, %v3380_v34, 0.0  ;;  %vm5970_vm4 = vcmp.eq.s32.totalorder %v3325_v17, %v3247_v61  ;;  %v1945_v49 = vadd.f32 %v1881_v42, %v1737_v11  ;;  %v1114_v26 = vadd.f32 %v1050_v27, %v906_v12 }
 0x1a0   : > { %v1290_v39 = vsel %vm5970_vm4, %v3380_v34, 0.0  ;;  %v1146_v43 = vadd.f32 %v1082_v29, %v938_v41  ;;  %vm5971_vm14 = vcmp.eq.s32.totalorder %v3318_v15, %v3250_v62  ;;  %vm1843_vm2 = vcmp.eq.s32.totalorder %v3325_v17, %v3292_v9 }
 0x1a1   : > { %v1466_v28 = vsel %vm5971_vm14, %v3387_v35, 0.0  ;;  %vm2019_vm8 = vcmp.eq.s32.totalorder %v3318_v15, %v3295_v10  ;;  %vm2051_vm13 = vcmp.eq.s32.totalorder %v3325_v17, %v3295_v10  ;;  %v1977_v42 = vadd.f32 %v1913_v53, %v1769_v55 }
 0x1a2   : > { %v1498_v58 = vsel %vm1426_vm10, %v3387_v35, 0.0  ;;  %v1674_v51 = vsel %vm1602_vm1, %v3390_v36, 0.0  ;;  %v1706_v32 = vsel %vm1634_vm12, %v3390_v36, 0.0  ;;  %v2153_v44 = vadd.f32 %v2089_v59, %v1945_v49 }
 0x1a3   : > { %v1322_v53 = vadd.f32 %v1258_v24, %v1114_v26  ;;  %v1354_v23 = vadd.f32 %v1290_v39, %v1146_v43  ;;  %vm5972_vm10 = vcmp.eq.s32.totalorder %v3318_v15, %v3264_v1  ;;  %vm772_vm4 = vcmp.eq.s32.totalorder %v3328_v18, %v3230_v56 }
 0x1a4   : > { %v1882_v13 = vsel %vm5972_vm10, %v3393_v37, 0.0  ;;  %vm804_vm1 = vcmp.eq.s32.totalorder %v3331_v19, %v3230_v56  ;;  %v2185_v59 = vadd.f32 %v2121_v0, %v1977_v42  ;;  %v1914_v14 = vsel %vm1842_vm3, %v3393_v37, 0.0 }
 0x1a5   : > { %v2090_v52 = vsel %vm2018_vm6, %v3396_v38, 0.0  ;;  %v2122_v48 = vsel %vm2050_vm15, %v3396_v38, 0.0  ;;  %v1530_v11 = vadd.f32 %v1466_v28, %v1322_v53  ;;  %v1562_v12 = vadd.f32 %v1498_v58, %v1354_v23 }
 0x1a6   : > { %vm5973_vm10 = vcmp.eq.s32.totalorder %v3318_v15, %v3270_v3  ;;  %vm5974_vm3 = vcmp.eq.s32.totalorder %v3325_v17, %v3270_v3  ;;  %vm1188_vm6 = vcmp.eq.s32.totalorder %v3328_v18, %v3247_v61  ;;  %vm1220_vm14 = vcmp.eq.s32.totalorder %v3331_v19, %v3247_v61 }
 0x1a7   : > { %v635_v0 = vsel %vm5973_vm10, %v3436_v50, 0.0  ;;  %v667_v41 = vsel %vm5974_vm3, %v3436_v50, 0.0  ;;  %vm1396_vm15 = vcmp.eq.s32.totalorder %v3328_v18, %v3250_v62  ;;  %v2757_v27 = vpack.i.bf16 %v2153_v44, %v2185_v59 }
 0x1a8   : > { %v843_v55 = vsel %vm771_vm0, %v3439_v60, 0.0  ;;  %v875_v29 = vsel %vm803_vm9, %v3439_v60, 0.0  ;;  %vm5975_vm10 = vcmp.eq.s32.totalorder %v3318_v15, %v3276_v5  ;;  %v1738_v39 = vadd.f32 %v1674_v51, %v1530_v11 }
 0x1a9   : > { %v1051_v24 = vsel %vm5975_vm10, %v3442_v16, 0.0  ;;  %v1770_v49 = vadd.f32 %v1706_v32, %v1562_v12  ;;  %v907_v26 = vadd.f32 %v843_v55, %v635_v0  ;;  %v939_v43 = vadd.f32 %v875_v29, %v667_v41  ;;  %2758 = vxpose.xlu1.b32.cont [3/16] %v2757_v27, 128 }
 0x1aa   : > { %vm1604_vm3 = vcmp.eq.s32.totalorder %v3328_v18, %v3259_v63  ;;  %v1083_v28 = vsel %vm1011_vm5, %v3442_v16, 0.0  ;;  %vm5976_vm10 = vcmp.eq.s32.totalorder %v3318_v15, %v3279_v6  ;;  %vm5977_vm0 = vcmp.eq.s32.totalorder %v3325_v17, %v3279_v6 }
 0x1ab   : > { %v1259_v42 = vsel %vm5976_vm10, %v3445_v21, 0.0  ;;  %v1291_v58 = vsel %vm5977_vm0, %v3445_v21, 0.0  ;;  %vm5978_vm9 = vcmp.eq.s32.totalorder %v3318_v15, %v3282_v7  ;;  %v1946_v32 = vadd.f32 %v1882_v13, %v1738_v39 }
 0x1ac   : > { %v1467_v51 = vsel %vm5978_vm9, %v3452_v25, 0.0  ;;  %v1978_v44 = vadd.f32 %v1914_v14, %v1770_v49  ;;  %v1115_v53 = vadd.f32 %v1051_v24, %v907_v26  ;;  %v1147_v23 = vadd.f32 %v1083_v28, %v939_v43 }
 0x1ad   : > { %vm2020_vm5 = vcmp.eq.s32.totalorder %v3328_v18, %v3267_v2  ;;  %vm2052_vm10 = vcmp.eq.s32.totalorder %v3331_v19, %v3267_v2  ;;  %v1499_v13 = vsel %vm1427_vm11, %v3452_v25, 0.0  ;;  %v1675_v59 = vsel %vm1603_vm7, %v3455_v45, 0.0 }
 0x1ae   : > { %vm5979_vm9 = vcmp.eq.s32.totalorder %v3325_v17, %v3289_v8  ;;  %vm5980_vm12 = vcmp.eq.s32.totalorder %v3318_v15, %v3292_v9  ;;  %vm773_vm0 = vcmp.eq.s32.totalorder %v3328_v18, %v3273_v4  ;;  %v2154_v12 = vadd.f32 %v2090_v52, %v1946_v32 }
 0x1af   : > { %v1707_v14 = vsel %vm5979_vm9, %v3455_v45, 0.0  ;;  %v1883_v11 = vsel %vm5980_vm12, %v3458_v46, 0.0  ;;  %v2186_v0 = vadd.f32 %v2122_v48, %v1978_v44  ;;  %v1323_v41 = vadd.f32 %v1259_v42, %v1115_v53 }
 0x1b0   : > { %v1355_v27 = vadd.f32 %v1291_v58, %v1147_v23  ;;  %vm805_vm7 = vcmp.eq.s32.totalorder %v3331_v19, %v3273_v4  ;;  %vm981_vm11 = vcmp.eq.s32.totalorder %v3328_v18, %v3276_v5  ;;  %v1915_v55 = vsel %vm1843_vm2, %v3458_v46, 0.0 }
 0x1b1   : > { %v2091_v52 = vsel %vm2019_vm8, %v3461_v47, 0.0  ;;  %v2123_v48 = vsel %vm2051_vm13, %v3461_v47, 0.0  ;;  %vm5981_vm12 = vcmp.eq.s32.totalorder %v3328_v18, %v3223_v54  ;;  %vm1189_vm9 = vcmp.eq.s32.totalorder %v3328_v18, %v3279_v6 }
 0x1b2   : > { %v636_v29 = vsel %vm5981_vm12, %v3371_v30, 0.0  ;;  %v2647_v24 = vpack.i.bf16 %v2154_v12, %v2186_v0  ;;  %v1531_v39 = vadd.f32 %v1467_v51, %v1323_v41  ;;  %v1563_v49 = vadd.f32 %v1499_v13, %v1355_v27 }
 0x1b3   : > { %vm5982_vm8 = vcmp.eq.s32.totalorder %v3331_v19, %v3223_v54  ;;  %vm1221_vm2 = vcmp.eq.s32.totalorder %v3331_v19, %v3279_v6  ;;  %v844_v17 = vsel %vm772_vm4, %v3374_v31, 0.0  ;;  %v876_v26 = vsel %vm804_vm1, %v3374_v31, 0.0 }
 0x1b4   : > { %v668_v15 = vsel %vm5982_vm8, %v3371_v30, 0.0  ;;  %vm5983_vm8 = vcmp.eq.s32.totalorder %v3328_v18, %v3233_v57  ;;  %vm5984_vm13 = vcmp.eq.s32.totalorder %v3331_v19, %v3233_v57  ;;  %vm1605_vm12 = vcmp.eq.s32.totalorder %v3328_v18, %v3289_v8  ;;  %2648 = vxpose.xlu0.b32.cont [4/16] %v2647_v24, 128 }
 0x1b5   : > { %v1052_v43 = vsel %vm5983_vm8, %v3377_v33, 0.0  ;;  %v1084_v28 = vsel %vm5984_vm13, %v3377_v33, 0.0  ;;  %v1739_v42 = vadd.f32 %v1675_v59, %v1531_v39  ;;  %v1771_v58 = vadd.f32 %v1707_v14, %v1563_v49 }
 0x1b6   : > { %v908_v51 = vadd.f32 %v844_v17, %v636_v29  ;;  %v940_v32 = vadd.f32 %v876_v26, %v668_v15  ;;  %vm1637_vm4 = vcmp.eq.s32.totalorder %v3331_v19, %v3289_v8  ;;  %vm1813_vm1 = vcmp.eq.s32.totalorder %v3328_v18, %v3292_v9 }
 0x1b7   : > { %v1260_v44 = vsel %vm1188_vm6, %v3380_v34, 0.0  ;;  %v1292_v53 = vsel %vm1220_vm14, %v3380_v34, 0.0  ;;  %v1468_v23 = vsel %vm1396_vm15, %v3387_v35, 0.0  ;;  %vm5985_vm13 = vcmp.eq.s32.totalorder %v3331_v19, %v3250_v62 }
 0x1b8   : > { %v1500_v13 = vsel %vm5985_vm13, %v3387_v35, 0.0  ;;  %vm2021_vm8 = vcmp.eq.s32.totalorder %v3328_v18, %v3295_v10  ;;  %v1947_v59 = vadd.f32 %v1883_v11, %v1739_v42  ;;  %v1979_v14 = vadd.f32 %v1915_v55, %v1771_v58 }
 0x1b9   : > { %v1116_v12 = vadd.f32 %v1052_v43, %v908_v51  ;;  %v1148_v0 = vadd.f32 %v1084_v28, %v940_v32  ;;  %v1676_v41 = vsel %vm1604_vm3, %v3390_v36, 0.0  ;;  %vm5986_vm13 = vcmp.eq.s32.totalorder %v3331_v19, %v3259_v63 }
 0x1ba   : > { %v1708_v11 = vsel %vm5986_vm13, %v3390_v36, 0.0  ;;  %vm5987_vm14 = vcmp.eq.s32.totalorder %v3328_v18, %v3264_v1  ;;  %vm5988_vm6 = vcmp.eq.s32.totalorder %v3331_v19, %v3264_v1  ;;  %vm774_vm15 = vcmp.eq.s32.totalorder %v3334_v20, %v3230_v56 }
 0x1bb   : > { %v1884_v27 = vsel %vm5987_vm14, %v3393_v37, 0.0  ;;  %v1916_v55 = vsel %vm5988_vm6, %v3393_v37, 0.0  ;;  %v2155_v29 = vadd.f32 %v2091_v52, %v1947_v59  ;;  %v2187_v24 = vadd.f32 %v2123_v48, %v1979_v14 }
 0x1bc   : > { %v1324_v39 = vadd.f32 %v1260_v44, %v1116_v12  ;;  %v1356_v49 = vadd.f32 %v1292_v53, %v1148_v0  ;;  %v2092_v15 = vsel %vm2020_vm5, %v3396_v38, 0.0  ;;  %v2124_v17 = vsel %vm2052_vm10, %v3396_v38, 0.0 }
 0x1bd   : > { %vm5989_vm14 = vcmp.eq.s32.totalorder %v3328_v18, %v3270_v3  ;;  %vm5990_vm6 = vcmp.eq.s32.totalorder %v3331_v19, %v3270_v3  ;;  %vm1014_vm13 = vcmp.eq.s32.totalorder %v3346_v22, %v3233_v57  ;;  %vm1190_vm5 = vcmp.eq.s32.totalorder %v3334_v20, %v3247_v61 }
 0x1be   : > { %v637_v52 = vsel %vm5989_vm14, %v3436_v50, 0.0  ;;  %v669_v48 = vsel %vm5990_vm6, %v3436_v50, 0.0  ;;  %vm1222_vm3 = vcmp.eq.s32.totalorder %v3346_v22, %v3247_v61  ;;  %v2759_v26 = vpack.i.bf16 %v2155_v29, %v2187_v24 }
 0x1bf   : > { %v1532_v43 = vadd.f32 %v1468_v23, %v1324_v39  ;;  %v1564_v28 = vadd.f32 %v1500_v13, %v1356_v49  ;;  %v845_v42 = vsel %vm773_vm0, %v3439_v60, 0.0  ;;  %vm1398_vm10 = vcmp.eq.s32.totalorder %v3334_v20, %v3250_v62 }
 0x1c0   : > { %v877_v58 = vsel %vm805_vm7, %v3439_v60, 0.0  ;;  %v909_v51 = vadd.f32 %v845_v42, %v637_v52  ;;  %v1053_v32 = vsel %vm981_vm11, %v3442_v16, 0.0  ;;  %vm5991_vm14 = vcmp.eq.s32.totalorder %v3331_v19, %v3276_v5  ;;  %2760 = vxpose.xlu1.b32.cont [4/16] %v2759_v26, 128 }
 0x1c1   : > { %v1085_v44 = vsel %vm5991_vm14, %v3442_v16, 0.0  ;;  %vm1430_vm0 = vcmp.eq.s32.totalorder %v3346_v22, %v3250_v62  ;;  %v1740_v53 = vadd.f32 %v1676_v41, %v1532_v43  ;;  %v1772_v23 = vadd.f32 %v1708_v11, %v1564_v28 }
 0x1c2   : > { %v941_v13 = vadd.f32 %v877_v58, %v669_v48  ;;  %v1261_v59 = vsel %vm1189_vm9, %v3445_v21, 0.0  ;;  %v1117_v14 = vadd.f32 %v1053_v32, %v909_v51  ;;  %v1293_v12 = vsel %vm1221_vm2, %v3445_v21, 0.0 }
 0x1c3   : > { %vm5992_vm14 = vcmp.eq.s32.totalorder %v3328_v18, %v3282_v7  ;;  %vm5993_vm7 = vcmp.eq.s32.totalorder %v3331_v19, %v3282_v7  ;;  %vm1846_vm9 = vcmp.eq.s32.totalorder %v3346_v22, %v3264_v1  ;;  %vm2022_vm11 = vcmp.eq.s32.totalorder %v3334_v20, %v3267_v2 }
 0x1c4   : > { %v1469_v0 = vsel %vm5992_vm14, %v3452_v25, 0.0  ;;  %v1501_v41 = vsel %vm5993_vm7, %v3452_v25, 0.0  ;;  %vm2054_vm6 = vcmp.eq.s32.totalorder %v3346_v22, %v3267_v2  ;;  %v1948_v11 = vadd.f32 %v1884_v27, %v1740_v53 }
 0x1c5   : > { %v1980_v29 = vadd.f32 %v1916_v55, %v1772_v23  ;;  %v1149_v24 = vadd.f32 %v1085_v44, %v941_v13  ;;  %v1677_v39 = vsel %vm1605_vm12, %v3455_v45, 0.0  ;;  %v1325_v49 = vadd.f32 %v1261_v59, %v1117_v14 }
 0x1c6   : > { %v1709_v52 = vsel %vm1637_vm4, %v3455_v45, 0.0  ;;  %v1885_v27 = vsel %vm1813_vm1, %v3458_v46, 0.0  ;;  %vm5994_vm12 = vcmp.eq.s32.totalorder %v3331_v19, %v3292_v9  ;;  %vm775_vm14 = vcmp.eq.s32.totalorder %v3334_v20, %v3273_v4 }
 0x1c7   : > { %v1917_v55 = vsel %vm5994_vm12, %v3458_v46, 0.0  ;;  %v2156_v48 = vadd.f32 %v2092_v15, %v1948_v11  ;;  %v2188_v26 = vadd.f32 %v2124_v17, %v1980_v29  ;;  %v1357_v43 = vadd.f32 %v1293_v12, %v1149_v24 }
 0x1c8   : > { %v2093_v28 = vsel %vm2021_vm8, %v3461_v47, 0.0  ;;  %v1533_v42 = vadd.f32 %v1469_v0, %v1325_v49  ;;  %vm5995_vm4 = vcmp.eq.s32.totalorder %v3331_v19, %v3295_v10  ;;  %vm5996_vm1 = vcmp.eq.s32.totalorder %v3334_v20, %v3223_v54 }
 0x1c9   : > { %v2125_v58 = vsel %vm5995_vm4, %v3461_v47, 0.0  ;;  %v638_v51 = vsel %vm5996_vm1, %v3371_v30, 0.0  ;;  %vm5997_vm12 = vcmp.eq.s32.totalorder %v3346_v22, %v3223_v54  ;;  %vm1015_vm2 = vcmp.eq.s32.totalorder %v3346_v22, %v3276_v5 }
 0x1ca   : > { %v670_v15 = vsel %vm5997_vm12, %v3371_v30, 0.0  ;;  %vm1191_vm8 = vcmp.eq.s32.totalorder %v3334_v20, %v3279_v6  ;;  %v2649_v18 = vpack.i.bf16 %v2156_v48, %v2188_v26  ;;  %v1565_v19 = vadd.f32 %v1501_v41, %v1357_v43  ;;  %v6003_v26 = vld [vmem:[#allocation12_spill] sm:$0xff] }
 0x1cb   : > { %v846_v17 = vsel %vm774_vm15, %v3374_v31, 0.0  ;;  %vm5998_vm1 = vcmp.eq.s32.totalorder %v3346_v22, %v3230_v56  ;;  %v1741_v44 = vadd.f32 %v1677_v39, %v1533_v42  ;;  %vm5999_vm12 = vcmp.eq.s32.totalorder %v3334_v20, %v3233_v57  ;;  %v6000_v39 = vld [vmem:[#allocation11_spill] sm:$0xff] }
 0x1cc   : > { %v878_v32 = vsel %vm5998_vm1, %v3374_v31, 0.0  ;;  %v910_v53 = vadd.f32 %v846_v17, %v638_v51  ;;  %v1054_v13 = vsel %vm5999_vm12, %v3377_v33, 0.0  ;;  %vm1431_vm4 = vcmp.eq.s32.totalorder %v3346_v22, %v3282_v7  ;;  %2650 = vxpose.xlu0.b32.cont [5/16] %v2649_v18, 128 }
 0x1cd   : > { %v942_v23 = vadd.f32 %v878_v32, %v670_v15  ;;  %vm1607_vm7 = vcmp.eq.s32.totalorder %v3334_v20, %v3289_v8  ;;  %vm1639_vm15 = vcmp.eq.s32.totalorder %v3346_v22, %v3289_v8  ;;  %vm1815_vm1 = vcmp.eq.s32.totalorder %v3334_v20, %v3292_v9 }
 0x1ce   : > { %v1773_v59 = vadd.f32 %v1709_v52, %v1565_v19  ;;  %v1086_v14 = vsel %vm1014_vm13, %v3377_v33, 0.0  ;;  %v1262_v12 = vsel %vm1190_vm5, %v3380_v34, 0.0  ;;  %v1294_v0 = vsel %vm1222_vm3, %v3380_v34, 0.0 }
 0x1cf   : > { %v1949_v41 = vadd.f32 %v1885_v27, %v1741_v44  ;;  %v1118_v11 = vadd.f32 %v1054_v13, %v910_v53  ;;  %v1150_v29 = vadd.f32 %v1086_v14, %v942_v23  ;;  %v1470_v24 = vsel %vm1398_vm10, %v3387_v35, 0.0 }
 0x1d0   : > { %vm1847_vm13 = vcmp.eq.s32.totalorder %v3346_v22, %v3292_v9  ;;  %v1981_v49 = vadd.f32 %v1917_v55, %v1773_v59  ;;  %v1502_v52 = vsel %vm1430_vm0, %v3387_v35, 0.0  ;;  %vm6001_vm10 = vcmp.eq.s32.totalorder %v3334_v20, %v3259_v63 }
 0x1d1   : > { %v1678_v27 = vsel %vm6001_vm10, %v3390_v36, 0.0  ;;  %vm6002_vm12 = vcmp.eq.s32.totalorder %v3346_v22, %v3259_v63  ;;  %v2157_v43 = vadd.f32 %v2093_v28, %v1949_v41  ;;  %v1326_v55 = vadd.f32 %v1262_v12, %v1118_v11 }
 0x1d2   : > { %v1710_v48 = vsel %vm6002_vm12, %v3390_v36, 0.0  ;;  %v1358_v42 = vadd.f32 %v1294_v0, %v1150_v29  ;;  %vm6004_vm0 = vcmp.eq.s32.totalorder %v3334_v20, %v3264_v1  ;;  %vm776_vm3 = vcmp.eq.s32.totalorder %v6000_v39, %v3230_v56 }
 0x1d3   : > { %v1886_v51 = vsel %vm6004_vm0, %v3393_v37, 0.0  ;;  %vm808_vm10 = vcmp.eq.s32.totalorder %v6003_v26, %v3230_v56  ;;  %v2189_v28 = vadd.f32 %v2125_v58, %v1981_v49  ;;  %v1918_v15 = vsel %vm1846_vm9, %v3393_v37, 0.0 }
 0x1d4   : > { %v2094_v18 = vsel %vm2022_vm11, %v3396_v38, 0.0  ;;  %v2126_v19 = vsel %vm2054_vm6, %v3396_v38, 0.0  ;;  %v1534_v17 = vadd.f32 %v1470_v24, %v1326_v55  ;;  %v1566_v32 = vadd.f32 %v1502_v52, %v1358_v42 }
 0x1d5   : > { %vm6005_vm0 = vcmp.eq.s32.totalorder %v3334_v20, %v3270_v3  ;;  %vm6006_vm9 = vcmp.eq.s32.totalorder %v3346_v22, %v3270_v3  ;;  %vm1192_vm11 = vcmp.eq.s32.totalorder %v6000_v39, %v3247_v61  ;;  %vm1224_vm5 = vcmp.eq.s32.totalorder %v6003_v26, %v3247_v61 }
 0x1d6   : > { %v639_v58 = vsel %vm6005_vm0, %v3436_v50, 0.0  ;;  %v671_v44 = vsel %vm6006_vm9, %v3436_v50, 0.0  ;;  %v2761_v53 = vpack.i.bf16 %v2157_v43, %v2189_v28  ;;  %v847_v23 = vsel %vm775_vm14, %v3439_v60, 0.0 }
 0x1d7   : > { %vm6007_vm0 = vcmp.eq.s32.totalorder %v3346_v22, %v3273_v4  ;;  %vm6008_vm9 = vcmp.eq.s32.totalorder %v3334_v20, %v3276_v5  ;;  %v1742_v14 = vadd.f32 %v1678_v27, %v1534_v17  ;;  %v1774_v12 = vadd.f32 %v1710_v48, %v1566_v32 }
 0x1d8   : > { %v879_v13 = vsel %vm6007_vm0, %v3439_v60, 0.0  ;;  %v1055_v59 = vsel %vm6008_vm9, %v3442_v16, 0.0  ;;  %v911_v0 = vadd.f32 %v847_v23, %v639_v58  ;;  %vm1608_vm12 = vcmp.eq.s32.totalorder %v6000_v39, %v3259_v63  ;;  %2762 = vxpose.xlu1.b32.cont [5/16] %v2761_v53, 128 }
 0x1d9   : > { %v943_v41 = vadd.f32 %v879_v13, %v671_v44  ;;  %vm1640_vm14 = vcmp.eq.s32.totalorder %v6003_v26, %v3259_v63  ;;  %v1087_v11 = vsel %vm1015_vm2, %v3442_v16, 0.0  ;;  %v1263_v29 = vsel %vm1191_vm8, %v3445_v21, 0.0 }
 0x1da   : > { %vm6009_vm9 = vcmp.eq.s32.totalorder %v3346_v22, %v3279_v6  ;;  %vm6010_vm0 = vcmp.eq.s32.totalorder %v3334_v20, %v3282_v7  ;;  %v1950_v52 = vadd.f32 %v1886_v51, %v1742_v14  ;;  %v1982_v27 = vadd.f32 %v1918_v15, %v1774_v12 }
 0x1db   : > { %v1295_v24 = vsel %vm6009_vm9, %v3445_v21, 0.0  ;;  %v1471_v49 = vsel %vm6010_vm0, %v3452_v25, 0.0  ;;  %v1119_v48 = vadd.f32 %v1055_v59, %v911_v0  ;;  %v1151_v43 = vadd.f32 %v1087_v11, %v943_v41 }
 0x1dc   : > { %vm2024_vm2 = vcmp.eq.s32.totalorder %v6000_v39, %v3267_v2  ;;  %vm2056_vm8 = vcmp.eq.s32.totalorder %v6003_v26, %v3267_v2  ;;  %vm569_vm6 = vcmp.eq.s32.totalorder %v6000_v39, %v3270_v3  ;;  %vm601_vm9 = vcmp.eq.s32.totalorder %v6003_v26, %v3270_v3 }
 0x1dd   : > { %v1503_v55 = vsel %vm1431_vm4, %v3452_v25, 0.0  ;;  %v1679_v42 = vsel %vm1607_vm7, %v3455_v45, 0.0  ;;  %v1711_v51 = vsel %vm1639_vm15, %v3455_v45, 0.0  ;;  %v1887_v28 = vsel %vm1815_vm1, %v3458_v46, 0.0 }
 0x1de   : > { %vm777_vm0 = vcmp.eq.s32.totalorder %v6000_v39, %v3273_v4  ;;  %v2158_v15 = vadd.f32 %v2094_v18, %v1950_v52  ;;  %v2190_v17 = vadd.f32 %v2126_v19, %v1982_v27  ;;  %v1327_v32 = vadd.f32 %v1263_v29, %v1119_v48 }
 0x1df   : > { %v1359_v58 = vadd.f32 %v1295_v24, %v1151_v43  ;;  %v1919_v44 = vsel %vm1847_vm13, %v3458_v46, 0.0  ;;  %vm6011_vm1 = vcmp.eq.s32.totalorder %v3334_v20, %v3295_v10  ;;  %vm6012_vm7 = vcmp.eq.s32.totalorder %v3346_v22, %v3295_v10 }
 0x1e0   : > { %v2095_v18 = vsel %vm6011_vm1, %v3461_v47, 0.0  ;;  %v2127_v19 = vsel %vm6012_vm7, %v3461_v47, 0.0  ;;  %vm6013_vm4 = vcmp.eq.s32.totalorder %v6000_v39, %v3223_v54  ;;  %vm1193_vm15 = vcmp.eq.s32.totalorder %v6000_v39, %v3279_v6 }
 0x1e1   : > { %v640_v53 = vsel %vm6013_vm4, %v3371_v30, 0.0  ;;  %v2651_v23 = vpack.i.bf16 %v2158_v15, %v2190_v17  ;;  %v1535_v13 = vadd.f32 %v1471_v49, %v1327_v32  ;;  %v1567_v59 = vadd.f32 %v1503_v55, %v1359_v58  ;;  %v6019_v15 = vld [vmem:[#allocation13_spill] sm:$0xff]  ;;  %v6020_v17 = vld [vmem:[#allocation14_spill] sm:$0xff] }
 0x1e2   : > { %vm6014_vm13 = vcmp.eq.s32.totalorder %v6003_v26, %v3223_v54  ;;  %vm1225_vm1 = vcmp.eq.s32.totalorder %v6003_v26, %v3279_v6  ;;  %v848_v22 = vsel %vm776_vm3, %v3374_v31, 0.0  ;;  %v880_v14 = vsel %vm808_vm10, %v3374_v31, 0.0 }
 0x1e3   : > { %v672_v20 = vsel %vm6014_vm13, %v3371_v30, 0.0  ;;  %vm6015_vm13 = vcmp.eq.s32.totalorder %v6000_v39, %v3233_v57  ;;  %vm6016_vm7 = vcmp.eq.s32.totalorder %v6003_v26, %v3233_v57  ;;  %vm1609_vm4 = vcmp.eq.s32.totalorder %v6000_v39, %v3289_v8  ;;  %2652 = vxpose.xlu0.b32.cont [6/16] %v2651_v23, 128 }
 0x1e4   : > { %v1056_v12 = vsel %vm6015_vm13, %v3377_v33, 0.0  ;;  %v1088_v0 = vsel %vm6016_vm7, %v3377_v33, 0.0  ;;  %v1743_v41 = vadd.f32 %v1679_v42, %v1535_v13  ;;  %v1775_v11 = vadd.f32 %v1711_v51, %v1567_v59 }
 0x1e5   : > { %v912_v29 = vadd.f32 %v848_v22, %v640_v53  ;;  %v944_v24 = vadd.f32 %v880_v14, %v672_v20  ;;  %vm1641_vm3 = vcmp.eq.s32.totalorder %v6003_v26, %v3289_v8  ;;  %v1264_v49 = vsel %vm1192_vm11, %v3380_v34, 0.0 }
 0x1e6   : > { %v1296_v52 = vsel %vm1224_vm5, %v3380_v34, 0.0  ;;  %vm6017_vm7 = vcmp.eq.s32.totalorder %v6000_v39, %v3250_v62  ;;  %vm6018_vm10 = vcmp.eq.s32.totalorder %v6003_v26, %v3250_v62  ;;  %vm2025_vm13 = vcmp.eq.s32.totalorder %v6000_v39, %v3295_v10 }
 0x1e7   : > { %v1472_v27 = vsel %vm6017_vm7, %v3387_v35, 0.0  ;;  %v1504_v48 = vsel %vm6018_vm10, %v3387_v35, 0.0  ;;  %v1951_v43 = vadd.f32 %v1887_v28, %v1743_v41  ;;  %v1983_v55 = vadd.f32 %v1919_v44, %v1775_v11 }
 0x1e8   : > { %v1120_v42 = vadd.f32 %v1056_v12, %v912_v29  ;;  %v1152_v51 = vadd.f32 %v1088_v0, %v944_v24  ;;  %vm2057_vm5 = vcmp.eq.s32.totalorder %v6003_v26, %v3295_v10  ;;  %v1680_v32 = vsel %vm1608_vm12, %v3390_v36, 0.0 }
 0x1e9   : > { %v1712_v28 = vsel %vm1640_vm14, %v3390_v36, 0.0  ;;  %vm6021_vm10 = vcmp.eq.s32.totalorder %v6000_v39, %v3264_v1  ;;  %vm6022_vm11 = vcmp.eq.s32.totalorder %v6003_v26, %v3264_v1  ;;  %vm778_vm7 = vcmp.eq.s32.totalorder %v6019_v15, %v3230_v56 }
 0x1ea   : > { %v1888_v58 = vsel %vm6021_vm10, %v3393_v37, 0.0  ;;  %v1920_v44 = vsel %vm6022_vm11, %v3393_v37, 0.0  ;;  %vm810_vm12 = vcmp.eq.s32.totalorder %v6020_v17, %v3230_v56  ;;  %v2159_v53 = vadd.f32 %v2095_v18, %v1951_v43 }
 0x1eb   : > { %v2191_v23 = vadd.f32 %v2127_v19, %v1983_v55  ;;  %v1328_v13 = vadd.f32 %v1264_v49, %v1120_v42  ;;  %v1360_v59 = vadd.f32 %v1296_v52, %v1152_v51  ;;  %vm986_vm14 = vcmp.eq.s32.totalorder %v6019_v15, %v3233_v57 }
 0x1ec   : > { %v2096_v20 = vsel %vm2024_vm2, %v3396_v38, 0.0  ;;  %v2128_v22 = vsel %vm2056_vm8, %v3396_v38, 0.0  ;;  %v641_v18 = vsel %vm569_vm6, %v3436_v50, 0.0  ;;  %v673_v19 = vsel %vm601_vm9, %v3436_v50, 0.0 }
 0x1ed   : > { %vm1018_vm11 = vcmp.eq.s32.totalorder %v6020_v17, %v3233_v57  ;;  %vm1194_vm2 = vcmp.eq.s32.totalorder %v6019_v15, %v3247_v61  ;;  %v2763_v14 = vpack.i.bf16 %v2159_v53, %v2191_v23  ;;  %v1536_v12 = vadd.f32 %v1472_v27, %v1328_v13 }
 0x1ee   : > { %v1568_v0 = vadd.f32 %v1504_v48, %v1360_v59  ;;  %v849_v41 = vsel %vm777_vm0, %v3439_v60, 0.0  ;;  %vm6023_vm8 = vcmp.eq.s32.totalorder %v6003_v26, %v3273_v4  ;;  %vm6024_vm9 = vcmp.eq.s32.totalorder %v6000_v39, %v3276_v5 }
 0x1ef   : > { %v881_v11 = vsel %vm6023_vm8, %v3439_v60, 0.0  ;;  %v913_v29 = vadd.f32 %v849_v41, %v641_v18  ;;  %v1057_v24 = vsel %vm6024_vm9, %v3442_v16, 0.0  ;;  %vm6025_vm10 = vcmp.eq.s32.totalorder %v6003_v26, %v3276_v5  ;;  %2764 = vxpose.xlu1.b32.cont [6/16] %v2763_v14, 128 }
 0x1f0   : > { %v1089_v49 = vsel %vm6025_vm10, %v3442_v16, 0.0  ;;  %vm1434_vm0 = vcmp.eq.s32.totalorder %v6020_v17, %v3250_v62  ;;  %v1744_v52 = vadd.f32 %v1680_v32, %v1536_v12  ;;  %v1776_v27 = vadd.f32 %v1712_v28, %v1568_v0 }
 0x1f1   : > { %v945_v48 = vadd.f32 %v881_v11, %v673_v19  ;;  %v1265_v43 = vsel %vm1193_vm15, %v3445_v21, 0.0  ;;  %v1121_v55 = vadd.f32 %v1057_v24, %v913_v29  ;;  %v1297_v42 = vsel %vm1225_vm1, %v3445_v21, 0.0 }
 0x1f2   : > { %vm6026_vm9 = vcmp.eq.s32.totalorder %v6000_v39, %v3282_v7  ;;  %vm6027_vm8 = vcmp.eq.s32.totalorder %v6003_v26, %v3282_v7  ;;  %vm1850_vm15 = vcmp.eq.s32.totalorder %v6020_v17, %v3264_v1  ;;  %vm2026_vm10 = vcmp.eq.s32.totalorder %v6019_v15, %v3267_v2 }
 0x1f3   : > { %v1473_v51 = vsel %vm6026_vm9, %v3452_v25, 0.0  ;;  %v1505_v32 = vsel %vm6027_vm8, %v3452_v25, 0.0  ;;  %v1952_v28 = vadd.f32 %v1888_v58, %v1744_v52  ;;  %v1984_v53 = vadd.f32 %v1920_v44, %v1776_v27 }
 0x1f4   : > { %v1153_v23 = vadd.f32 %v1089_v49, %v945_v48  ;;  %v1681_v13 = vsel %vm1609_vm4, %v3455_v45, 0.0  ;;  %v1329_v59 = vadd.f32 %v1265_v43, %v1121_v55  ;;  %v1713_v18 = vsel %vm1641_vm3, %v3455_v45, 0.0 }
 0x1f5   : > { %vm6028_vm9 = vcmp.eq.s32.totalorder %v6000_v39, %v3292_v9  ;;  %vm6029_vm4 = vcmp.eq.s32.totalorder %v6003_v26, %v3292_v9  ;;  %vm779_vm1 = vcmp.eq.s32.totalorder %v6019_v15, %v3273_v4  ;;  %vm811_vm8 = vcmp.eq.s32.totalorder %v6020_v17, %v3273_v4 }
 0x1f6   : > { %v1889_v58 = vsel %vm6028_vm9, %v3458_v46, 0.0  ;;  %v1921_v44 = vsel %vm6029_vm4, %v3458_v46, 0.0  ;;  %v2160_v19 = vadd.f32 %v2096_v20, %v1952_v28  ;;  %v2192_v14 = vadd.f32 %v2128_v22, %v1984_v53 }
 0x1f7   : > { %v1361_v12 = vadd.f32 %v1297_v42, %v1153_v23  ;;  %v2097_v0 = vsel %vm2025_vm13, %v3461_v47, 0.0  ;;  %v1537_v41 = vadd.f32 %v1473_v51, %v1329_v59  ;;  %v2129_v11 = vsel %vm2057_vm5, %v3461_v47, 0.0  ;;  %v6034_v59 = vld [vmem:[#allocation15_spill] sm:$0xff] }
 0x1f8   : > { %vm6030_vm3 = vcmp.eq.s32.totalorder %v6019_v15, %v3223_v54  ;;  %vm6031_vm9 = vcmp.eq.s32.totalorder %v6020_v17, %v3223_v54  ;;  %vm1019_vm4 = vcmp.eq.s32.totalorder %v6020_v17, %v3276_v5  ;;  %vm1195_vm13 = vcmp.eq.s32.totalorder %v6019_v15, %v3279_v6 }
 0x1f9   : > { %v642_v29 = vsel %vm6030_vm3, %v3371_v30, 0.0  ;;  %v674_v20 = vsel %vm6031_vm9, %v3371_v30, 0.0  ;;  %vm1227_vm6 = vcmp.eq.s32.totalorder %v6020_v17, %v3279_v6  ;;  %vm1403_vm5 = vcmp.eq.s32.totalorder %v6019_v15, %v3282_v7 }
 0x1fa   : > { %v2653_v39 = vpack.i.bf16 %v2160_v19, %v2192_v14  ;;  %v1569_v26 = vadd.f32 %v1505_v32, %v1361_v12  ;;  %v850_v22 = vsel %vm778_vm7, %v3374_v31, 0.0  ;;  %v882_v24 = vsel %vm810_vm12, %v3374_v31, 0.0  ;;  %v2873_v32 = vld [vmem:[#allocation5 + $0x8] sm:$0xff]   ;;  %v6037_v12 = vld [vmem:[#allocation16_spill] sm:$0xff] }
 0x1fb   : > { %v1745_v49 = vadd.f32 %v1681_v13, %v1537_v41  ;;  %v914_v52 = vadd.f32 %v850_v22, %v642_v29  ;;  %v946_v27 = vadd.f32 %v882_v24, %v674_v20  ;;  %v1058_v48 = vsel %vm986_vm14, %v3377_v33, 0.0 }
 0x1fc   : > { %vm1435_vm3 = vcmp.eq.s32.totalorder %v6020_v17, %v3282_v7  ;;  %vm1611_vm9 = vcmp.eq.s32.totalorder %v6019_v15, %v3289_v8  ;;  %2654 = vxpose.xlu0.b32.cont [7/16] %v2653_v39, 128  ;;  %v1777_v43 = vadd.f32 %v1713_v18, %v1569_v26  ;;  %v1090_v55 = vsel %vm1018_vm11, %v3377_v33, 0.0 }
 0x1fd   : > { %v1266_v42 = vsel %vm1194_vm2, %v3380_v34, 0.0  ;;  %vm6032_vm14 = vcmp.eq.s32.totalorder %v6020_v17, %v3247_v61  ;;  %v1953_v28 = vadd.f32 %v1889_v58, %v1745_v49  ;;  %v1122_v53 = vadd.f32 %v1058_v48, %v914_v52 }
 0x1fe   : > { %v1298_v51 = vsel %vm6032_vm14, %v3380_v34, 0.0  ;;  %v1154_v23 = vadd.f32 %v1090_v55, %v946_v27  ;;  %vm6033_vm12 = vcmp.eq.s32.totalorder %v6019_v15, %v3250_v62  ;;  %v1985_v18 = vadd.f32 %v1921_v44, %v1777_v43 }
 0x1ff   : > { %v1474_v13 = vsel %vm6033_vm12, %v3387_v35, 0.0  ;;  %v1506_v58 = vsel %vm1434_vm0, %v3387_v35, 0.0  ;;  %vm6035_vm12 = vcmp.eq.s32.totalorder %v6019_v15, %v3259_v63  ;;  %vm6036_vm2 = vcmp.eq.s32.totalorder %v6020_v17, %v3259_v63 }
 0x200   : > { %v1682_v19 = vsel %vm6035_vm12, %v3390_v36, 0.0  ;;  %v1714_v14 = vsel %vm6036_vm2, %v3390_v36, 0.0  ;;  %vm604_vm7 = vcmp.eq.s32.totalorder %v6037_v12, %v3223_v54  ;;  %vm6038_vm14 = vcmask 261120  }
 0x201   : > { %2567 = vmatmul.mubr.msk.bf16.gmra.mxu1 %vm6038_vm14, %v2873_v32  ;;  %v2161_v44 = vadd.f32 %v2097_v0, %v1953_v28  ;;  %v1330_v41 = vadd.f32 %v1266_v42, %v1122_v53  ;;  %v1362_v29 = vadd.f32 %v1298_v51, %v1154_v23  ;;  %vm6039_vm0 = vcmp.eq.s32.totalorder %v6019_v15, %v3264_v1 }
 0x202   : > { %v1890_v20 = vsel %vm6039_vm0, %v3393_v37, 0.0  ;;  %vm780_vm12 = vcmp.eq.s32.totalorder %v6034_v59, %v3230_v56  ;;  %vm812_vm11 = vcmp.eq.s32.totalorder %v6037_v12, %v3230_v56  ;;  %v2193_v0 = vadd.f32 %v2129_v11, %v1985_v18 }
 0x203   : > { %v1922_v39 = vsel %vm1850_vm15, %v3393_v37, 0.0  ;;  %v2098_v26 = vsel %vm2026_vm10, %v3396_v38, 0.0  ;;  %vm6040_vm0 = vcmp.eq.s32.totalorder %v6020_v17, %v3267_v2  ;;  %v1538_v24 = vadd.f32 %v1474_v13, %v1330_v41 }
 0x204   : > { %v2130_v22 = vsel %vm6040_vm0, %v3396_v38, 0.0  ;;  %v1570_v49 = vadd.f32 %v1506_v58, %v1362_v29  ;;  %vm6041_vm14 = vcmp.eq.s32.totalorder %v6019_v15, %v3270_v3  ;;  %vm6042_vm15 = vcmp.eq.s32.totalorder %v6020_v17, %v3270_v3 }
 0x205   : > { %v643_v11 = vsel %vm6041_vm14, %v3436_v50, 0.0  ;;  %v675_v52 = vsel %vm6042_vm15, %v3436_v50, 0.0  ;;  %vm1196_vm10 = vcmp.eq.s32.totalorder %v6034_v59, %v3247_v61  ;;  %vm1228_vm2 = vcmp.eq.s32.totalorder %v6037_v12, %v3247_v61 }
 0x206   : > { %v2765_v27 = vpack.i.bf16 %v2161_v44, %v2193_v0  ;;  %v851_v48 = vsel %vm779_vm1, %v3439_v60, 0.0  ;;  %v883_v43 = vsel %vm811_vm8, %v3439_v60, 0.0  ;;  %vm6043_vm14 = vcmp.eq.s32.totalorder %v6019_v15, %v3276_v5 }
 0x207   : > { %v1059_v55 = vsel %vm6043_vm14, %v3442_v16, 0.0  ;;  %v1746_v42 = vadd.f32 %v1682_v19, %v1538_v24  ;;  %v1778_v51 = vadd.f32 %v1714_v14, %v1570_v49  ;;  %v915_v32 = vadd.f32 %v851_v48, %v643_v11 }
 0x208   : > { %v947_v28 = vadd.f32 %v883_v43, %v675_v52  ;;  %2766 = vxpose.xlu1.b32.cont [7/16] %v2765_v27, 128  ;;  %v1091_v53 = vsel %vm1019_vm4, %v3442_v16, 0.0  ;;  %v1267_v23 = vsel %vm1195_vm13, %v3445_v21, 0.0  ;;  %v1299_v13 = vsel %vm1227_vm6, %v3445_v21, 0.0 }
 0x209   : > { %v1475_v18 = vsel %vm1403_vm5, %v3452_v25, 0.0  ;;  %v1954_v58 = vadd.f32 %v1890_v20, %v1746_v42  ;;  %v1986_v19 = vadd.f32 %v1922_v39, %v1778_v51  ;;  %v1123_v14 = vadd.f32 %v1059_v55, %v915_v32 }
 0x20a   : > { %v1155_v44 = vadd.f32 %v1091_v53, %v947_v28  ;;  %v1507_v41 = vsel %vm1435_vm3, %v3452_v25, 0.0  ;;  %v1683_v29 = vsel %vm1611_vm9, %v3455_v45, 0.0  ;;  %vm6044_vm6 = vcmp.eq.s32.totalorder %v6020_v17, %v3289_v8 }
 0x20b   : > { %v1715_v0 = vsel %vm6044_vm6, %v3455_v45, 0.0  ;;  %vm6045_vm1 = vcmp.eq.s32.totalorder %v6019_v15, %v3292_v9  ;;  %v2162_v39 = vadd.f32 %v2098_v26, %v1954_v58  ;;  %v2194_v24 = vadd.f32 %v2130_v22, %v1986_v19 }
 0x20c   : > { %v1891_v20 = vsel %vm6045_vm1, %v3458_v46, 0.0  ;;  %v1331_v49 = vadd.f32 %v1267_v23, %v1123_v14  ;;  %v1363_v11 = vadd.f32 %v1299_v13, %v1155_v44  ;;  %vm6046_vm8 = vcmp.eq.s32.totalorder %v6020_v17, %v3292_v9 }
 0x20d   : > { %v1923_v52 = vsel %vm6046_vm8, %v3458_v46, 0.0  ;;  %vm6047_vm4 = vcmp.eq.s32.totalorder %v6019_v15, %v3295_v10  ;;  %vm6048_vm13 = vcmp.eq.s32.totalorder %v6020_v17, %v3295_v10  ;;  %vm6049_vm5 = vcmp.eq.s32.totalorder %v6034_v59, %v3223_v54 }
 0x20e   : > { %v2099_v27 = vsel %vm6047_vm4, %v3461_v47, 0.0  ;;  %v2131_v48 = vsel %vm6048_vm13, %v3461_v47, 0.0  ;;  %v644_v26 = vsel %vm6049_vm5, %v3371_v30, 0.0  ;;  %v2655_v22 = vpack.i.bf16 %v2162_v39, %v2194_v24 }
 0x20f   : > { %v1539_v43 = vadd.f32 %v1475_v18, %v1331_v49  ;;  %v1571_v55 = vadd.f32 %v1507_v41, %v1363_v11  ;;  %v676_v42 = vsel %vm604_vm7, %v3371_v30, 0.0  ;;  %v852_v15 = vsel %vm780_vm12, %v3374_v31, 0.0 }
 0x210   : > { %v884_v17 = vsel %vm812_vm11, %v3374_v31, 0.0  ;;  %vm6050_vm3 = vcmp.eq.s32.totalorder %v6034_v59, %v3233_v57  ;;  %vm6051_vm9 = vcmp.eq.s32.totalorder %v6037_v12, %v3233_v57  ;;  %2656 = vxpose.xlu0.b32.cont [8/16] %v2655_v22, 128  ;;  %v916_v23 = vadd.f32 %v852_v15, %v644_v26 }
 0x211   : > { %v1060_v51 = vsel %vm6050_vm3, %v3377_v33, 0.0  ;;  %v1092_v32 = vsel %vm6051_vm9, %v3377_v33, 0.0  ;;  %v1747_v28 = vadd.f32 %v1683_v29, %v1539_v43  ;;  %v1779_v53 = vadd.f32 %v1715_v0, %v1571_v55 }
 0x212   : > { %v948_v13 = vadd.f32 %v884_v17, %v676_v42  ;;  %v1268_v18 = vsel %vm1196_vm10, %v3380_v34, 0.0  ;;  %v1300_v58 = vsel %vm1228_vm2, %v3380_v34, 0.0  ;;  %vm1404_vm7 = vcmp.eq.s32.totalorder %v6034_v59, %v3250_v62 }
 0x213   : > { %vm1436_vm11 = vcmp.eq.s32.totalorder %v6037_v12, %v3250_v62  ;;  %v1955_v19 = vadd.f32 %v1891_v20, %v1747_v28  ;;  %v1987_v14 = vadd.f32 %v1923_v52, %v1779_v53  ;;  %v1124_v44 = vadd.f32 %v1060_v51, %v916_v23 }
 0x214   : > { %v1156_v41 = vadd.f32 %v1092_v32, %v948_v13  ;;  %v1476_v29 = vsel %vm1404_vm7, %v3387_v35, 0.0  ;;  %v1508_v0 = vsel %vm1436_vm11, %v3387_v35, 0.0  ;;  %vm1612_vm12 = vcmp.eq.s32.totalorder %v6034_v59, %v3259_v63 }
 0x215   : > { %vm1644_vm2 = vcmp.eq.s32.totalorder %v6037_v12, %v3259_v63  ;;  %v2163_v39 = vadd.f32 %v2099_v27, %v1955_v19  ;;  %v2195_v24 = vadd.f32 %v2131_v48, %v1987_v14  ;;  %v1332_v49 = vadd.f32 %v1268_v18, %v1124_v44 }
 0x216   : > { %v1364_v11 = vadd.f32 %v1300_v58, %v1156_v41  ;;  %v1684_v26 = vsel %vm1612_vm12, %v3390_v36, 0.0  ;;  %v1716_v20 = vsel %vm1644_vm2, %v3390_v36, 0.0  ;;  %vm1820_vm0 = vcmp.eq.s32.totalorder %v6034_v59, %v3264_v1 }
 0x217   : > { %vm1852_vm15 = vcmp.eq.s32.totalorder %v6037_v12, %v3264_v1  ;;  %v2767_v52 = vpack.i.bf16 %v2163_v39, %v2195_v24  ;;  %v1540_v22 = vadd.f32 %v1476_v29, %v1332_v49  ;;  %v1892_v55 = vsel %vm1820_vm0, %v3393_v37, 0.0 }
 0x218   : > { %v1572_v43 = vadd.f32 %v1508_v0, %v1364_v11  ;;  %v1924_v27 = vsel %vm1852_vm15, %v3393_v37, 0.0  ;;  %vm2028_vm10 = vcmp.eq.s32.totalorder %v6034_v59, %v3267_v2  ;;  %vm2060_vm14 = vcmp.eq.s32.totalorder %v6037_v12, %v3267_v2 }
 0x219   : > { %vm573_vm6 = vcmp.eq.s32.totalorder %v6034_v59, %v3270_v3  ;;  %2768 = vxpose.xlu1.b32.cont [8/16] %v2767_v52, 128  ;;  %v1748_v48 = vadd.f32 %v1684_v26, %v1540_v22  ;;  %v2100_v15 = vsel %vm2028_vm10, %v3396_v38, 0.0  ;;  %v2132_v17 = vsel %vm2060_vm14, %v3396_v38, 0.0 }
 0x21a   : > { %v1780_v42 = vadd.f32 %v1716_v20, %v1572_v43  ;;  %vm605_vm1 = vcmp.eq.s32.totalorder %v6037_v12, %v3270_v3  ;;  %v645_v51 = vsel %vm573_vm6, %v3436_v50, 0.0  ;;  %vm781_vm8 = vcmp.eq.s32.totalorder %v6034_v59, %v3273_v4 }
 0x21b   : > { %vm813_vm4 = vcmp.eq.s32.totalorder %v6037_v12, %v3273_v4  ;;  %v1956_v32 = vadd.f32 %v1892_v55, %v1748_v48  ;;  %v677_v53 = vsel %vm605_vm1, %v3436_v50, 0.0  ;;  %v853_v23 = vsel %vm781_vm8, %v3439_v60, 0.0 }
 0x21c   : > { %v1988_v28 = vadd.f32 %v1924_v27, %v1780_v42  ;;  %v885_v13 = vsel %vm813_vm4, %v3439_v60, 0.0  ;;  %v917_v18 = vadd.f32 %v853_v23, %v645_v51  ;;  %vm989_vm13 = vcmp.eq.s32.totalorder %v6034_v59, %v3276_v5 }
 0x21d   : > { %vm1021_vm5 = vcmp.eq.s32.totalorder %v6037_v12, %v3276_v5  ;;  %v2164_v58 = vadd.f32 %v2100_v15, %v1956_v32  ;;  %v949_v14 = vadd.f32 %v885_v13, %v677_v53  ;;  %v1061_v44 = vsel %vm989_vm13, %v3442_v16, 0.0 }
 0x21e   : > { %v2196_v19 = vadd.f32 %v2132_v17, %v1988_v28  ;;  %v1093_v41 = vsel %vm1021_vm5, %v3442_v16, 0.0  ;;  %v1125_v29 = vadd.f32 %v1061_v44, %v917_v18  ;;  %vm1197_vm3 = vcmp.eq.s32.totalorder %v6034_v59, %v3279_v6 }
 0x21f   : > { %vm1229_vm9 = vcmp.eq.s32.totalorder %v6037_v12, %v3279_v6  ;;  %v1157_v39 = vadd.f32 %v1093_v41, %v949_v14  ;;  %v1269_v24 = vsel %vm1197_vm3, %v3445_v21, 0.0  ;;  %vm1405_vm7 = vcmp.eq.s32.totalorder %v6034_v59, %v3282_v7 }
 0x220   : > { %v2657_v0 = vpack.i.bf16 %v2164_v58, %v2196_v19  ;;  %v1301_v49 = vsel %vm1229_vm9, %v3445_v21, 0.0  ;;  %v1333_v11 = vadd.f32 %v1269_v24, %v1125_v29  ;;  %vm1437_vm11 = vcmp.eq.s32.totalorder %v6037_v12, %v3282_v7 }
 0x221   : > { %vm1613_vm12 = vcmp.eq.s32.totalorder %v6034_v59, %v3289_v8  ;;  %v1365_v26 = vadd.f32 %v1301_v49, %v1157_v39  ;;  %v1477_v20 = vsel %vm1405_vm7, %v3452_v25, 0.0  ;;  %v1509_v52 = vsel %vm1437_vm11, %v3452_v25, 0.0 }
 0x222   : > { %2658 = vxpose.xlu0.b32.cont [9/16] %v2657_v0, 128  ;;  %vm1645_vm2 = vcmp.eq.s32.totalorder %v6037_v12, %v3289_v8  ;;  %v1541_v22 = vadd.f32 %v1477_v20, %v1333_v11  ;;  %v1685_v43 = vsel %vm1613_vm12, %v3455_v45, 0.0  ;;  %vm1821_vm0 = vcmp.eq.s32.totalorder %v6034_v59, %v3292_v9 }
 0x223   : > { %v1717_v55 = vsel %vm1645_vm2, %v3455_v45, 0.0  ;;  %v1573_v27 = vadd.f32 %v1509_v52, %v1365_v26  ;;  %vm1853_vm15 = vcmp.eq.s32.totalorder %v6037_v12, %v3292_v9  ;;  %v1893_v48 = vsel %vm1821_vm0, %v3458_v46, 0.0 }
 0x224   : > { %vm2029_vm10 = vcmp.eq.s32.totalorder %v6034_v59, %v3295_v10  ;;  %v1749_v42 = vadd.f32 %v1685_v43, %v1541_v22  ;;  %v1925_v15 = vsel %vm1853_vm15, %v3458_v46, 0.0  ;;  %vm2061_vm14 = vcmp.eq.s32.totalorder %v6037_v12, %v3295_v10 }
 0x225   : > { %v2101_v17 = vsel %vm2029_vm10, %v3461_v47, 0.0  ;;  %v1781_v51 = vadd.f32 %v1717_v55, %v1573_v27  ;;  %v2133_v32 = vsel %vm2061_vm14, %v3461_v47, 0.0  ;;  %v5037_v28 = vadd.s32 72, %v3199_v40 }
 0x226   : > { %v5040_v53 = vadd.s32 200, %v3199_v40  ;;  %v1957_v23 = vadd.f32 %v1893_v48, %v1749_v42  ;;  %v5043_v59 = vadd.s32 80, %v3199_v40  ;;  %v5046_v13 = vadd.s32 208, %v3199_v40 }
 0x227   : > { %v5049_v12 = vadd.s32 88, %v3199_v40  ;;  %v1989_v18 = vadd.f32 %v1925_v15, %v1781_v51  ;;  %vm574_vm6 = vcmp.eq.s32.totalorder %v5037_v28, %v3223_v54  ;;  %vm782_vm8 = vcmp.eq.s32.totalorder %v5037_v28, %v3230_v56 }
 0x228   : > { %vm606_vm1 = vcmp.eq.s32.totalorder %v5040_v53, %v3223_v54  ;;  %v2165_v58 = vadd.f32 %v2101_v17, %v1957_v23  ;;  %v646_v19 = vsel %vm574_vm6, %v3371_v30, 0.0  ;;  %vm814_vm4 = vcmp.eq.s32.totalorder %v5040_v53, %v3230_v56 }
 0x229   : > { %v678_v14 = vsel %vm606_vm1, %v3371_v30, 0.0  ;;  %v2197_v44 = vadd.f32 %v2133_v32, %v1989_v18  ;;  %v854_v41 = vsel %vm782_vm8, %v3374_v31, 0.0  ;;  %v886_v29 = vsel %vm814_vm4, %v3374_v31, 0.0 }
 0x22a   : > { %vm990_vm13 = vcmp.eq.s32.totalorder %v5037_v28, %v3233_v57  ;;  %v918_v0 = vadd.f32 %v854_v41, %v646_v19  ;;  %v950_v39 = vadd.f32 %v886_v29, %v678_v14  ;;  %vm1022_vm5 = vcmp.eq.s32.totalorder %v5040_v53, %v3233_v57 }
 0x22b   : > { %v1062_v24 = vsel %vm990_vm13, %v3377_v33, 0.0  ;;  %v2769_v49 = vpack.i.bf16 %v2165_v58, %v2197_v44  ;;  %v1094_v11 = vsel %vm1022_vm5, %v3377_v33, 0.0  ;;  %vm1198_vm3 = vcmp.eq.s32.totalorder %v5037_v28, %v3247_v61 }
 0x22c   : > { %vm1230_vm9 = vcmp.eq.s32.totalorder %v5040_v53, %v3247_v61  ;;  %v1126_v26 = vadd.f32 %v1062_v24, %v918_v0  ;;  %v1158_v20 = vadd.f32 %v1094_v11, %v950_v39  ;;  %v1270_v52 = vsel %vm1198_vm3, %v3380_v34, 0.0 }
 0x22d   : > { %v1302_v22 = vsel %vm1230_vm9, %v3380_v34, 0.0  ;;  %2770 = vxpose.xlu1.b32.cont [9/16] %v2769_v49, 128  ;;  %vm1406_vm7 = vcmp.eq.s32.totalorder %v5037_v28, %v3250_v62  ;;  %vm1438_vm11 = vcmp.eq.s32.totalorder %v5040_v53, %v3250_v62  ;;  %vm1614_vm12 = vcmp.eq.s32.totalorder %v5037_v28, %v3259_v63 }
 0x22e   : > { %vm1646_vm2 = vcmp.eq.s32.totalorder %v5040_v53, %v3259_v63  ;;  %v1334_v43 = vadd.f32 %v1270_v52, %v1126_v26  ;;  %v1366_v55 = vadd.f32 %v1302_v22, %v1158_v20  ;;  %v1478_v27 = vsel %vm1406_vm7, %v3387_v35, 0.0 }
 0x22f   : > { %v1510_v48 = vsel %vm1438_vm11, %v3387_v35, 0.0  ;;  %v1686_v42 = vsel %vm1614_vm12, %v3390_v36, 0.0  ;;  %v1718_v15 = vsel %vm1646_vm2, %v3390_v36, 0.0  ;;  %vm1822_vm0 = vcmp.eq.s32.totalorder %v5037_v28, %v3264_v1 }
 0x230   : > { %vm1854_vm15 = vcmp.eq.s32.totalorder %v5040_v53, %v3264_v1  ;;  %v1542_v17 = vadd.f32 %v1478_v27, %v1334_v43  ;;  %v1574_v51 = vadd.f32 %v1510_v48, %v1366_v55  ;;  %v1894_v32 = vsel %vm1822_vm0, %v3393_v37, 0.0 }
 0x231   : > { %v1926_v23 = vsel %vm1854_vm15, %v3393_v37, 0.0  ;;  %vm2030_vm10 = vcmp.eq.s32.totalorder %v5037_v28, %v3267_v2  ;;  %vm2062_vm14 = vcmp.eq.s32.totalorder %v5040_v53, %v3267_v2  ;;  %vm575_vm6 = vcmp.eq.s32.totalorder %v5037_v28, %v3270_v3 }
 0x232   : > { %vm607_vm1 = vcmp.eq.s32.totalorder %v5040_v53, %v3270_v3  ;;  %v1750_v18 = vadd.f32 %v1686_v42, %v1542_v17  ;;  %v1782_v58 = vadd.f32 %v1718_v15, %v1574_v51  ;;  %v2102_v19 = vsel %vm2030_vm10, %v3396_v38, 0.0 }
 0x233   : > { %v2134_v14 = vsel %vm2062_vm14, %v3396_v38, 0.0  ;;  %v647_v44 = vsel %vm575_vm6, %v3436_v50, 0.0  ;;  %v679_v41 = vsel %vm607_vm1, %v3436_v50, 0.0  ;;  %vm783_vm8 = vcmp.eq.s32.totalorder %v5037_v28, %v3273_v4 }
 0x234   : > { %vm815_vm4 = vcmp.eq.s32.totalorder %v5040_v53, %v3273_v4  ;;  %v1958_v29 = vadd.f32 %v1894_v32, %v1750_v18  ;;  %v1990_v0 = vadd.f32 %v1926_v23, %v1782_v58  ;;  %v855_v39 = vsel %vm783_vm8, %v3439_v60, 0.0 }
 0x235   : > { %v887_v24 = vsel %vm815_vm4, %v3439_v60, 0.0  ;;  %v919_v49 = vadd.f32 %v855_v39, %v647_v44  ;;  %vm991_vm13 = vcmp.eq.s32.totalorder %v5037_v28, %v3276_v5  ;;  %vm1023_vm5 = vcmp.eq.s32.totalorder %v5040_v53, %v3276_v5 }
 0x236   : > { %v951_v11 = vadd.f32 %v887_v24, %v679_v41  ;;  %v2166_v26 = vadd.f32 %v2102_v19, %v1958_v29  ;;  %v2198_v20 = vadd.f32 %v2134_v14, %v1990_v0  ;;  %v1063_v52 = vsel %vm991_vm13, %v3442_v16, 0.0 }
 0x237   : > { %v1095_v22 = vsel %vm1023_vm5, %v3442_v16, 0.0  ;;  %v1127_v43 = vadd.f32 %v1063_v52, %v919_v49  ;;  %vm1199_vm3 = vcmp.eq.s32.totalorder %v5037_v28, %v3279_v6  ;;  %vm1231_vm9 = vcmp.eq.s32.totalorder %v5040_v53, %v3279_v6 }
 0x238   : > { %v1159_v55 = vadd.f32 %v1095_v22, %v951_v11  ;;  %v2659_v27 = vpack.i.bf16 %v2166_v26, %v2198_v20  ;;  %v1271_v48 = vsel %vm1199_vm3, %v3445_v21, 0.0  ;;  %v1303_v42 = vsel %vm1231_vm9, %v3445_v21, 0.0 }
 0x239   : > { %vm1407_vm7 = vcmp.eq.s32.totalorder %v5037_v28, %v3282_v7  ;;  %v1335_v15 = vadd.f32 %v1271_v48, %v1127_v43  ;;  %vm1439_vm11 = vcmp.eq.s32.totalorder %v5040_v53, %v3282_v7  ;;  %vm1615_vm12 = vcmp.eq.s32.totalorder %v5037_v28, %v3289_v8 }
 0x23a   : > { %v1367_v17 = vadd.f32 %v1303_v42, %v1159_v55  ;;  %v1479_v51 = vsel %vm1407_vm7, %v3452_v25, 0.0  ;;  %2660 = vxpose.xlu0.b32.cont [10/16] %v2659_v27, 128  ;;  %v1511_v32 = vsel %vm1439_vm11, %v3452_v25, 0.0  ;;  %vm1647_vm2 = vcmp.eq.s32.totalorder %v5040_v53, %v3289_v8 }
 0x23b   : > { %vm1823_vm0 = vcmp.eq.s32.totalorder %v5037_v28, %v3292_v9  ;;  %v1543_v23 = vadd.f32 %v1479_v51, %v1335_v15  ;;  %v1687_v58 = vsel %vm1615_vm12, %v3455_v45, 0.0  ;;  %v1719_v19 = vsel %vm1647_vm2, %v3455_v45, 0.0 }
 0x23c   : > { %v1575_v18 = vadd.f32 %v1511_v32, %v1367_v17  ;;  %vm1855_vm15 = vcmp.eq.s32.totalorder %v5040_v53, %v3292_v9  ;;  %v1895_v14 = vsel %vm1823_vm0, %v3458_v46, 0.0  ;;  %vm2031_vm10 = vcmp.eq.s32.totalorder %v5037_v28, %v3295_v10 }
 0x23d   : > { %vm2063_vm14 = vcmp.eq.s32.totalorder %v5040_v53, %v3295_v10  ;;  %v1751_v44 = vadd.f32 %v1687_v58, %v1543_v23  ;;  %v1927_v29 = vsel %vm1855_vm15, %v3458_v46, 0.0  ;;  %v2103_v0 = vsel %vm2031_vm10, %v3461_v47, 0.0 }
 0x23e   : > { %v1783_v41 = vadd.f32 %v1719_v19, %v1575_v18  ;;  %v2135_v39 = vsel %vm2063_vm14, %v3461_v47, 0.0  ;;  %vm576_vm6 = vcmp.eq.s32.totalorder %v5043_v59, %v3223_v54  ;;  %vm608_vm1 = vcmp.eq.s32.totalorder %v5046_v13, %v3223_v54 }
 0x23f   : > { %vm784_vm8 = vcmp.eq.s32.totalorder %v5043_v59, %v3230_v56  ;;  %v1959_v28 = vadd.f32 %v1895_v14, %v1751_v44  ;;  %v648_v53 = vsel %vm576_vm6, %v3371_v30, 0.0  ;;  %v680_v49 = vsel %vm608_vm1, %v3371_v30, 0.0 }
 0x240   : > { %v1991_v24 = vadd.f32 %v1927_v29, %v1783_v41  ;;  %vm816_vm4 = vcmp.eq.s32.totalorder %v5046_v13, %v3230_v56  ;;  %v856_v11 = vsel %vm784_vm8, %v3374_v31, 0.0  ;;  %vm992_vm13 = vcmp.eq.s32.totalorder %v5043_v59, %v3233_v57 }
 0x241   : > { %vm1024_vm5 = vcmp.eq.s32.totalorder %v5046_v13, %v3233_v57  ;;  %v2167_v26 = vadd.f32 %v2103_v0, %v1959_v28  ;;  %v888_v52 = vsel %vm816_vm4, %v3374_v31, 0.0  ;;  %v920_v22 = vadd.f32 %v856_v11, %v648_v53 }
 0x242   : > { %v2199_v20 = vadd.f32 %v2135_v39, %v1991_v24  ;;  %v952_v43 = vadd.f32 %v888_v52, %v680_v49  ;;  %v1064_v55 = vsel %vm992_vm13, %v3377_v33, 0.0  ;;  %v1096_v27 = vsel %vm1024_vm5, %v3377_v33, 0.0 }
 0x243   : > { %vm1200_vm3 = vcmp.eq.s32.totalorder %v5043_v59, %v3247_v61  ;;  %v1128_v42 = vadd.f32 %v1064_v55, %v920_v22  ;;  %vm1232_vm9 = vcmp.eq.s32.totalorder %v5046_v13, %v3247_v61  ;;  %vm1408_vm7 = vcmp.eq.s32.totalorder %v5043_v59, %v3250_v62 }
 0x244   : > { %v2771_v48 = vpack.i.bf16 %v2167_v26, %v2199_v20  ;;  %v1272_v15 = vsel %vm1200_vm3, %v3380_v34, 0.0  ;;  %v1160_v17 = vadd.f32 %v1096_v27, %v952_v43  ;;  %v1304_v51 = vsel %vm1232_vm9, %v3380_v34, 0.0 }
 0x245   : > { %vm1440_vm11 = vcmp.eq.s32.totalorder %v5046_v13, %v3250_v62  ;;  %v1336_v32 = vadd.f32 %v1272_v15, %v1128_v42  ;;  %v1480_v23 = vsel %vm1408_vm7, %v3387_v35, 0.0  ;;  %vm1616_vm12 = vcmp.eq.s32.totalorder %v5043_v59, %v3259_v63 }
 0x246   : > { %2772 = vxpose.xlu1.b32.cont [10/16] %v2771_v48, 128  ;;  %v1512_v18 = vsel %vm1440_vm11, %v3387_v35, 0.0  ;;  %v1368_v58 = vadd.f32 %v1304_v51, %v1160_v17  ;;  %vm1648_vm2 = vcmp.eq.s32.totalorder %v5046_v13, %v3259_v63  ;;  %v1688_v19 = vsel %vm1616_vm12, %v3390_v36, 0.0 }
 0x247   : > { %vm1824_vm0 = vcmp.eq.s32.totalorder %v5043_v59, %v3264_v1  ;;  %v1544_v14 = vadd.f32 %v1480_v23, %v1336_v32  ;;  %v1720_v44 = vsel %vm1648_vm2, %v3390_v36, 0.0  ;;  %vm1856_vm15 = vcmp.eq.s32.totalorder %v5046_v13, %v3264_v1 }
 0x248   : > { %v1896_v41 = vsel %vm1824_vm0, %v3393_v37, 0.0  ;;  %v1576_v29 = vadd.f32 %v1512_v18, %v1368_v58  ;;  %v1928_v0 = vsel %vm1856_vm15, %v3393_v37, 0.0  ;;  %vm2032_vm10 = vcmp.eq.s32.totalorder %v5043_v59, %v3267_v2 }
 0x249   : > { %vm2064_vm14 = vcmp.eq.s32.totalorder %v5046_v13, %v3267_v2  ;;  %v1752_v39 = vadd.f32 %v1688_v19, %v1544_v14  ;;  %v2104_v28 = vsel %vm2032_vm10, %v3396_v38, 0.0  ;;  %vm577_vm6 = vcmp.eq.s32.totalorder %v5043_v59, %v3270_v3 }
 0x24a   : > { %v2136_v24 = vsel %vm2064_vm14, %v3396_v38, 0.0  ;;  %v1784_v53 = vadd.f32 %v1720_v44, %v1576_v29  ;;  %vm609_vm1 = vcmp.eq.s32.totalorder %v5046_v13, %v3270_v3  ;;  %v649_v49 = vsel %vm577_vm6, %v3436_v50, 0.0 }
 0x24b   : > { %vm785_vm8 = vcmp.eq.s32.totalorder %v5043_v59, %v3273_v4  ;;  %v1960_v11 = vadd.f32 %v1896_v41, %v1752_v39  ;;  %v681_v26 = vsel %vm609_vm1, %v3436_v50, 0.0  ;;  %vm817_vm4 = vcmp.eq.s32.totalorder %v5046_v13, %v3273_v4 }
 0x24c   : > { %v857_v20 = vsel %vm785_vm8, %v3439_v60, 0.0  ;;  %v1992_v52 = vadd.f32 %v1928_v0, %v1784_v53  ;;  %v889_v22 = vsel %vm817_vm4, %v3439_v60, 0.0  ;;  %vm993_vm13 = vcmp.eq.s32.totalorder %v5043_v59, %v3276_v5 }
 0x24d   : > { %v921_v43 = vadd.f32 %v857_v20, %v649_v49  ;;  %v2168_v55 = vadd.f32 %v2104_v28, %v1960_v11  ;;  %v953_v27 = vadd.f32 %v889_v22, %v681_v26  ;;  %vm1025_vm5 = vcmp.eq.s32.totalorder %v5046_v13, %v3276_v5 }
 0x24e   : > { %v1065_v48 = vsel %vm993_vm13, %v3442_v16, 0.0  ;;  %v2200_v42 = vadd.f32 %v2136_v24, %v1992_v52  ;;  %v1097_v15 = vsel %vm1025_vm5, %v3442_v16, 0.0  ;;  %vm1201_vm3 = vcmp.eq.s32.totalorder %v5043_v59, %v3279_v6 }
 0x24f   : > { %v1129_v17 = vadd.f32 %v1065_v48, %v921_v43  ;;  %v1161_v51 = vadd.f32 %v1097_v15, %v953_v27  ;;  %vm1233_vm9 = vcmp.eq.s32.totalorder %v5046_v13, %v3279_v6  ;;  %v1273_v32 = vsel %vm1201_vm3, %v3445_v21, 0.0 }
 0x250   : > { %vm1409_vm7 = vcmp.eq.s32.totalorder %v5043_v59, %v3282_v7  ;;  %v2661_v23 = vpack.i.bf16 %v2168_v55, %v2200_v42  ;;  %v1305_v18 = vsel %vm1233_vm9, %v3445_v21, 0.0  ;;  %vm1441_vm11 = vcmp.eq.s32.totalorder %v5046_v13, %v3282_v7 }
 0x251   : > { %v1337_v58 = vadd.f32 %v1273_v32, %v1129_v17  ;;  %v1369_v19 = vadd.f32 %v1305_v18, %v1161_v51  ;;  %v1481_v14 = vsel %vm1409_vm7, %v3452_v25, 0.0  ;;  %v1513_v44 = vsel %vm1441_vm11, %v3452_v25, 0.0 }
 0x252   : > { %vm1617_vm12 = vcmp.eq.s32.totalorder %v5043_v59, %v3289_v8  ;;  %2662 = vxpose.xlu0.b32.cont [11/16] %v2661_v23, 128  ;;  %vm1649_vm2 = vcmp.eq.s32.totalorder %v5046_v13, %v3289_v8  ;;  %vm1825_vm0 = vcmp.eq.s32.totalorder %v5043_v59, %v3292_v9  ;;  %vm1857_vm15 = vcmp.eq.s32.totalorder %v5046_v13, %v3292_v9 }
 0x253   : > { %v1545_v41 = vadd.f32 %v1481_v14, %v1337_v58  ;;  %v1689_v29 = vsel %vm1617_vm12, %v3455_v45, 0.0  ;;  %v1577_v0 = vadd.f32 %v1513_v44, %v1369_v19  ;;  %v1721_v39 = vsel %vm1649_vm2, %v3455_v45, 0.0 }
 0x254   : > { %v1897_v28 = vsel %vm1825_vm0, %v3458_v46, 0.0  ;;  %v1929_v53 = vsel %vm1857_vm15, %v3458_v46, 0.0  ;;  %vm2033_vm10 = vcmp.eq.s32.totalorder %v5043_v59, %v3295_v10  ;;  %vm2065_vm14 = vcmp.eq.s32.totalorder %v5046_v13, %v3295_v10 }
 0x255   : > { %v1753_v24 = vadd.f32 %v1689_v29, %v1545_v41  ;;  %v1785_v49 = vadd.f32 %v1721_v39, %v1577_v0  ;;  %v2105_v11 = vsel %vm2033_vm10, %v3461_v47, 0.0  ;;  %v2137_v26 = vsel %vm2065_vm14, %v3461_v47, 0.0 }
 0x256   : > { %v5244_v20 = vadd.s32 216, %v3199_v40  ;;  %vm578_vm6 = vcmp.eq.s32.totalorder %v5049_v12, %v3223_v54  ;;  %vm786_vm1 = vcmp.eq.s32.totalorder %v5049_v12, %v3230_v56  ;;  %vm994_vm8 = vcmp.eq.s32.totalorder %v5049_v12, %v3233_v57 }
 0x257   : > { %v1961_v52 = vadd.f32 %v1897_v28, %v1753_v24  ;;  %v1993_v59 = vadd.f32 %v1929_v53, %v1785_v49  ;;  %v650_v13 = vsel %vm578_vm6, %v3371_v30, 0.0  ;;  %v858_v55 = vsel %vm786_vm1, %v3374_v31, 0.0 }
 0x258   : > { %vm610_vm4 = vcmp.eq.s32.totalorder %v5244_v20, %v3223_v54  ;;  %vm818_vm13 = vcmp.eq.s32.totalorder %v5244_v20, %v3230_v56  ;;  %v922_v42 = vadd.f32 %v858_v55, %v650_v13  ;;  %vm1026_vm5 = vcmp.eq.s32.totalorder %v5244_v20, %v3233_v57 }
 0x259   : > { %v2169_v22 = vadd.f32 %v2105_v11, %v1961_v52  ;;  %v682_v43 = vsel %vm610_vm4, %v3371_v30, 0.0  ;;  %v890_v27 = vsel %vm818_vm13, %v3374_v31, 0.0  ;;  %v2201_v48 = vadd.f32 %v2137_v26, %v1993_v59 }
 0x25a   : > { %v954_v15 = vadd.f32 %v890_v27, %v682_v43  ;;  %v1066_v17 = vsel %vm994_vm8, %v3377_v33, 0.0  ;;  %v1098_v51 = vsel %vm1026_vm5, %v3377_v33, 0.0  ;;  %vm1202_vm3 = vcmp.eq.s32.totalorder %v5049_v12, %v3247_v61 }
 0x25b   : > { %vm1234_vm9 = vcmp.eq.s32.totalorder %v5244_v20, %v3247_v61  ;;  %v2773_v32 = vpack.i.bf16 %v2169_v22, %v2201_v48  ;;  %v1130_v23 = vadd.f32 %v1066_v17, %v922_v42  ;;  %v1274_v58 = vsel %vm1202_vm3, %v3380_v34, 0.0 }
 0x25c   : > { %v1162_v18 = vadd.f32 %v1098_v51, %v954_v15  ;;  %v1306_v19 = vsel %vm1234_vm9, %v3380_v34, 0.0  ;;  %vm1410_vm7 = vcmp.eq.s32.totalorder %v5049_v12, %v3250_v62  ;;  %vm1442_vm11 = vcmp.eq.s32.totalorder %v5244_v20, %v3250_v62 }
 0x25d   : > { %vm1618_vm12 = vcmp.eq.s32.totalorder %v5049_v12, %v3259_v63  ;;  %2774 = vxpose.xlu1.b32.cont [11/16] %v2773_v32, 128  ;;  %v1338_v14 = vadd.f32 %v1274_v58, %v1130_v23  ;;  %v1482_v41 = vsel %vm1410_vm7, %v3387_v35, 0.0  ;;  %v1514_v29 = vsel %vm1442_vm11, %v3387_v35, 0.0 }
 0x25e   : > { %v1370_v44 = vadd.f32 %v1306_v19, %v1162_v18  ;;  %vm1650_vm2 = vcmp.eq.s32.totalorder %v5244_v20, %v3259_v63  ;;  %v1690_v0 = vsel %vm1618_vm12, %v3390_v36, 0.0  ;;  %vm1826_vm0 = vcmp.eq.s32.totalorder %v5049_v12, %v3264_v1 }
 0x25f   : > { %vm1858_vm15 = vcmp.eq.s32.totalorder %v5244_v20, %v3264_v1  ;;  %v1546_v39 = vadd.f32 %v1482_v41, %v1338_v14  ;;  %v1722_v24 = vsel %vm1650_vm2, %v3390_v36, 0.0  ;;  %v1898_v53 = vsel %vm1826_vm0, %v3393_v37, 0.0 }
 0x260   : > { %v1578_v28 = vadd.f32 %v1514_v29, %v1370_v44  ;;  %v1930_v49 = vsel %vm1858_vm15, %v3393_v37, 0.0  ;;  %vm2034_vm10 = vcmp.eq.s32.totalorder %v5049_v12, %v3267_v2  ;;  %vm2066_vm14 = vcmp.eq.s32.totalorder %v5244_v20, %v3267_v2 }
 0x261   : > { %vm579_vm6 = vcmp.eq.s32.totalorder %v5049_v12, %v3270_v3  ;;  %v1754_v11 = vadd.f32 %v1690_v0, %v1546_v39  ;;  %v2106_v52 = vsel %vm2034_vm10, %v3396_v38, 0.0  ;;  %v2138_v59 = vsel %vm2066_vm14, %v3396_v38, 0.0 }
 0x262   : > { %v1786_v26 = vadd.f32 %v1722_v24, %v1578_v28  ;;  %vm611_vm1 = vcmp.eq.s32.totalorder %v5244_v20, %v3270_v3  ;;  %v651_v13 = vsel %vm579_vm6, %v3436_v50, 0.0  ;;  %vm787_vm8 = vcmp.eq.s32.totalorder %v5049_v12, %v3273_v4 }
 0x263   : > { %vm819_vm4 = vcmp.eq.s32.totalorder %v5244_v20, %v3273_v4  ;;  %v1962_v22 = vadd.f32 %v1898_v53, %v1754_v11  ;;  %v683_v55 = vsel %vm611_vm1, %v3436_v50, 0.0  ;;  %v859_v27 = vsel %vm787_vm8, %v3439_v60, 0.0 }
 0x264   : > { %v1994_v43 = vadd.f32 %v1930_v49, %v1786_v26  ;;  %v891_v48 = vsel %vm819_vm4, %v3439_v60, 0.0  ;;  %v923_v42 = vadd.f32 %v859_v27, %v651_v13  ;;  %vm995_vm13 = vcmp.eq.s32.totalorder %v5049_v12, %v3276_v5 }
 0x265   : > { %vm1027_vm5 = vcmp.eq.s32.totalorder %v5244_v20, %v3276_v5  ;;  %v2170_v15 = vadd.f32 %v2106_v52, %v1962_v22  ;;  %v955_v51 = vadd.f32 %v891_v48, %v683_v55  ;;  %v1067_v32 = vsel %vm995_vm13, %v3442_v16, 0.0 }
 0x266   : > { %v2202_v17 = vadd.f32 %v2138_v59, %v1994_v43  ;;  %v1099_v23 = vsel %vm1027_vm5, %v3442_v16, 0.0  ;;  %v1131_v18 = vadd.f32 %v1067_v32, %v923_v42  ;;  %vm1203_vm3 = vcmp.eq.s32.totalorder %v5049_v12, %v3279_v6 }
 0x267   : > { %vm1235_vm9 = vcmp.eq.s32.totalorder %v5244_v20, %v3279_v6  ;;  %v1163_v19 = vadd.f32 %v1099_v23, %v955_v51  ;;  %v1275_v14 = vsel %vm1203_vm3, %v3445_v21, 0.0  ;;  %vm1411_vm7 = vcmp.eq.s32.totalorder %v5049_v12, %v3282_v7 }
 0x268   : > { %v2663_v58 = vpack.i.bf16 %v2170_v15, %v2202_v17  ;;  %v1307_v44 = vsel %vm1235_vm9, %v3445_v21, 0.0  ;;  %v1339_v41 = vadd.f32 %v1275_v14, %v1131_v18  ;;  %vm1443_vm11 = vcmp.eq.s32.totalorder %v5244_v20, %v3282_v7 }
 0x269   : > { %vm1619_vm12 = vcmp.eq.s32.totalorder %v5049_v12, %v3289_v8  ;;  %v1371_v29 = vadd.f32 %v1307_v44, %v1163_v19  ;;  %v1483_v0 = vsel %vm1411_vm7, %v3452_v25, 0.0  ;;  %v1515_v39 = vsel %vm1443_vm11, %v3452_v25, 0.0 }
 0x26a   : > { %2664 = vxpose.xlu0.b32.cont [12/16] %v2663_v58, 128  ;;  %vm1651_vm2 = vcmp.eq.s32.totalorder %v5244_v20, %v3289_v8  ;;  %v1547_v28 = vadd.f32 %v1483_v0, %v1339_v41  ;;  %v1691_v24 = vsel %vm1619_vm12, %v3455_v45, 0.0  ;;  %vm1827_vm0 = vcmp.eq.s32.totalorder %v5049_v12, %v3292_v9 }
 0x26b   : > { %v1723_v53 = vsel %vm1651_vm2, %v3455_v45, 0.0  ;;  %v1579_v49 = vadd.f32 %v1515_v39, %v1371_v29  ;;  %vm1859_vm15 = vcmp.eq.s32.totalorder %v5244_v20, %v3292_v9  ;;  %v1899_v11 = vsel %vm1827_vm0, %v3458_v46, 0.0 }
 0x26c   : > { %vm2035_vm10 = vcmp.eq.s32.totalorder %v5049_v12, %v3295_v10  ;;  %v1755_v26 = vadd.f32 %v1691_v24, %v1547_v28  ;;  %v1931_v52 = vsel %vm1859_vm15, %v3458_v46, 0.0  ;;  %vm2067_vm14 = vcmp.eq.s32.totalorder %v5244_v20, %v3295_v10 }
 0x26d   : > { %v2107_v59 = vsel %vm2035_vm10, %v3461_v47, 0.0  ;;  %v1787_v13 = vadd.f32 %v1723_v53, %v1579_v49  ;;  %v2139_v22 = vsel %vm2067_vm14, %v3461_v47, 0.0  ;;  %v5343_v43 = vadd.s32 96, %v3199_v40 }
 0x26e   : > { %v5346_v55 = vadd.s32 224, %v3199_v40  ;;  %v1963_v27 = vadd.f32 %v1899_v11, %v1755_v26  ;;  %v5349_v12 = vadd.s32 104, %v3199_v40  ;;  %v5352_v48 = vadd.s32 232, %v3199_v40 }
 0x26f   : > { %v5355_v20 = vadd.s32 112, %v3199_v40  ;;  %v1995_v42 = vadd.f32 %v1931_v52, %v1787_v13  ;;  %vm580_vm6 = vcmp.eq.s32.totalorder %v5343_v43, %v3223_v54  ;;  %vm788_vm8 = vcmp.eq.s32.totalorder %v5343_v43, %v3230_v56 }
 0x270   : > { %vm612_vm1 = vcmp.eq.s32.totalorder %v5346_v55, %v3223_v54  ;;  %v2171_v15 = vadd.f32 %v2107_v59, %v1963_v27  ;;  %v652_v17 = vsel %vm580_vm6, %v3371_v30, 0.0  ;;  %vm820_vm4 = vcmp.eq.s32.totalorder %v5346_v55, %v3230_v56 }
 0x271   : > { %v684_v51 = vsel %vm612_vm1, %v3371_v30, 0.0  ;;  %v2203_v32 = vadd.f32 %v2139_v22, %v1995_v42  ;;  %v860_v23 = vsel %vm788_vm8, %v3374_v31, 0.0  ;;  %v892_v18 = vsel %vm820_vm4, %v3374_v31, 0.0 }
 0x272   : > { %vm996_vm13 = vcmp.eq.s32.totalorder %v5343_v43, %v3233_v57  ;;  %v924_v58 = vadd.f32 %v860_v23, %v652_v17  ;;  %v956_v19 = vadd.f32 %v892_v18, %v684_v51  ;;  %vm1028_vm5 = vcmp.eq.s32.totalorder %v5346_v55, %v3233_v57 }
 0x273   : > { %v1068_v14 = vsel %vm996_vm13, %v3377_v33, 0.0  ;;  %v2775_v44 = vpack.i.bf16 %v2171_v15, %v2203_v32  ;;  %v1100_v41 = vsel %vm1028_vm5, %v3377_v33, 0.0  ;;  %vm1204_vm3 = vcmp.eq.s32.totalorder %v5343_v43, %v3247_v61 }
 0x274   : > { %vm1236_vm9 = vcmp.eq.s32.totalorder %v5346_v55, %v3247_v61  ;;  %v1132_v29 = vadd.f32 %v1068_v14, %v924_v58  ;;  %v1164_v0 = vadd.f32 %v1100_v41, %v956_v19  ;;  %v1276_v39 = vsel %vm1204_vm3, %v3380_v34, 0.0 }
 0x275   : > { %v1308_v28 = vsel %vm1236_vm9, %v3380_v34, 0.0  ;;  %2776 = vxpose.xlu1.b32.cont [12/16] %v2775_v44, 128  ;;  %vm1412_vm7 = vcmp.eq.s32.totalorder %v5343_v43, %v3250_v62  ;;  %vm1444_vm11 = vcmp.eq.s32.totalorder %v5346_v55, %v3250_v62  ;;  %vm1620_vm12 = vcmp.eq.s32.totalorder %v5343_v43, %v3259_v63 }
 0x276   : > { %vm1652_vm2 = vcmp.eq.s32.totalorder %v5346_v55, %v3259_v63  ;;  %v1340_v24 = vadd.f32 %v1276_v39, %v1132_v29  ;;  %v1372_v53 = vadd.f32 %v1308_v28, %v1164_v0  ;;  %v1484_v49 = vsel %vm1412_vm7, %v3387_v35, 0.0 }
 0x277   : > { %v1516_v11 = vsel %vm1444_vm11, %v3387_v35, 0.0  ;;  %v1692_v26 = vsel %vm1620_vm12, %v3390_v36, 0.0  ;;  %v1724_v52 = vsel %vm1652_vm2, %v3390_v36, 0.0  ;;  %vm1828_vm0 = vcmp.eq.s32.totalorder %v5343_v43, %v3264_v1 }
 0x278   : > { %vm1860_vm15 = vcmp.eq.s32.totalorder %v5346_v55, %v3264_v1  ;;  %v1548_v59 = vadd.f32 %v1484_v49, %v1340_v24  ;;  %v1580_v13 = vadd.f32 %v1516_v11, %v1372_v53  ;;  %v1900_v22 = vsel %vm1828_vm0, %v3393_v37, 0.0 }
 0x279   : > { %v1932_v27 = vsel %vm1860_vm15, %v3393_v37, 0.0  ;;  %vm2036_vm10 = vcmp.eq.s32.totalorder %v5343_v43, %v3267_v2  ;;  %vm2068_vm14 = vcmp.eq.s32.totalorder %v5346_v55, %v3267_v2  ;;  %vm581_vm6 = vcmp.eq.s32.totalorder %v5343_v43, %v3270_v3 }
 0x27a   : > { %vm613_vm1 = vcmp.eq.s32.totalorder %v5346_v55, %v3270_v3  ;;  %v1756_v42 = vadd.f32 %v1692_v26, %v1548_v59  ;;  %v1788_v15 = vadd.f32 %v1724_v52, %v1580_v13  ;;  %v2108_v17 = vsel %vm2036_vm10, %v3396_v38, 0.0 }
 0x27b   : > { %v2140_v51 = vsel %vm2068_vm14, %v3396_v38, 0.0  ;;  %v653_v32 = vsel %vm581_vm6, %v3436_v50, 0.0  ;;  %v685_v23 = vsel %vm613_vm1, %v3436_v50, 0.0  ;;  %vm789_vm8 = vcmp.eq.s32.totalorder %v5343_v43, %v3273_v4 }
 0x27c   : > { %vm821_vm4 = vcmp.eq.s32.totalorder %v5346_v55, %v3273_v4  ;;  %v1964_v18 = vadd.f32 %v1900_v22, %v1756_v42  ;;  %v1996_v58 = vadd.f32 %v1932_v27, %v1788_v15  ;;  %v861_v19 = vsel %vm789_vm8, %v3439_v60, 0.0 }
 0x27d   : > { %v893_v14 = vsel %vm821_vm4, %v3439_v60, 0.0  ;;  %v925_v44 = vadd.f32 %v861_v19, %v653_v32  ;;  %vm997_vm13 = vcmp.eq.s32.totalorder %v5343_v43, %v3276_v5  ;;  %vm1029_vm5 = vcmp.eq.s32.totalorder %v5346_v55, %v3276_v5 }
 0x27e   : > { %v957_v41 = vadd.f32 %v893_v14, %v685_v23  ;;  %v2172_v29 = vadd.f32 %v2108_v17, %v1964_v18  ;;  %v2204_v0 = vadd.f32 %v2140_v51, %v1996_v58  ;;  %v1069_v39 = vsel %vm997_vm13, %v3442_v16, 0.0 }
 0x27f   : > { %v1101_v28 = vsel %vm1029_vm5, %v3442_v16, 0.0  ;;  %v1133_v24 = vadd.f32 %v1069_v39, %v925_v44  ;;  %vm1205_vm3 = vcmp.eq.s32.totalorder %v5343_v43, %v3279_v6  ;;  %vm1237_vm9 = vcmp.eq.s32.totalorder %v5346_v55, %v3279_v6 }
 0x280   : > { %v1165_v53 = vadd.f32 %v1101_v28, %v957_v41  ;;  %v2665_v49 = vpack.i.bf16 %v2172_v29, %v2204_v0  ;;  %v1277_v11 = vsel %vm1205_vm3, %v3445_v21, 0.0  ;;  %v1309_v26 = vsel %vm1237_vm9, %v3445_v21, 0.0 }
 0x281   : > { %vm1413_vm7 = vcmp.eq.s32.totalorder %v5343_v43, %v3282_v7  ;;  %v1341_v52 = vadd.f32 %v1277_v11, %v1133_v24  ;;  %vm1445_vm11 = vcmp.eq.s32.totalorder %v5346_v55, %v3282_v7  ;;  %vm1621_vm12 = vcmp.eq.s32.totalorder %v5343_v43, %v3289_v8 }
 0x282   : > { %v1373_v59 = vadd.f32 %v1309_v26, %v1165_v53  ;;  %v1485_v13 = vsel %vm1413_vm7, %v3452_v25, 0.0  ;;  %2666 = vxpose.xlu0.b32.cont [13/16] %v2665_v49, 128  ;;  %v1517_v22 = vsel %vm1445_vm11, %v3452_v25, 0.0  ;;  %vm1653_vm2 = vcmp.eq.s32.totalorder %v5346_v55, %v3289_v8 }
 0x283   : > { %vm1829_vm0 = vcmp.eq.s32.totalorder %v5343_v43, %v3292_v9  ;;  %v1549_v27 = vadd.f32 %v1485_v13, %v1341_v52  ;;  %v1693_v15 = vsel %vm1621_vm12, %v3455_v45, 0.0  ;;  %v1725_v17 = vsel %vm1653_vm2, %v3455_v45, 0.0 }
 0x284   : > { %v1581_v42 = vadd.f32 %v1517_v22, %v1373_v59  ;;  %vm1861_vm15 = vcmp.eq.s32.totalorder %v5346_v55, %v3292_v9  ;;  %v1901_v51 = vsel %vm1829_vm0, %v3458_v46, 0.0  ;;  %vm2037_vm10 = vcmp.eq.s32.totalorder %v5343_v43, %v3295_v10 }
 0x285   : > { %vm2069_vm14 = vcmp.eq.s32.totalorder %v5346_v55, %v3295_v10  ;;  %v1757_v32 = vadd.f32 %v1693_v15, %v1549_v27  ;;  %v1933_v18 = vsel %vm1861_vm15, %v3458_v46, 0.0  ;;  %v2109_v58 = vsel %vm2037_vm10, %v3461_v47, 0.0 }
 0x286   : > { %v1789_v23 = vadd.f32 %v1725_v17, %v1581_v42  ;;  %v2141_v19 = vsel %vm2069_vm14, %v3461_v47, 0.0  ;;  %vm582_vm6 = vcmp.eq.s32.totalorder %v5349_v12, %v3223_v54  ;;  %vm614_vm1 = vcmp.eq.s32.totalorder %v5352_v48, %v3223_v54 }
 0x287   : > { %vm790_vm8 = vcmp.eq.s32.totalorder %v5349_v12, %v3230_v56  ;;  %v1965_v43 = vadd.f32 %v1901_v51, %v1757_v32  ;;  %v654_v55 = vsel %vm582_vm6, %v3371_v30, 0.0  ;;  %v686_v44 = vsel %vm614_vm1, %v3371_v30, 0.0 }
 0x288   : > { %v1997_v14 = vadd.f32 %v1933_v18, %v1789_v23  ;;  %vm822_vm4 = vcmp.eq.s32.totalorder %v5352_v48, %v3230_v56  ;;  %v862_v41 = vsel %vm790_vm8, %v3374_v31, 0.0  ;;  %vm998_vm13 = vcmp.eq.s32.totalorder %v5349_v12, %v3233_v57 }
 0x289   : > { %vm1030_vm5 = vcmp.eq.s32.totalorder %v5352_v48, %v3233_v57  ;;  %v2173_v29 = vadd.f32 %v2109_v58, %v1965_v43  ;;  %v894_v39 = vsel %vm822_vm4, %v3374_v31, 0.0  ;;  %v926_v28 = vadd.f32 %v862_v41, %v654_v55 }
 0x28a   : > { %v2205_v0 = vadd.f32 %v2141_v19, %v1997_v14  ;;  %v958_v24 = vadd.f32 %v894_v39, %v686_v44  ;;  %v1070_v53 = vsel %vm998_vm13, %v3377_v33, 0.0  ;;  %v1102_v49 = vsel %vm1030_vm5, %v3377_v33, 0.0 }
 0x28b   : > { %vm1206_vm3 = vcmp.eq.s32.totalorder %v5349_v12, %v3247_v61  ;;  %v1134_v26 = vadd.f32 %v1070_v53, %v926_v28  ;;  %vm1238_vm9 = vcmp.eq.s32.totalorder %v5352_v48, %v3247_v61  ;;  %vm1414_vm7 = vcmp.eq.s32.totalorder %v5349_v12, %v3250_v62 }
 0x28c   : > { %v2777_v11 = vpack.i.bf16 %v2173_v29, %v2205_v0  ;;  %v1278_v52 = vsel %vm1206_vm3, %v3380_v34, 0.0  ;;  %v1166_v59 = vadd.f32 %v1102_v49, %v958_v24  ;;  %v1310_v13 = vsel %vm1238_vm9, %v3380_v34, 0.0 }
 0x28d   : > { %vm1446_vm11 = vcmp.eq.s32.totalorder %v5352_v48, %v3250_v62  ;;  %v1342_v22 = vadd.f32 %v1278_v52, %v1134_v26  ;;  %v1486_v27 = vsel %vm1414_vm7, %v3387_v35, 0.0  ;;  %vm1622_vm12 = vcmp.eq.s32.totalorder %v5349_v12, %v3259_v63 }
 0x28e   : > { %2778 = vxpose.xlu1.b32.cont [13/16] %v2777_v11, 128  ;;  %v1518_v42 = vsel %vm1446_vm11, %v3387_v35, 0.0  ;;  %v1374_v15 = vadd.f32 %v1310_v13, %v1166_v59  ;;  %vm1654_vm2 = vcmp.eq.s32.totalorder %v5352_v48, %v3259_v63  ;;  %v1694_v17 = vsel %vm1622_vm12, %v3390_v36, 0.0 }
 0x28f   : > { %vm1830_vm0 = vcmp.eq.s32.totalorder %v5349_v12, %v3264_v1  ;;  %v1550_v51 = vadd.f32 %v1486_v27, %v1342_v22  ;;  %v1726_v32 = vsel %vm1654_vm2, %v3390_v36, 0.0  ;;  %vm1862_vm15 = vcmp.eq.s32.totalorder %v5352_v48, %v3264_v1 }
 0x290   : > { %v1902_v23 = vsel %vm1830_vm0, %v3393_v37, 0.0  ;;  %v1582_v18 = vadd.f32 %v1518_v42, %v1374_v15  ;;  %v1934_v58 = vsel %vm1862_vm15, %v3393_v37, 0.0  ;;  %vm2038_vm10 = vcmp.eq.s32.totalorder %v5349_v12, %v3267_v2 }
 0x291   : > { %vm2070_vm14 = vcmp.eq.s32.totalorder %v5352_v48, %v3267_v2  ;;  %v1758_v19 = vadd.f32 %v1694_v17, %v1550_v51  ;;  %v2110_v43 = vsel %vm2038_vm10, %v3396_v38, 0.0  ;;  %vm583_vm6 = vcmp.eq.s32.totalorder %v5349_v12, %v3270_v3 }
 0x292   : > { %v2142_v14 = vsel %vm2070_vm14, %v3396_v38, 0.0  ;;  %v1790_v55 = vadd.f32 %v1726_v32, %v1582_v18  ;;  %vm615_vm1 = vcmp.eq.s32.totalorder %v5352_v48, %v3270_v3  ;;  %v655_v44 = vsel %vm583_vm6, %v3436_v50, 0.0 }
 0x293   : > { %vm791_vm8 = vcmp.eq.s32.totalorder %v5349_v12, %v3273_v4  ;;  %v1966_v41 = vadd.f32 %v1902_v23, %v1758_v19  ;;  %v687_v29 = vsel %vm615_vm1, %v3436_v50, 0.0  ;;  %vm823_vm4 = vcmp.eq.s32.totalorder %v5352_v48, %v3273_v4 }
 0x294   : > { %v863_v0 = vsel %vm791_vm8, %v3439_v60, 0.0  ;;  %v1998_v39 = vadd.f32 %v1934_v58, %v1790_v55  ;;  %v895_v28 = vsel %vm823_vm4, %v3439_v60, 0.0  ;;  %vm999_vm13 = vcmp.eq.s32.totalorder %v5349_v12, %v3276_v5 }
 0x295   : > { %v927_v24 = vadd.f32 %v863_v0, %v655_v44  ;;  %v2174_v53 = vadd.f32 %v2110_v43, %v1966_v41  ;;  %v959_v49 = vadd.f32 %v895_v28, %v687_v29  ;;  %vm1031_vm5 = vcmp.eq.s32.totalorder %v5352_v48, %v3276_v5 }
 0x296   : > { %v1071_v11 = vsel %vm999_vm13, %v3442_v16, 0.0  ;;  %v2206_v26 = vadd.f32 %v2142_v14, %v1998_v39  ;;  %v1103_v52 = vsel %vm1031_vm5, %v3442_v16, 0.0  ;;  %vm1207_vm3 = vcmp.eq.s32.totalorder %v5349_v12, %v3279_v6 }
 0x297   : > { %v1135_v59 = vadd.f32 %v1071_v11, %v927_v24  ;;  %v1167_v13 = vadd.f32 %v1103_v52, %v959_v49  ;;  %vm1239_vm9 = vcmp.eq.s32.totalorder %v5352_v48, %v3279_v6  ;;  %v1279_v22 = vsel %vm1207_vm3, %v3445_v21, 0.0 }
 0x298   : > { %vm1415_vm7 = vcmp.eq.s32.totalorder %v5349_v12, %v3282_v7  ;;  %v2667_v27 = vpack.i.bf16 %v2174_v53, %v2206_v26  ;;  %v1311_v42 = vsel %vm1239_vm9, %v3445_v21, 0.0  ;;  %vm1447_vm11 = vcmp.eq.s32.totalorder %v5352_v48, %v3282_v7 }
 0x299   : > { %v1343_v15 = vadd.f32 %v1279_v22, %v1135_v59  ;;  %v1375_v17 = vadd.f32 %v1311_v42, %v1167_v13  ;;  %v1487_v51 = vsel %vm1415_vm7, %v3452_v25, 0.0  ;;  %v1519_v32 = vsel %vm1447_vm11, %v3452_v25, 0.0 }
 0x29a   : > { %vm1623_vm12 = vcmp.eq.s32.totalorder %v5349_v12, %v3289_v8  ;;  %2668 = vxpose.xlu0.b32.cont [14/16] %v2667_v27, 128  ;;  %vm1655_vm2 = vcmp.eq.s32.totalorder %v5352_v48, %v3289_v8  ;;  %vm1831_vm0 = vcmp.eq.s32.totalorder %v5349_v12, %v3292_v9  ;;  %vm1863_vm15 = vcmp.eq.s32.totalorder %v5352_v48, %v3292_v9 }
 0x29b   : > { %v1551_v23 = vadd.f32 %v1487_v51, %v1343_v15  ;;  %v1695_v18 = vsel %vm1623_vm12, %v3455_v45, 0.0  ;;  %v1583_v58 = vadd.f32 %v1519_v32, %v1375_v17  ;;  %v1727_v19 = vsel %vm1655_vm2, %v3455_v45, 0.0 }
 0x29c   : > { %v1903_v43 = vsel %vm1831_vm0, %v3458_v46, 0.0  ;;  %v1935_v55 = vsel %vm1863_vm15, %v3458_v46, 0.0  ;;  %vm2039_vm10 = vcmp.eq.s32.totalorder %v5349_v12, %v3295_v10  ;;  %vm2071_vm14 = vcmp.eq.s32.totalorder %v5352_v48, %v3295_v10 }
 0x29d   : > { %v1759_v14 = vadd.f32 %v1695_v18, %v1551_v23  ;;  %v1791_v44 = vadd.f32 %v1727_v19, %v1583_v58  ;;  %v2111_v41 = vsel %vm2039_vm10, %v3461_v47, 0.0  ;;  %v2143_v29 = vsel %vm2071_vm14, %v3461_v47, 0.0 }
 0x29e   : > { %v5550_v0 = vadd.s32 240, %v3199_v40  ;;  %vm584_vm6 = vcmp.eq.s32.totalorder %v5355_v20, %v3223_v54  ;;  %vm792_vm1 = vcmp.eq.s32.totalorder %v5355_v20, %v3230_v56  ;;  %vm1000_vm8 = vcmp.eq.s32.totalorder %v5355_v20, %v3233_v57 }
 0x29f   : > { %v1967_v39 = vadd.f32 %v1903_v43, %v1759_v14  ;;  %v1999_v12 = vadd.f32 %v1935_v55, %v1791_v44  ;;  %v656_v48 = vsel %vm584_vm6, %v3371_v30, 0.0  ;;  %v864_v53 = vsel %vm792_vm1, %v3374_v31, 0.0 }
 0x2a0   : > { %vm616_vm4 = vcmp.eq.s32.totalorder %v5550_v0, %v3223_v54  ;;  %vm824_vm13 = vcmp.eq.s32.totalorder %v5550_v0, %v3230_v56  ;;  %v928_v26 = vadd.f32 %v864_v53, %v656_v48  ;;  %vm1032_vm5 = vcmp.eq.s32.totalorder %v5550_v0, %v3233_v57 }
 0x2a1   : > { %v2175_v28 = vadd.f32 %v2111_v41, %v1967_v39  ;;  %v688_v24 = vsel %vm616_vm4, %v3371_v30, 0.0  ;;  %v896_v49 = vsel %vm824_vm13, %v3374_v31, 0.0  ;;  %v2207_v11 = vadd.f32 %v2143_v29, %v1999_v12 }
 0x2a2   : > { %v960_v52 = vadd.f32 %v896_v49, %v688_v24  ;;  %v1072_v59 = vsel %vm1000_vm8, %v3377_v33, 0.0  ;;  %v1104_v13 = vsel %vm1032_vm5, %v3377_v33, 0.0  ;;  %vm1208_vm3 = vcmp.eq.s32.totalorder %v5355_v20, %v3247_v61 }
 0x2a3   : > { %vm1240_vm9 = vcmp.eq.s32.totalorder %v5550_v0, %v3247_v61  ;;  %v2779_v22 = vpack.i.bf16 %v2175_v28, %v2207_v11  ;;  %v1136_v27 = vadd.f32 %v1072_v59, %v928_v26  ;;  %v1280_v15 = vsel %vm1208_vm3, %v3380_v34, 0.0 }
 0x2a4   : > { %v1168_v42 = vadd.f32 %v1104_v13, %v960_v52  ;;  %v1312_v17 = vsel %vm1240_vm9, %v3380_v34, 0.0  ;;  %vm1416_vm7 = vcmp.eq.s32.totalorder %v5355_v20, %v3250_v62  ;;  %vm1448_vm11 = vcmp.eq.s32.totalorder %v5550_v0, %v3250_v62 }
 0x2a5   : > { %vm1624_vm12 = vcmp.eq.s32.totalorder %v5355_v20, %v3259_v63  ;;  %2780 = vxpose.xlu1.b32.cont [14/16] %v2779_v22, 128  ;;  %v1344_v51 = vadd.f32 %v1280_v15, %v1136_v27  ;;  %v1488_v23 = vsel %vm1416_vm7, %v3387_v35, 0.0  ;;  %v1520_v18 = vsel %vm1448_vm11, %v3387_v35, 0.0 }
 0x2a6   : > { %v1376_v32 = vadd.f32 %v1312_v17, %v1168_v42  ;;  %vm1656_vm2 = vcmp.eq.s32.totalorder %v5550_v0, %v3259_v63  ;;  %v1696_v58 = vsel %vm1624_vm12, %v3390_v36, 0.0  ;;  %vm1832_vm0 = vcmp.eq.s32.totalorder %v5355_v20, %v3264_v1 }
 0x2a7   : > { %vm1864_vm15 = vcmp.eq.s32.totalorder %v5550_v0, %v3264_v1  ;;  %v1552_v19 = vadd.f32 %v1488_v23, %v1344_v51  ;;  %v1728_v14 = vsel %vm1656_vm2, %v3390_v36, 0.0  ;;  %v1904_v55 = vsel %vm1832_vm0, %v3393_v37, 0.0 }
 0x2a8   : > { %v1584_v43 = vadd.f32 %v1520_v18, %v1376_v32  ;;  %v1936_v44 = vsel %vm1864_vm15, %v3393_v37, 0.0  ;;  %vm2040_vm10 = vcmp.eq.s32.totalorder %v5355_v20, %v3267_v2  ;;  %vm2072_vm14 = vcmp.eq.s32.totalorder %v5550_v0, %v3267_v2 }
 0x2a9   : > { %vm585_vm6 = vcmp.eq.s32.totalorder %v5355_v20, %v3270_v3  ;;  %v1760_v41 = vadd.f32 %v1696_v58, %v1552_v19  ;;  %v2112_v39 = vsel %vm2040_vm10, %v3396_v38, 0.0  ;;  %v2144_v12 = vsel %vm2072_vm14, %v3396_v38, 0.0 }
 0x2aa   : > { %v1792_v29 = vadd.f32 %v1728_v14, %v1584_v43  ;;  %vm617_vm1 = vcmp.eq.s32.totalorder %v5550_v0, %v3270_v3  ;;  %v657_v48 = vsel %vm585_vm6, %v3436_v50, 0.0  ;;  %vm793_vm8 = vcmp.eq.s32.totalorder %v5355_v20, %v3273_v4 }
 0x2ab   : > { %vm825_vm4 = vcmp.eq.s32.totalorder %v5550_v0, %v3273_v4  ;;  %v1968_v28 = vadd.f32 %v1904_v55, %v1760_v41  ;;  %v689_v53 = vsel %vm617_vm1, %v3436_v50, 0.0  ;;  %v865_v49 = vsel %vm793_vm8, %v3439_v60, 0.0 }
 0x2ac   : > { %v2000_v24 = vadd.f32 %v1936_v44, %v1792_v29  ;;  %v897_v11 = vsel %vm825_vm4, %v3439_v60, 0.0  ;;  %v929_v26 = vadd.f32 %v865_v49, %v657_v48  ;;  %vm1001_vm13 = vcmp.eq.s32.totalorder %v5355_v20, %v3276_v5 }
 0x2ad   : > { %vm1033_vm5 = vcmp.eq.s32.totalorder %v5550_v0, %v3276_v5  ;;  %v2176_v52 = vadd.f32 %v2112_v39, %v1968_v28  ;;  %v961_v13 = vadd.f32 %v897_v11, %v689_v53  ;;  %v1073_v22 = vsel %vm1001_vm13, %v3442_v16, 0.0 }
 0x2ae   : > { %v2208_v59 = vadd.f32 %v2144_v12, %v2000_v24  ;;  %v1105_v27 = vsel %vm1033_vm5, %v3442_v16, 0.0  ;;  %v1137_v42 = vadd.f32 %v1073_v22, %v929_v26  ;;  %vm1209_vm3 = vcmp.eq.s32.totalorder %v5355_v20, %v3279_v6 }
 0x2af   : > { %vm1241_vm9 = vcmp.eq.s32.totalorder %v5550_v0, %v3279_v6  ;;  %v1169_v17 = vadd.f32 %v1105_v27, %v961_v13  ;;  %v1281_v51 = vsel %vm1209_vm3, %v3445_v21, 0.0  ;;  %vm1417_vm7 = vcmp.eq.s32.totalorder %v5355_v20, %v3282_v7 }
 0x2b0   : > { %v2669_v15 = vpack.i.bf16 %v2176_v52, %v2208_v59  ;;  %v1313_v32 = vsel %vm1241_vm9, %v3445_v21, 0.0  ;;  %v1345_v23 = vadd.f32 %v1281_v51, %v1137_v42  ;;  %vm1449_vm11 = vcmp.eq.s32.totalorder %v5550_v0, %v3282_v7 }
 0x2b1   : > { %vm1625_vm12 = vcmp.eq.s32.totalorder %v5355_v20, %v3289_v8  ;;  %v1377_v18 = vadd.f32 %v1313_v32, %v1169_v17  ;;  %v1489_v58 = vsel %vm1417_vm7, %v3452_v25, 0.0  ;;  %vm1657_vm2 = vcmp.eq.s32.totalorder %v5550_v0, %v3289_v8 }
 0x2b2   : > { %2670 = vxpose.xlu0.b32.cont [15/16] %v2669_v15, 128  ;;  %v1521_v19 = vsel %vm1449_vm11, %v3452_v25, 0.0  ;;  %v1553_v43 = vadd.f32 %v1489_v58, %v1345_v23  ;;  %vm1833_vm0 = vcmp.eq.s32.totalorder %v5355_v20, %v3292_v9  ;;  %v1697_v55 = vsel %vm1625_vm12, %v3455_v45, 0.0 }
 0x2b3   : > { %v1585_v14 = vadd.f32 %v1521_v19, %v1377_v18  ;;  %vm1865_vm15 = vcmp.eq.s32.totalorder %v5550_v0, %v3292_v9  ;;  %vm2041_vm10 = vcmp.eq.s32.totalorder %v5355_v20, %v3295_v10  ;;  %v1729_v44 = vsel %vm1657_vm2, %v3455_v45, 0.0 }
 0x2b4   : > { %v1761_v41 = vadd.f32 %v1697_v55, %v1553_v43  ;;  %vm2073_vm14 = vcmp.eq.s32.totalorder %v5550_v0, %v3295_v10  ;;  %v1905_v39 = vsel %vm1833_vm0, %v3458_v46, 0.0  ;;  %v5646_v12 = vadd.s32 120, %v3199_v40 }
 0x2b5   : > { %v1793_v29 = vadd.f32 %v1729_v44, %v1585_v14  ;;  %v5649_v48 = vadd.s32 248, %v3199_v40  ;;  %v1937_v28 = vsel %vm1865_vm15, %v3458_v46, 0.0  ;;  %v2113_v20 = vsel %vm2041_vm10, %v3461_v47, 0.0 }
 0x2b6   : > { %v1969_v24 = vadd.f32 %v1905_v39, %v1761_v41  ;;  %v2145_v53 = vsel %vm2073_vm14, %v3461_v47, 0.0  ;;  %vm586_vm6 = vcmp.eq.s32.totalorder %v5646_v12, %v3223_v54  ;;  %vm794_vm8 = vcmp.eq.s32.totalorder %v5646_v12, %v3230_v56 }
 0x2b7   : > { %v2001_v49 = vadd.f32 %v1937_v28, %v1793_v29  ;;  %vm618_vm1 = vcmp.eq.s32.totalorder %v5649_v48, %v3223_v54  ;;  %v658_v40 = vsel %vm586_vm6, %v3371_v30, 0.0  ;;  %vm826_vm4 = vcmp.eq.s32.totalorder %v5649_v48, %v3230_v56 }
 0x2b8   : > { %v2177_v0 = vadd.f32 %v2113_v20, %v1969_v24  ;;  %v690_v11 = vsel %vm618_vm1, %v3371_v30, 0.0  ;;  %v866_v52 = vsel %vm794_vm8, %v3374_v31, 0.0  ;;  %v898_v59 = vsel %vm826_vm4, %v3374_v31, 0.0 }
 0x2b9   : > { %v2209_v26 = vadd.f32 %v2145_v53, %v2001_v49  ;;  %vm1002_vm13 = vcmp.eq.s32.totalorder %v5646_v12, %v3233_v57  ;;  %v930_v54 = vadd.f32 %v866_v52, %v658_v40  ;;  %v962_v13 = vadd.f32 %v898_v59, %v690_v11 }
 0x2ba   : > { %vm1034_vm5 = vcmp.eq.s32.totalorder %v5649_v48, %v3233_v57  ;;  %v1074_v22 = vsel %vm1002_vm13, %v3377_v33, 0.0  ;;  %vm1210_vm3 = vcmp.eq.s32.totalorder %v5646_v12, %v3247_v61  ;;  %vm1242_vm9 = vcmp.eq.s32.totalorder %v5649_v48, %v3247_v61 }
 0x2bb   : > { %v2781_v27 = vpack.i.bf16 %v2177_v0, %v2209_v26  ;;  %v1106_v30 = vsel %vm1034_vm5, %v3377_v33, 0.0  ;;  %v1138_v56 = vadd.f32 %v1074_v22, %v930_v54  ;;  %v1282_v42 = vsel %vm1210_vm3, %v3380_v34, 0.0 }
 0x2bc   : > { %v1170_v31 = vadd.f32 %v1106_v30, %v962_v13  ;;  %v1314_v15 = vsel %vm1242_vm9, %v3380_v34, 0.0  ;;  %vm1418_vm7 = vcmp.eq.s32.totalorder %v5646_v12, %v3250_v62  ;;  %vm1450_vm11 = vcmp.eq.s32.totalorder %v5649_v48, %v3250_v62 }
 0x2bd   : > { %2782 = vxpose.xlu1.b32.cont [15/16] %v2781_v27, 128  ;;  %vm1626_vm12 = vcmp.eq.s32.totalorder %v5646_v12, %v3259_v63  ;;  %vm1658_vm2 = vcmp.eq.s32.totalorder %v5649_v48, %v3259_v63  ;;  %v1346_v57 = vadd.f32 %v1282_v42, %v1138_v56  ;;  %v1490_v33 = vsel %vm1418_vm7, %v3387_v35, 0.0 }
 0x2be   : > { %v1378_v61 = vadd.f32 %v1314_v15, %v1170_v31  ;;  %v1522_v17 = vsel %vm1450_vm11, %v3387_v35, 0.0  ;;  %v1698_v34 = vsel %vm1626_vm12, %v3390_v36, 0.0  ;;  %v1730_v51 = vsel %vm1658_vm2, %v3390_v36, 0.0 }
 0x2bf   : > { %vm1834_vm0 = vcmp.eq.s32.totalorder %v5646_v12, %v3264_v1  ;;  %vm1866_vm15 = vcmp.eq.s32.totalorder %v5649_v48, %v3264_v1  ;;  %v1554_v62 = vadd.f32 %v1490_v33, %v1346_v57  ;;  %vm2042_vm10 = vcmp.eq.s32.totalorder %v5646_v12, %v3267_v2 }
 0x2c0   : > { %v1586_v32 = vadd.f32 %v1522_v17, %v1378_v61  ;;  %v1906_v63 = vsel %vm1834_vm0, %v3393_v37, 0.0  ;;  %v1938_v23 = vsel %vm1866_vm15, %v3393_v37, 0.0  ;;  %vm2074_vm14 = vcmp.eq.s32.totalorder %v5649_v48, %v3267_v2 }
 0x2c1   : > { %vm587_vm6 = vcmp.eq.s32.totalorder %v5646_v12, %v3270_v3  ;;  %vm619_vm1 = vcmp.eq.s32.totalorder %v5649_v48, %v3270_v3  ;;  %v1762_v35 = vadd.f32 %v1698_v34, %v1554_v62  ;;  %v2114_v36 = vsel %vm2042_vm10, %v3396_v38, 0.0 }
 0x2c2   : > { %v1794_v1 = vadd.f32 %v1730_v51, %v1586_v32  ;;  %v2146_v18 = vsel %vm2074_vm14, %v3396_v38, 0.0  ;;  %v659_v37 = vsel %vm587_vm6, %v3436_v50, 0.0  ;;  %v691_v58 = vsel %vm619_vm1, %v3436_v50, 0.0 }
 0x2c3   : > { %vm795_vm8 = vcmp.eq.s32.totalorder %v5646_v12, %v3273_v4  ;;  %vm827_vm4 = vcmp.eq.s32.totalorder %v5649_v48, %v3273_v4  ;;  %v1970_v2 = vadd.f32 %v1906_v63, %v1762_v35  ;;  %vm1003_vm13 = vcmp.eq.s32.totalorder %v5646_v12, %v3276_v5 }
 0x2c4   : > { %v2002_v19 = vadd.f32 %v1938_v23, %v1794_v1  ;;  %v867_v3 = vsel %vm795_vm8, %v3439_v60, 0.0  ;;  %v899_v43 = vsel %vm827_vm4, %v3439_v60, 0.0  ;;  %vm1035_vm5 = vcmp.eq.s32.totalorder %v5649_v48, %v3276_v5 }
 0x2c5   : > { %v931_v14 = vadd.f32 %v867_v3, %v659_v37  ;;  %v963_v55 = vadd.f32 %v899_v43, %v691_v58  ;;  %v2178_v38 = vadd.f32 %v2114_v36, %v1970_v2  ;;  %v1075_v44 = vsel %vm1003_vm13, %v3442_v16, 0.0 }
 0x2c6   : > { %v2210_v50 = vadd.f32 %v2146_v18, %v2002_v19  ;;  %v1107_v4 = vsel %vm1035_vm5, %v3442_v16, 0.0  ;;  %vm1211_vm3 = vcmp.eq.s32.totalorder %v5646_v12, %v3279_v6  ;;  %vm1243_vm9 = vcmp.eq.s32.totalorder %v5649_v48, %v3279_v6 }
 0x2c7   : > { %v1139_v41 = vadd.f32 %v1075_v44, %v931_v14  ;;  %v1171_v29 = vadd.f32 %v1107_v4, %v963_v55  ;;  %v1283_v39 = vsel %vm1211_vm3, %v3445_v21, 0.0  ;;  %v1315_v28 = vsel %vm1243_vm9, %v3445_v21, 0.0 }
 0x2c8   : > { %v2671_v60 = vpack.i.bf16 %v2178_v38, %v2210_v50  ;;  %vm1419_vm7 = vcmp.eq.s32.totalorder %v5646_v12, %v3282_v7  ;;  %vm1451_vm11 = vcmp.eq.s32.totalorder %v5649_v48, %v3282_v7  ;;  %vm1627_vm12 = vcmp.eq.s32.totalorder %v5646_v12, %v3289_v8 }
 0x2c9   : > { %v1347_v5 = vadd.f32 %v1283_v39, %v1139_v41  ;;  %v1379_v24 = vadd.f32 %v1315_v28, %v1171_v29  ;;  %v1491_v16 = vsel %vm1419_vm7, %v3452_v25, 0.0  ;;  %v1523_v20 = vsel %vm1451_vm11, %v3452_v25, 0.0 }
 0x2ca   : > { %2672 = vxpose.xlu0.b32.end [16/16] %v2671_v60, 128  ;;  %vm1659_vm2 = vcmp.eq.s32.totalorder %v5649_v48, %v3289_v8  ;;  %vm1835_vm0 = vcmp.eq.s32.totalorder %v5646_v12, %v3292_v9  ;;  %v1699_v53 = vsel %vm1627_vm12, %v3455_v45, 0.0  ;;  %vm1867_vm15 = vcmp.eq.s32.totalorder %v5649_v48, %v3292_v9 }
 0x2cb   : > { %v1555_v6 = vadd.f32 %v1491_v16, %v1347_v5  ;;  %v1587_v21 = vadd.f32 %v1523_v20, %v1379_v24  ;;  %v1731_v7 = vsel %vm1659_vm2, %v3455_v45, 0.0  ;;  %vm2043_vm10 = vcmp.eq.s32.totalorder %v5646_v12, %v3295_v10  ;;  %v387_v12 = vld [vmem:[%s5894_s5 + $0x8] sm:$0xff] }
 0x2cc   : > { %vm2075_vm14 = vcmp.eq.s32.totalorder %v5649_v48, %v3295_v10  ;;  %v1907_v8 = vsel %vm1835_vm0, %v3458_v46, 0.0  ;;  %v1939_v0 = vsel %vm1867_vm15, %v3458_v46, 0.0  ;;  %v2115_v26 = vsel %vm2043_vm10, %v3461_v47, 0.0  ;;  %v386_v10 = vld [vmem:[%s5894_s5] sm:$0xff]  ;;  %v388_v46 = vld [vmem:[%s5894_s5 + $0x10] sm:$0xff] }
 0x2cd   : > { %v1763_v49 = vadd.f32 %v1699_v53, %v1555_v6  ;;  %v1795_v25 = vadd.f32 %v1731_v7, %v1587_v21  ;;  %v2147_v45 = vsel %vm2075_vm14, %v3461_v47, 0.0  ;;  %v6052_v48 = vmov 0   ;;  %v389_v47 = vld [vmem:[%s5894_s5 + $0x18] sm:$0xff] }
 0x2cf   : > { %v1971_v40 = vadd.f32 %v1907_v8, %v1763_v49  ;;  %v2003_v11 = vadd.f32 %v1939_v0, %v1795_v25 }
 0x2d1   : > { %v2179_v52 = vadd.f32 %v2115_v26, %v1971_v40  ;;  %v2211_v9 = vadd.f32 %v2147_v45, %v2003_v11 }
 0x2d3   : > { %v2783_v59 = vpack.i.bf16 %v2179_v52, %v2211_v9 }
 0x2d5   : > { %2784 = vxpose.xlu1.b32.end [16/16] %v2783_v59, 128 }
 0x2f3   : > { %2865 = vset.pattern.permute.xlu1 %v6052_v48  ;;  %397 = vperm.xlu0 %2640, %v387_v12  }
 0x2f4   : > { %392 = vperm.xlu1 %2865, %v386_v10  }
 0x2f8   : > { %402 = vperm.xlu1 %2865, %v388_v46  }
 0x2fc   : > { %407 = vperm.xlu1 %2865, %v389_v47  }
 0x30a   : > { %v2673_v54 = vpop.trf.xlu0 }
 0x30b   : > { %v2677_v13 = vunpack.i.h.bf16 %v2673_v54  ;;  %v2674_v22 = vunpack.i.l.bf16 %v2673_v54 }
 0x30e   : > { %v2678_v27 = vpop.trf.xlu0 }
 0x30f   : > { %v2682_v30 = vunpack.i.h.bf16 %v2678_v27  ;;  %v2679_v56 = vunpack.i.l.bf16 %v2678_v27 }
 0x311   : > { %v5763_v31 = vpack.c.bf16 %v2679_v56, %v2674_v22  ;;  %v5765_v42 = vpack.c.bf16 %v2682_v30, %v2677_v13 }
 0x312   : > { %v2683_v15 = vpop.trf.xlu0 }
 0x313   : > { %v2687_v61 = vunpack.i.h.bf16 %v2683_v15  ;;  %v2684_v33 = vunpack.i.l.bf16 %v2683_v15 }
 0x315   : > { %v2785_v57 = vpop.trf.xlu1 }
 0x316   : > { %v2688_v17 = vpop.trf.xlu0  ;;  %v2789_v62 = vunpack.i.h.bf16 %v2785_v57  ;;  %v2786_v32 = vunpack.i.l.bf16 %v2785_v57 }
 0x317   : > { %v2692_v34 = vunpack.i.h.bf16 %v2688_v17  ;;  %v2689_v51 = vunpack.i.l.bf16 %v2688_v17 }
 0x319   : > { %v2790_v63 = vpop.trf.xlu1  ;;  %v5767_v23 = vpack.c.bf16 %v2689_v51, %v2684_v33  ;;  %v5769_v35 = vpack.c.bf16 %v2692_v34, %v2687_v61 }
 0x31a   : > { %v5771_v1 = vpop.trf.xlu0  ;;  %v2794_v36 = vunpack.i.h.bf16 %v2790_v63  ;;  %v2791_v18 = vunpack.i.l.bf16 %v2790_v63 }
 0x31c   : > { %v5773_v37 = vpack.c.bf16 %v2791_v18, %v2786_v32  ;;  %v5775_v58 = vpack.c.bf16 %v2794_v36, %v2789_v62 }
 0x31d   : > { %v2795_v2 = vpop.trf.xlu1 }
 0x31e   : > { %v5777_v19 = vpop.trf.xlu0  ;;  %v2799_v3 = vunpack.i.h.bf16 %v2795_v2  ;;  %v2796_v43 = vunpack.i.l.bf16 %v2795_v2 }
 0x321   : > { %v2800_v14 = vpop.trf.xlu1 }
 0x322   : > { %v5779_v55 = vpop.trf.xlu0  ;;  %v2804_v38 = vunpack.i.h.bf16 %v2800_v14  ;;  %v2801_v50 = vunpack.i.l.bf16 %v2800_v14 }
 0x324   : > { %v5781_v44 = vpack.c.bf16 %v2801_v50, %v2796_v43  ;;  %v5783_v4 = vpack.c.bf16 %v2804_v38, %v2799_v3 }
 0x325   : > { %v2805_v41 = vpop.trf.xlu1 }
 0x326   : > { %v5785_v29 = vpop.trf.xlu0  ;;  %v2809_v60 = vunpack.i.h.bf16 %v2805_v41  ;;  %v2806_v39 = vunpack.i.l.bf16 %v2805_v41 }
 0x329   : > { %v2810_v28 = vpop.trf.xlu1 }
 0x32a   : > { %v2713_v5 = vpop.trf.xlu0  ;;  %v2814_v24 = vunpack.i.h.bf16 %v2810_v28  ;;  %v2811_v16 = vunpack.i.l.bf16 %v2810_v28 }
 0x32b   : > { %v2714_v14 = vunpack.i.l.bf16 %v2713_v5  ;;  %v2717_v28 = vunpack.i.h.bf16 %v2713_v5 }
 0x32c   : > { %v5787_v20 = vpack.c.bf16 %v2811_v16, %v2806_v39  ;;  %v5789_v6 = vpack.c.bf16 %v2814_v24, %v2809_v60  ;;  %v2709_v60 = vunpack.i.l.bf16 %v5785_v29  ;;  %v2704_v24 = vunpack.i.l.bf16 %v5779_v55 }
 0x32d   : > { %v2815_v21 = vpop.trf.xlu1  ;;  %v2712_v16 = vunpack.i.h.bf16 %v5785_v29  ;;  %v460_v29 = vpop.f32.mrf.mxu1 }
 0x32e   : > { %v2718_v53 = vpop.trf.xlu0  ;;  %v2819_v7 = vunpack.i.h.bf16 %v2815_v21  ;;  %v2816_v49 = vunpack.i.l.bf16 %v2815_v21 }
 0x32f   : > { %v2719_v2 = vunpack.i.l.bf16 %v2718_v53  ;;  %v2722_v50 = vunpack.i.h.bf16 %v2718_v53  ;;  %v2694_v53 = vunpack.i.l.bf16 %v5771_v1 }
 0x331   : > { %v2820_v25 = vpop.trf.xlu1  ;;  %v2353_v39 = vpack.c.bf16 %v2719_v2, %v2714_v14  ;;  %v2352_v21 = vpack.c.bf16 %v2722_v50, %v2717_v28 }
 0x332   : > { %v2723_v8 = vpop.trf.xlu0  ;;  %v2824_v0 = vunpack.i.h.bf16 %v2820_v25  ;;  %v2821_v40 = vunpack.i.l.bf16 %v2820_v25  ;;  %v2707_v25 = vunpack.i.h.bf16 %v5779_v55  ;;  %v462_v55 = vpop.f32.mrf.mxu1 }
 0x333   : > { %v2724_v32 = vunpack.i.l.bf16 %v2723_v8  ;;  %v2727_v43 = vunpack.i.h.bf16 %v2723_v8  ;;  %v2702_v8 = vunpack.i.h.bf16 %v5777_v19 }
 0x334   : > { %v5791_v11 = vpack.c.bf16 %v2821_v40, %v2816_v49  ;;  %v5793_v26 = vpack.c.bf16 %v2824_v0, %v2819_v7  ;;  %v2699_v7 = vunpack.i.l.bf16 %v5777_v19  ;;  %v2351_v49 = vpack.c.bf16 %v2709_v60, %v2704_v24 }
 0x335   : > { %v5795_v45 = vpop.trf.xlu1  ;;  %v2350_v0 = vpack.c.bf16 %v2712_v16, %v2707_v25  ;;  %v2697_v40 = vunpack.i.h.bf16 %v5771_v1 }
 0x336   : > { %v2728_v52 = vpop.trf.xlu0  ;;  %v2349_v5 = vpack.c.bf16 %v2699_v7, %v2694_v53 }
 0x337   : > { %v2729_v34 = vunpack.i.l.bf16 %v2728_v52  ;;  %v2732_v36 = vunpack.i.h.bf16 %v2728_v52  ;;  %v2348_v52 = vpack.c.bf16 %v2702_v8, %v2697_v40 }
 0x339   : > { %v5797_v9 = vpop.trf.xlu1  ;;  %v2355_v3 = vpack.c.bf16 %v2729_v34, %v2724_v32  ;;  %v2354_v41 = vpack.c.bf16 %v2732_v36, %v2727_v43  ;;  %v2826_v34 = vunpack.i.l.bf16 %v5795_v45 }
 0x33a   : > { %v2733_v59 = vpop.trf.xlu0  ;;  %v2834_v36 = vunpack.i.h.bf16 %v5797_v9 }
 0x33b   : > { %v2734_v15 = vunpack.i.l.bf16 %v2733_v59  ;;  %v2737_v62 = vunpack.i.h.bf16 %v2733_v59 }
 0x33d   : > { %v5799_v12 = vpop.trf.xlu1 }
 0x33e   : > { %v2738_v10 = vpop.trf.xlu0 }
 0x33f   : > { %v2739_v47 = vunpack.i.l.bf16 %v2738_v10  ;;  %v2742_v17 = vunpack.i.h.bf16 %v2738_v10 }
 0x341   : > { %v5801_v48 = vpop.trf.xlu1  ;;  %v2357_v51 = vpack.c.bf16 %v2739_v47, %v2734_v15  ;;  %v2356_v18 = vpack.c.bf16 %v2742_v17, %v2737_v62 }
 0x342   : > { %v2743_v46 = vpop.trf.xlu0 }
 0x343   : > { %v2744_v22 = vunpack.i.l.bf16 %v2743_v46  ;;  %v2747_v27 = vunpack.i.h.bf16 %v2743_v46 }
 0x345   : > { %v5803_v54 = vpop.trf.xlu1 }
 0x346   : > { %v2748_v13 = vpop.trf.xlu0  ;;  %v2846_v47 = vunpack.i.l.bf16 %v5803_v54 }
 0x347   : > { %v2749_v30 = vunpack.i.l.bf16 %v2748_v13  ;;  %v2752_v56 = vunpack.i.h.bf16 %v2748_v13 }
 0x349   : > { %v2359_v57 = vpack.c.bf16 %v2749_v30, %v2744_v22  ;;  %v2358_v61 = vpack.c.bf16 %v2752_v56, %v2747_v27  ;;  %v5805_v33 = vpop.trf.xlu1  ;;  %v464_v22 = vpop.f32.mrf.mxu1 }
 0x34a   : > { %v2851_v1 = vunpack.i.l.bf16 %v5805_v33  ;;  %v2854_v27 = vunpack.i.h.bf16 %v5805_v33 }
 0x34b   : > { %2376 = vmatprep.subr.bf16.mxu0 %v2359_v57  ;;  %v466_v15 = vpop.f32.mrf.mxu1  ;;  %v2839_v57 = vunpack.i.h.bf16 %v5799_v12 }
 0x34c   : > { %2377 = vmatpush1.bf16.msra.mxu0 %v2358_v61  ;;  %v2373_v56 = vpack.c.bf16 %v2851_v1, %v2846_v47  ;;  %v2844_v61 = vunpack.i.h.bf16 %v5801_v48 }
 0x34d   : > { %2378 = vmatprep.subr.bf16.mxu0 %v2357_v51  ;;  %v2855_v63 = vpop.trf.xlu1 }
 0x34e   : > { %v2856_v59 = vunpack.i.l.bf16 %v2855_v63  ;;  %v2859_v46 = vunpack.i.h.bf16 %v2855_v63  ;;  %v2829_v63 = vunpack.i.h.bf16 %v5795_v45 }
 0x350   : > { %2379 = vmatpush1.bf16.msra.mxu0 %v2356_v18 }
 0x351   : > { %2380 = vmatprep.subr.bf16.mxu0 %v2355_v3  ;;  %v2860_v38 = vpop.trf.xlu1  ;;  %v470_v3 = vpop.f32.mrf.mxu1 }
 0x352   : > { %v2861_v10 = vunpack.i.l.bf16 %v2860_v38  ;;  %v2864_v19 = vunpack.i.h.bf16 %v2860_v38 }
 0x353   : > { %v472_v43 = vpop.f32.mrf.mxu1 }
 0x354   : > { %2381 = vmatpush1.bf16.msra.mxu0 %v2354_v41  ;;  %v2375_v13 = vpack.c.bf16 %v2861_v10, %v2856_v59  ;;  %v2374_v30 = vpack.c.bf16 %v2864_v19, %v2859_v46 }
 0x355   : > { %2382 = vmatprep.subr.bf16.mxu0 %v2353_v39  ;;  %v474_v45 = vpop.f32.mrf.mxu1 }
 0x358   : > { %2383 = vmatpush1.bf16.msra.mxu0 %v2352_v21 }
 0x359   : > { %2384 = vmatprep.subr.bf16.mxu0 %v2351_v49 }
 0x35c   : > { %2385 = vmatpush1.bf16.msra.mxu0 %v2350_v0 }
 0x35d   : > { %2386 = vmatprep.subr.bf16.mxu0 %v2349_v5 }
 0x360   : > { %2387 = vmatpush1.bf16.msra.mxu0 %v2348_v52 }
 0x361   : > { %2388 = vmatprep.subr.bf16.mxu0 %v5767_v23  ;;  %v2849_v23 = vunpack.i.h.bf16 %v5803_v54  ;;  %v2831_v54 = vunpack.i.l.bf16 %v5797_v9  ;;  %v476_v9 = vpop.f32.mrf.mxu1 }
 0x363   : > { %v2372_v17 = vpack.c.bf16 %v2854_v27, %v2849_v23  ;;  %v2369_v2 = vpack.c.bf16 %v2831_v54, %v2826_v34 }
 0x364   : > { %2389 = vmatpush1.bf16.msra.mxu0 %v5769_v35  ;;  %v2836_v35 = vunpack.i.l.bf16 %v5799_v12  ;;  %v2370_v12 = vpack.c.bf16 %v2844_v61, %v2839_v57 }
 0x365   : > { %2390 = vmatprep.subr.bf16.mxu0 %v5763_v31  ;;  %v2841_v31 = vunpack.i.l.bf16 %v5801_v48  ;;  %v2368_v48 = vpack.c.bf16 %v2834_v36, %v2829_v63 }
 0x367   : > { %v2371_v62 = vpack.c.bf16 %v2841_v31, %v2836_v35 }
 0x368   : > { %2391 = vmatpush1.bf16.msra.mxu0 %v5765_v42 }
 0x369   : > { %2392 = vmatprep.subr.bf16.mxu0 %v2375_v13 }
 0x36c   : > { %2393 = vmatpush2.bf16.msra.mxu0 %v2374_v30 }
 0x36d   : > { %2394 = vmatprep.subr.bf16.mxu0 %v2373_v56 }
 0x36e   : > { %v398_v42 = vpop.permute.xlu0 %397 }
 0x36f   : > { %v393_v33 = vpop.permute.xlu1 %392  ;;  %v467_v51 = vadd.f32 %v466_v15, %v398_v42  ;;  %v465_v41 = vadd.f32 %v464_v22, %v398_v42 }
 0x370   : > { %v463_v32 = vadd.f32 %v462_v55, %v393_v33  ;;  %2395 = vmatpush2.bf16.msra.mxu0 %v2372_v17  ;;  %v461_v50 = vadd.f32 %v460_v29, %v393_v33 }
 0x371   : > { %2396 = vmatprep.subr.bf16.mxu0 %v2371_v62 }
 0x372   : > { %v2213_v18 = vpack.c.bf16 %v467_v51, %v463_v32 }
 0x373   : > { %v403_v14 = vpop.permute.xlu1 %402 }
 0x374   : > { %2408 = vmatprep.mubr.bf16.mxu0 %v2213_v18  ;;  %2397 = vmatpush2.bf16.msra.mxu0 %v2370_v12 }
 0x375   : > { %2398 = vmatprep.subr.bf16.mxu0 %v2369_v2 }
 0x377   : > { %v408_v38 = vpop.permute.xlu1 %407 }
 0x378   : > { %2399 = vmatpush2.bf16.msra.mxu0 %v2368_v48  ;;  %v477_v60 = vadd.f32 %v476_v9, %v408_v38  ;;  %v475_v39 = vadd.f32 %v474_v45, %v408_v38 }
 0x379   : > { %2400 = vmatprep.subr.bf16.mxu0 %v5791_v11  ;;  %v473_v11 = vadd.f32 %v472_v43, %v403_v14 }
 0x37c   : > { %2401 = vmatpush2.bf16.msra.mxu0 %v5793_v26  ;;  %v2215_v26 = vpack.c.bf16 %v477_v60, %v473_v11 }
 0x37d   : > { %2402 = vmatprep.subr.bf16.mxu0 %v5787_v20  ;;  %v2212_v20 = vpack.c.bf16 %v465_v41, %v461_v50 }
 0x380   : > { %2403 = vmatpush2.bf16.msra.mxu0 %v5789_v6  ;;  %v471_v6 = vadd.f32 %v470_v3, %v403_v14 }
 0x381   : > { %2404 = vmatprep.subr.bf16.mxu0 %v5781_v44 }
 0x382   : > { %v2214_v44 = vpack.c.bf16 %v475_v39, %v471_v6 }
 0x384   : > { %2405 = vmatpush2.bf16.msra.mxu0 %v5783_v4 }
 0x385   : > { %2406 = vmatprep.subr.bf16.mxu0 %v5773_v37 }
 0x388   : > { %2407 = vmatpush2.bf16.msra.mxu0 %v5775_v58 }
 0x38b   : > { %2409 = vmatmul.mubr.bf16.vlgmr.msra.gmra.mxu0 %v2212_v20 }
 0x38c   : > { %2418 = vmatprep.mubr.bf16.mxu0 %v2215_v26 }
 0x393   : > { %2419 = vmatmul.mubr.bf16.gmra.mxu0 %v2214_v44 }
 0x44b   : > { %v2410_v28 = vpop.f32.mrf.mxu0 }
 0x44c   : > { %2429 = vst [vmem:[%s299_s11] sm:$0xff] %v2410_v28 }
 0x44d   : > { %v2412_v4 = vpop.f32.mrf.mxu0 }
 0x44e   : > { %2430 = vst [vmem:[%s299_s11 + $0x8] sm:$0xff] %v2412_v4 }
 0x44f   : > { %v2414_v37 = vpop.f32.mrf.mxu0 }
 0x450   : > { %2431 = vst [vmem:[%s299_s11 + $0x10] sm:$0xff] %v2414_v37 }
 0x451   : > { %v2416_v24 = vpop.f32.mrf.mxu0 }
 0x452   : > { %2432 = vst [vmem:[%s299_s11 + $0x18] sm:$0xff] %v2416_v24 }
 0x453   : > { %v2420_v58 = vpop.f32.mrf.mxu0 }
 0x454   : > { %2433 = vst [vmem:[%s299_s11 + $0x20] sm:$0xff] %v2420_v58 }
 0x455   : > { %v2422_v16 = vpop.f32.mrf.mxu0 }
 0x456   : > { %2434 = vst [vmem:[%s299_s11 + $0x28] sm:$0xff] %v2422_v16 }
 0x457   : > { %v2424_v21 = vpop.f32.mrf.mxu0 }
 0x458   : > { %2435 = vst [vmem:[%s299_s11 + $0x30] sm:$0xff] %v2424_v21 }
 0x459   : > { %v2426_v7 = vpop.f32.mrf.mxu0 }
 0x45a   : > { %2436 = vst [vmem:[%s299_s11 + $0x38] sm:$0xff] %v2426_v7 }
 0x45b   : > { %2949 = shalt.err (!%p2946_p5)
}
 0x45c   : > { %s2950_s29 = scalar_lea.hbm %s5846_s14, 1024  ;;  %s2954_s10 = scalar_lea.hbm %s5895_s6, 2048 }
 0x45d   : > { %p2951_p9 = scmp.ne.s32.totalorder %s5846_s14, %s2950_s29  ;;  %p2955_p6 = scmp.lt.s32.totalorder %s5846_s14, %s5895_s6 }
 0x45e   : > { %p2956_p8 = scmp.lt.s32.totalorder %s2954_s10, %s2950_s29 }
 0x45f   : > { %p2952_p1 = pnand %p2951_p9, %p6053_p7 }
 0x460   : > { %p2957_p3 = por %p2956_p8, %p2955_p6 }
 0x461   : > { %p2953_p4 = pneg %p2952_p1 }
 0x463   : > { %p2958_p11 = pnand %p2957_p3, %p2953_p4 }
 0x465   : > { %2961 = shalt.err (!%p2958_p11)
}
 0x466   : > { %s3014_s7 = smov 256   ;;  %s3015_s15 = smov 16  }
 0x467   : > { %2582 = dma.vmem_to_hbm [thread:$0]  (%p6053_p7), %s5841_s13, 1024, %s5846_s14, %s2438_s16, %s3014_s7, %s3014_s7, %s3015_s15  }
 0x468 PF: > { %s2466_s26 = sand.u32 1, %s2992_s21   ;;  %p6054_p12 = scmp.ne.s32.totalorder %s5909_s28, 0 }
 0x469   : > { %p6055_p10 = scmp.ge.s32.totalorder %s3004_s24, 2  ;;  %s2467_s25 = scalar_lea.sflag [#allocation4], %s2466_s26 }
 0x46b   : > { %p2593_p2 = pnand %p6055_p10, %p6054_p12 }
 0x46d   : > { %p2594_p13 = pneg %p2593_p2 }
 0x46f   : > { %2987 = dma.done.wait (%p2594_p13), %s2467_s25, 1024  }
 0x470   : > { %2989 = vsyncadd (%p2594_p13), %s2467_s25, 4294966272  ;;  %p20_p0 = scmp.ge.s32.totalorder %s3105_s9, 4   ;;  %s6056_s21 = smov %s2996_s22 }
 0x471   : > { %s6057_s22 = smov %s3000_s23  ;;  %s6058_s23 = smov %s3122_s17 }
 0x472   : > { %s6059_s24 = smov %s3105_s9  ;;  %22 = sbr.rel (!%p20_p0) target bundleno = 6 (0x6), region = 96 }
 0x477   :  { %2472 = vsyncpa [#allocation3], 1 }
 0x478   :  { %2474 = vsyncpa [#allocation3 + $0x1], 1 }
 0x479   :  { %2475 = vsyncpa [#allocation6], 1 }
 0x47a   :  { %2476 = vsyncpa [#allocation4], 1 }
 0x47b   :  { %2478 = vsyncpa [#allocation4 + $0x1], 1 }

</bundles_post_ra>
